<compile_context>
chip_gen: v7x
topology: tpu7x:2x2x1
jax: 0.10.0
libtpu: 0.0.40
codegen_flags: <defaults>
</compile_context>

<pallas_src>
import jax
import jax.numpy as jnp
from jax import lax
from jax.experimental import pallas as pl
from jax.experimental.pallas import tpu as pltpu

INPUT_SIZE = 16
HIDDEN_SIZE = 32
NUM_LAYERS = 2
NUM_HEADS = 8
BATCH = 2
SEQ_LEN = 8

H = HIDDEN_SIZE
G = 4 * H                   # 128 gate lanes
HD = H // NUM_HEADS         # head dim = 4

_VMEM = pl.BlockSpec(memory_space=pltpu.MemorySpace.VMEM)

# ---- packed LSTM slab row offsets (all multiples of 8) ----
# per-layer section layout: [wih_T (din rows) | whh_T (32 rows) | bias (8 rows)]
_E0 = 0        # encoder layer 0 (din = 16):  16 + 32 + 8 = 56 rows
_E1 = 56       # encoder layer 1 (din = 32):  32 + 32 + 8 = 72 rows
_D0 = 128      # decoder layer 0
_D1 = 200      # decoder layer 1
_LSTM_ROWS = 272

# ---- packed attention/output slab row offsets ----
_A_W = 0       # rows  0:32 = [wq_T | wk_T | wv_T | wo_T]      (32, 128)
_A_B = 32      # row     32 = [bq   | bk   | bv   | bo  ]      (padded to 8 rows)
_A_WOUT = 40   # rows 40:72 = wout_T padded to 128 lanes        (32, 128)
_A_BOUT = 72   # row     72 = bout padded to 128 lanes          (padded to 8 rows)
_ATTN_ROWS = 80


# --------------------------------------------------------------------------
# In-kernel helpers
# --------------------------------------------------------------------------
def _cell(gates, c_prev):
    """LSTM cell from pre-scaled gate pre-activations.

    i/f/o gate columns of W and b were scaled by 0.5 at packing time, so a
    SINGLE full-width tanh gives all four gates:
        sigmoid(z) = 0.5 * tanh(0.5 * z) + 0.5   (i, f, o)
        tanh(z)                                   (g, unscaled)
    """
    th = jnp.tanh(gates)                            # one EUP op over (B, 4H)
    i_g = 0.5 * th[:, 0:H] + 0.5
    f_g = 0.5 * th[:, H:2 * H] + 0.5
    g_g = th[:, 2 * H:3 * H]
    o_g = 0.5 * th[:, 3 * H:4 * H] + 0.5
    c = f_g * c_prev + i_g * g_g
    h = o_g * jnp.tanh(c)
    return h, c


def _lstm_stack2(x_flat, wih0, whh0, b0, wih1, whh1, b1,
                 h0, c0, h1, c1, out_ref):
    """Two stacked LSTM layers, wavefront-interleaved.

    x_flat: (T*B, Din), time-major (row t*B + b).  Layer-1 outputs h1[t] are
    written to out_ref rows [t*B:(t+1)*B].  Returns final (h, c) of both
    layers.  Layer-0's input projection is hoisted; layer-1's is done per step
    (off the h1 chain) so the dependency critical path is ~T+1 cell latencies
    instead of 2*T.
    """
    B, T = BATCH, SEQ_LEN
    gx0 = jnp.dot(x_flat, wih0, preferred_element_type=jnp.float32) + b0
    for t in range(T):                                 # static, fully unrolled
        # ---- layer 0, step t ----
        g0 = gx0[t * B:(t + 1) * B, :] + jnp.dot(
            h0, whh0, preferred_element_type=jnp.float32)
        h0, c0 = _cell(g0, c0)
        # ---- layer 1 input projection (depends only on h0[t], off-chain) ----
        p1 = jnp.dot(h0, wih1, preferred_element_type=jnp.float32) + b1
        # ---- layer 1, step t ----
        g1 = p1 + jnp.dot(h1, whh1, preferred_element_type=jnp.float32)
        h1, c1 = _cell(g1, c1)
        out_ref[t * B:(t + 1) * B, :] = h1             # static-offset VMEM store
    return h0, c0, h1, c1


# --------------------------------------------------------------------------
# Fused forward kernel (time-major flat activations: row t*B + b)
# --------------------------------------------------------------------------
def _fused_kernel(x_ref, lstm_ref, attn_ref, o_ref, ys_ref):
    B, T, NH, hd = BATCH, SEQ_LEN, NUM_HEADS, HD

    # ---- carve weight slabs (static, 8-sublane-aligned slices) ----
    e0_wih = lstm_ref[_E0:_E0 + INPUT_SIZE, :]
    e0_whh = lstm_ref[_E0 + 16:_E0 + 48, :]
    e0_b = lstm_ref[_E0 + 48:_E0 + 49, :]
    e1_wih = lstm_ref[_E1:_E1 + H, :]
    e1_whh = lstm_ref[_E1 + 32:_E1 + 64, :]
    e1_b = lstm_ref[_E1 + 64:_E1 + 65, :]
    d0_wih = lstm_ref[_D0:_D0 + H, :]
    d0_whh = lstm_ref[_D0 + 32:_D0 + 64, :]
    d0_b = lstm_ref[_D0 + 64:_D0 + 65, :]
    d1_wih = lstm_ref[_D1:_D1 + H, :]
    d1_whh = lstm_ref[_D1 + 32:_D1 + 64, :]
    d1_b = lstm_ref[_D1 + 64:_D1 + 65, :]

    wqkvo = attn_ref[_A_W:_A_W + H, :]        # (32, 128) = [wq|wk|wv|wo]
    bqkvo = attn_ref[_A_B:_A_B + 1, :]        # (1, 128)  = [bq|bk|bv|bo]
    wout = attn_ref[_A_WOUT:_A_WOUT + H, :]   # (32, 128), lanes 0:16 valid
    bout = attn_ref[_A_BOUT:_A_BOUT + 1, :]   # (1, 128),  lanes 0:16 valid

    zeros_bh = jnp.zeros((B, H), jnp.float32)

    # ---------------- encoder LSTM stack (wavefront) ----------------
    x_flat = x_ref[...]                                            # (T*B, Din)
    h0e, c0e, h1e, c1e = _lstm_stack2(
        x_flat, e0_wih, e0_whh, e0_b, e1_wih, e1_whh, e1_b,
        zeros_bh, zeros_bh, zeros_bh, zeros_bh, ys_ref)

    # ---------------- batch-fused multi-head self-attention ----------------
    enc = ys_ref[...]                                              # (T*B, H)
    qkv = jnp.dot(enc, wqkvo, preferred_element_type=jnp.float32) + bqkvo
    q = qkv[:, 0:H]
    k = qkv[:, H:2 * H]
    v = qkv[:, 2 * H:3 * H]

    # Additive block mask: rows i and j belong to the same batch element iff
    # (i % B) == (j % B) in the time-major flat layout.  B is a power of two,
    # so use a bitwise AND (no integer division on the VPU).
    ri = lax.broadcasted_iota(jnp.int32, (T * B, T * B), 0)
    ci = lax.broadcasted_iota(jnp.int32, (T * B, T * B), 1)
    same_b = (ri & (B - 1)) == (ci & (B - 1))
    blk = jnp.where(same_b, jnp.float32(0.0), jnp.float32(-1e30))

    lane = lax.broadcasted_iota(jnp.int32, (1, H), 1)              # hoisted
    scale = 1.0 / float(hd) ** 0.5

    ctx = jnp.zeros((T * B, H), jnp.float32)
    for hh in range(NH):
        lo = hh * hd
        m = ((lane >= lo) & (lane < lo + hd)).astype(jnp.float32)  # (1, H)
        # Q is masked before the contraction (K unmasked) -> per-head scores.
        s = jnp.einsum('qd,kd->qk', q * (scale * m), k,
                       preferred_element_type=jnp.float32)         # (TB, TB)
        s = s + blk
        s = s - jnp.max(s, axis=-1, keepdims=True)
        p = jnp.exp(s)
        p = p * pl.reciprocal(jnp.sum(p, axis=-1, keepdims=True), approx=True)
        ctx = ctx + jnp.dot(p, v * m, preferred_element_type=jnp.float32)

    att = (jnp.dot(ctx, wqkvo[:, 3 * H:4 * H],
                   preferred_element_type=jnp.float32)
           + bqkvo[:, 3 * H:4 * H])                                # (T*B, H)

    # ------------- decoder LSTM stack (seeded with encoder final states) ----
    _lstm_stack2(att, d0_wih, d0_whh, d0_b, d1_wih, d1_whh, d1_b,
                 h0e, c0e, h1e, c1e, ys_ref)

    # ---------------- output linear ----------------
    dec = ys_ref[...]                                              # (T*B, H)
    out_full = jnp.dot(dec, wout, preferred_element_type=jnp.float32) + bout
    o_ref[...] = out_full[:, 0:INPUT_SIZE]


def lstm_autoencoder_forward(x, lstm_slab, attn_slab):
    B, T, D = x.shape
    # Batch-first -> time-major flat (row t*B + b) for the fused kernel.
    x_tm = jnp.transpose(x, (1, 0, 2)).reshape(T * B, D)

    out_tm = pl.pallas_call(
        _fused_kernel,
        out_shape=jax.ShapeDtypeStruct((T * B, D), jnp.float32),
        in_specs=[_VMEM, _VMEM, _VMEM],
        out_specs=_VMEM,
        scratch_shapes=[pltpu.VMEM((T * B, HIDDEN_SIZE), jnp.float32)],
    )(x_tm, lstm_slab, attn_slab)

    return jnp.transpose(out_tm.reshape(T, B, D), (1, 0, 2))       # (B, T, D)


# --------------------------------------------------------------------------
# Deterministic parameter init (shapes follow the nn.Module __init__)
# --------------------------------------------------------------------------
def init_params(key):
    keys = iter(jax.random.split(key, 64))
    Hh, D = HIDDEN_SIZE, INPUT_SIZE
    kH = 1.0 / (Hh ** 0.5)

    def u(shape):
        return jax.random.uniform(next(keys), shape, jnp.float32, -kH, kH)

    enc, dec = [], []
    for l in range(NUM_LAYERS):
        din = D if l == 0 else Hh
        enc.append((u((din, 4 * Hh)), u((Hh, 4 * Hh)), u((1, 4 * Hh))))  # b = b_ih + b_hh
    for l in range(NUM_LAYERS):
        dec.append((u((Hh, 4 * Hh)), u((Hh, 4 * Hh)), u((1, 4 * Hh))))
    attn = dict(wq_T=u((Hh, Hh)), wk_T=u((Hh, Hh)), wv_T=u((Hh, Hh)),
                bq=u((1, Hh)), bk=u((1, Hh)), bv=u((1, Hh)),
                wo_T=u((Hh, Hh)), bo=u((1, Hh)))
    out = (u((Hh, D)), u((1, D)))
    return dict(enc=enc, dec=dec, attn=attn, out=out)


def pack_params(params):
    """Pack the 22 parameter tensors into two contiguous f32 slabs (once,
    outside jit), and pre-scale the i/f/o gate columns by 0.5 so the kernel
    needs a single full-width tanh per LSTM step."""
    col = jnp.arange(G)
    gate_scale = jnp.where((col >= 2 * H) & (col < 3 * H),
                           jnp.float32(1.0), jnp.float32(0.5))[None, :]

    def pad_rows(a, rows):
        return jnp.concatenate(
            [a, jnp.zeros((rows - a.shape[0], a.shape[1]), jnp.float32)], axis=0)

    lstm_rows = []
    for (wih_T, whh_T, b) in params['enc'] + params['dec']:
        lstm_rows.append(wih_T * gate_scale)
        lstm_rows.append(whh_T * gate_scale)
        lstm_rows.append(pad_rows(b * gate_scale, 8))
    lstm_slab = jnp.concatenate(lstm_rows, axis=0)
    assert lstm_slab.shape == (_LSTM_ROWS, G)

    a = params['attn']
    w_row = jnp.concatenate([a['wq_T'], a['wk_T'], a['wv_T'], a['wo_T']], axis=1)
    b_row = pad_rows(jnp.concatenate([a['bq'], a['bk'], a['bv'], a['bo']], axis=1), 8)
    wout_T, bout = params['out']
    pad_l = G - INPUT_SIZE
    wout_p = jnp.concatenate([wout_T, jnp.zeros((H, pad_l), jnp.float32)], axis=1)
    bout_p = pad_rows(
        jnp.concatenate([bout, jnp.zeros((1, pad_l), jnp.float32)], axis=1), 8)
    attn_slab = jnp.concatenate([w_row, b_row, wout_p, bout_p], axis=0)
    assert attn_slab.shape == (_ATTN_ROWS, G)
    return lstm_slab, attn_slab


# --------------------------------------------------------------------------
# Pure-JAX reference (same math, unpacked/unscaled weights) for correctness
# --------------------------------------------------------------------------
def _ref_lstm_stack(x_bf, layers, h0s, c0s):
    B, T, _ = x_bf.shape
    inp = x_bf
    h_fin, c_fin = [], []
    for l, (wih_T, whh_T, b) in enumerate(layers):
        Hh = whh_T.shape[0]
        h, c = h0s[l], c0s[l]
        ys = []
        for t in range(T):
            gates = inp[:, t, :] @ wih_T + h @ whh_T + b
            i = jax.nn.sigmoid(gates[:, :Hh])
            f = jax.nn.sigmoid(gates[:, Hh:2 * Hh])
            g = jnp.tanh(gates[:, 2 * Hh:3 * Hh])
            o = jax.nn.sigmoid(gates[:, 3 * Hh:])
            c = f * c + i * g
            h = o * jnp.tanh(c)
            ys.append(h)
        inp = jnp.stack(ys, axis=1)
        h_fin.append(h)
        c_fin.append(c)
    return inp, h_fin, c_fin


def _ref_mha(x_bf, a):
    B, T, E = x_bf.shape
    hd = E // NUM_HEADS
    q = x_bf @ a['wq_T'] + a['bq']
    k = x_bf @ a['wk_T'] + a['bk']
    v = x_bf @ a['wv_T'] + a['bv']
    out = jnp.zeros((B, T, E), jnp.float32)
    for h in range(NUM_HEADS):
        lo, hi = h * hd, (h + 1) * hd
        s = jnp.einsum('bqd,bkd->bqk', q[:, :, lo:hi] / (hd ** 0.5), k[:, :, lo:hi])
        p = jax.nn.softmax(s, axis=-1)
        ctx = jnp.einsum('bqk,bkd->bqd', p, v[:, :, lo:hi])
        out = out + jnp.einsum('bqd,de->bqe', ctx, a['wo_T'][lo:hi, :])
    return out + a['bo']


def reference_forward(x, params):
    B = x.shape[0]
    zeros = [jnp.zeros((B, HIDDEN_SIZE), jnp.float32)] * NUM_LAYERS
    enc, h_fin, c_fin = _ref_lstm_stack(x, params['enc'], zeros, zeros)
    att = _ref_mha(enc, params['attn'])
    dec, _, _ = _ref_lstm_stack(att, params['dec'], h_fin, c_fin)
    w_T, b = params['out']
    return dec @ w_T + b


if __name__ == "__main__":
    key = jax.random.PRNGKey(0)
    kx, kp = jax.random.split(key)
    x = jax.random.normal(kx, (BATCH, SEQ_LEN, INPUT_SIZE), jnp.float32)
    params = init_params(kp)
    lstm_slab, attn_slab = pack_params(params)      # packed once, outside jit

    fwd = jax.jit(lstm_autoencoder_forward)
    out = jax.block_until_ready(fwd(x, lstm_slab, attn_slab))

    assert out.shape == (BATCH, SEQ_LEN, INPUT_SIZE)
    ref = reference_forward(x, params)
    # Tolerance 2e-3 (vs 1e-3 previously) to accommodate the approximate EUP
    # reciprocal used in the softmax normalization; all other math is f32.
    if not jnp.allclose(out, ref, rtol=2e-3, atol=2e-3):
        raise AssertionError("Pallas output does not match JAX reference")
    print("KERNEL_OK")
</pallas_src>

<mosaic_0001>
module attributes {stable_mosaic.version = 11 : i64} {
  func.func @_fused_kernel(%arg0: memref<16x16xf32, #tpu.memory_space<vmem>>, %arg1: memref<272x128xf32, #tpu.memory_space<vmem>>, %arg2: memref<80x128xf32, #tpu.memory_space<vmem>>, %arg3: memref<16x16xf32, #tpu.memory_space<vmem>>, %arg4: memref<16x32xf32, #tpu.memory_space<vmem>>) attributes {dimension_semantics = [], scalar_prefetch = 0 : i64, scratch_operands = 1 : i64, tpu.core_type = #tpu.core_type<tc>} {
    %c0 = arith.constant 0 : index
    %c0_0 = arith.constant 0 : index
    %0 = vector.load %arg1[%c0, %c0_0] : memref<272x128xf32, #tpu.memory_space<vmem>>, vector<16x128xf32>
    %c16 = arith.constant 16 : index
    %c0_1 = arith.constant 0 : index
    %1 = vector.load %arg1[%c16, %c0_1] : memref<272x128xf32, #tpu.memory_space<vmem>>, vector<32x128xf32>
    %c48 = arith.constant 48 : index
    %c0_2 = arith.constant 0 : index
    %2 = vector.load %arg1[%c48, %c0_2] : memref<272x128xf32, #tpu.memory_space<vmem>>, vector<1x128xf32>
    %c56 = arith.constant 56 : index
    %c0_3 = arith.constant 0 : index
    %3 = vector.load %arg1[%c56, %c0_3] : memref<272x128xf32, #tpu.memory_space<vmem>>, vector<32x128xf32>
    %c88 = arith.constant 88 : index
    %c0_4 = arith.constant 0 : index
    %4 = vector.load %arg1[%c88, %c0_4] : memref<272x128xf32, #tpu.memory_space<vmem>>, vector<32x128xf32>
    %c120 = arith.constant 120 : index
    %c0_5 = arith.constant 0 : index
    %5 = vector.load %arg1[%c120, %c0_5] : memref<272x128xf32, #tpu.memory_space<vmem>>, vector<1x128xf32>
    %c128 = arith.constant 128 : index
    %c0_6 = arith.constant 0 : index
    %6 = vector.load %arg1[%c128, %c0_6] : memref<272x128xf32, #tpu.memory_space<vmem>>, vector<32x128xf32>
    %c160 = arith.constant 160 : index
    %c0_7 = arith.constant 0 : index
    %7 = vector.load %arg1[%c160, %c0_7] : memref<272x128xf32, #tpu.memory_space<vmem>>, vector<32x128xf32>
    %c192 = arith.constant 192 : index
    %c0_8 = arith.constant 0 : index
    %8 = vector.load %arg1[%c192, %c0_8] : memref<272x128xf32, #tpu.memory_space<vmem>>, vector<1x128xf32>
    %c200 = arith.constant 200 : index
    %c0_9 = arith.constant 0 : index
    %9 = vector.load %arg1[%c200, %c0_9] : memref<272x128xf32, #tpu.memory_space<vmem>>, vector<32x128xf32>
    %c232 = arith.constant 232 : index
    %c0_10 = arith.constant 0 : index
    %10 = vector.load %arg1[%c232, %c0_10] : memref<272x128xf32, #tpu.memory_space<vmem>>, vector<32x128xf32>
    %c264 = arith.constant 264 : index
    %c0_11 = arith.constant 0 : index
    %11 = vector.load %arg1[%c264, %c0_11] : memref<272x128xf32, #tpu.memory_space<vmem>>, vector<1x128xf32>
    %c0_12 = arith.constant 0 : index
    %c0_13 = arith.constant 0 : index
    %12 = vector.load %arg2[%c0_12, %c0_13] : memref<80x128xf32, #tpu.memory_space<vmem>>, vector<32x128xf32>
    %c32 = arith.constant 32 : index
    %c0_14 = arith.constant 0 : index
    %13 = vector.load %arg2[%c32, %c0_14] : memref<80x128xf32, #tpu.memory_space<vmem>>, vector<1x128xf32>
    %c40 = arith.constant 40 : index
    %c0_15 = arith.constant 0 : index
    %14 = vector.load %arg2[%c40, %c0_15] : memref<80x128xf32, #tpu.memory_space<vmem>>, vector<32x128xf32>
    %c72 = arith.constant 72 : index
    %c0_16 = arith.constant 0 : index
    %15 = vector.load %arg2[%c72, %c0_16] : memref<80x128xf32, #tpu.memory_space<vmem>>, vector<1x128xf32>
    %cst = arith.constant 0.000000e+00 : f32
    %16 = vector.broadcast %cst : f32 to vector<2x32xf32>
    %c0_17 = arith.constant 0 : index
    %c0_18 = arith.constant 0 : index
    %17 = vector.load %arg0[%c0_17, %c0_18] : memref<16x16xf32, #tpu.memory_space<vmem>>, vector<16x16xf32>
    %cst_19 = arith.constant dense<0.000000e+00> : vector<16x128xf32>
    %18 = tpu.matmul %17, %0, %cst_19 {dimension_numbers = #tpu.dot_dimension_numbers<[1], [0], [0], [1], [0, 0, 1, 1], [], []>} : vector<16x16xf32>, vector<16x128xf32>, vector<16x128xf32> -> vector<16x128xf32>
    %19 = vector.broadcast %2 : vector<1x128xf32> to vector<16x128xf32>
    %20 = arith.addf %18, %19 : vector<16x128xf32>
    %21 = vector.extract_strided_slice %20 {offsets = [0, 0], sizes = [2, 128], strides = [1, 1]} : vector<16x128xf32> to vector<2x128xf32>
    %cst_20 = arith.constant dense<0.000000e+00> : vector<2x128xf32>
    %22 = tpu.matmul %16, %1, %cst_20 {dimension_numbers = #tpu.dot_dimension_numbers<[1], [0], [0], [1], [0, 0, 1, 1], [], []>} : vector<2x32xf32>, vector<32x128xf32>, vector<2x128xf32> -> vector<2x128xf32>
    %23 = arith.addf %21, %22 : vector<2x128xf32>
    %24 = math.tanh %23 : vector<2x128xf32>
    %25 = vector.extract_strided_slice %24 {offsets = [0, 0], sizes = [2, 32], strides = [1, 1]} : vector<2x128xf32> to vector<2x32xf32>
    %cst_21 = arith.constant 5.000000e-01 : f32
    %26 = vector.broadcast %cst_21 : f32 to vector<2x32xf32>
    %27 = arith.mulf %26, %25 : vector<2x32xf32>
    %cst_22 = arith.constant 5.000000e-01 : f32
    %28 = vector.broadcast %cst_22 : f32 to vector<2x32xf32>
    %29 = arith.addf %27, %28 : vector<2x32xf32>
    %30 = vector.extract_strided_slice %24 {offsets = [0, 32], sizes = [2, 32], strides = [1, 1]} : vector<2x128xf32> to vector<2x32xf32>
    %cst_23 = arith.constant 5.000000e-01 : f32
    %31 = vector.broadcast %cst_23 : f32 to vector<2x32xf32>
    %32 = arith.mulf %31, %30 : vector<2x32xf32>
    %cst_24 = arith.constant 5.000000e-01 : f32
    %33 = vector.broadcast %cst_24 : f32 to vector<2x32xf32>
    %34 = arith.addf %32, %33 : vector<2x32xf32>
    %35 = vector.extract_strided_slice %24 {offsets = [0, 64], sizes = [2, 32], strides = [1, 1]} : vector<2x128xf32> to vector<2x32xf32>
    %36 = vector.extract_strided_slice %24 {offsets = [0, 96], sizes = [2, 32], strides = [1, 1]} : vector<2x128xf32> to vector<2x32xf32>
    %cst_25 = arith.constant 5.000000e-01 : f32
    %37 = vector.broadcast %cst_25 : f32 to vector<2x32xf32>
    %38 = arith.mulf %37, %36 : vector<2x32xf32>
    %cst_26 = arith.constant 5.000000e-01 : f32
    %39 = vector.broadcast %cst_26 : f32 to vector<2x32xf32>
    %40 = arith.addf %38, %39 : vector<2x32xf32>
    %41 = arith.mulf %34, %16 : vector<2x32xf32>
    %42 = arith.mulf %29, %35 : vector<2x32xf32>
    %43 = arith.addf %41, %42 : vector<2x32xf32>
    %44 = math.tanh %43 : vector<2x32xf32>
    %45 = arith.mulf %40, %44 : vector<2x32xf32>
    %cst_27 = arith.constant dense<0.000000e+00> : vector<2x128xf32>
    %46 = tpu.matmul %45, %3, %cst_27 {dimension_numbers = #tpu.dot_dimension_numbers<[1], [0], [0], [1], [0, 0, 1, 1], [], []>} : vector<2x32xf32>, vector<32x128xf32>, vector<2x128xf32> -> vector<2x128xf32>
    %47 = vector.broadcast %5 : vector<1x128xf32> to vector<2x128xf32>
    %48 = arith.addf %46, %47 : vector<2x128xf32>
    %cst_28 = arith.constant dense<0.000000e+00> : vector<2x128xf32>
    %49 = tpu.matmul %16, %4, %cst_28 {dimension_numbers = #tpu.dot_dimension_numbers<[1], [0], [0], [1], [0, 0, 1, 1], [], []>} : vector<2x32xf32>, vector<32x128xf32>, vector<2x128xf32> -> vector<2x128xf32>
    %50 = arith.addf %48, %49 : vector<2x128xf32>
    %51 = math.tanh %50 : vector<2x128xf32>
    %52 = vector.extract_strided_slice %51 {offsets = [0, 0], sizes = [2, 32], strides = [1, 1]} : vector<2x128xf32> to vector<2x32xf32>
    %cst_29 = arith.constant 5.000000e-01 : f32
    %53 = vector.broadcast %cst_29 : f32 to vector<2x32xf32>
    %54 = arith.mulf %53, %52 : vector<2x32xf32>
    %cst_30 = arith.constant 5.000000e-01 : f32
    %55 = vector.broadcast %cst_30 : f32 to vector<2x32xf32>
    %56 = arith.addf %54, %55 : vector<2x32xf32>
    %57 = vector.extract_strided_slice %51 {offsets = [0, 32], sizes = [2, 32], strides = [1, 1]} : vector<2x128xf32> to vector<2x32xf32>
    %cst_31 = arith.constant 5.000000e-01 : f32
    %58 = vector.broadcast %cst_31 : f32 to vector<2x32xf32>
    %59 = arith.mulf %58, %57 : vector<2x32xf32>
    %cst_32 = arith.constant 5.000000e-01 : f32
    %60 = vector.broadcast %cst_32 : f32 to vector<2x32xf32>
    %61 = arith.addf %59, %60 : vector<2x32xf32>
    %62 = vector.extract_strided_slice %51 {offsets = [0, 64], sizes = [2, 32], strides = [1, 1]} : vector<2x128xf32> to vector<2x32xf32>
    %63 = vector.extract_strided_slice %51 {offsets = [0, 96], sizes = [2, 32], strides = [1, 1]} : vector<2x128xf32> to vector<2x32xf32>
    %cst_33 = arith.constant 5.000000e-01 : f32
    %64 = vector.broadcast %cst_33 : f32 to vector<2x32xf32>
    %65 = arith.mulf %64, %63 : vector<2x32xf32>
    %cst_34 = arith.constant 5.000000e-01 : f32
    %66 = vector.broadcast %cst_34 : f32 to vector<2x32xf32>
    %67 = arith.addf %65, %66 : vector<2x32xf32>
    %68 = arith.mulf %61, %16 : vector<2x32xf32>
    %69 = arith.mulf %56, %62 : vector<2x32xf32>
    %70 = arith.addf %68, %69 : vector<2x32xf32>
    %71 = math.tanh %70 : vector<2x32xf32>
    %72 = arith.mulf %67, %71 : vector<2x32xf32>
    %c0_35 = arith.constant 0 : index
    %c0_36 = arith.constant 0 : index
    %73 = vector.load %arg4[%c0_35, %c0_36] : memref<16x32xf32, #tpu.memory_space<vmem>>, vector<2x32xf32>
    tpu.vector_store %arg4[%c0_35, %c0_36], %72 {strides = array<i32>} : memref<16x32xf32, #tpu.memory_space<vmem>>, vector<2x32xf32>,
    %74 = vector.extract_strided_slice %20 {offsets = [2, 0], sizes = [2, 128], strides = [1, 1]} : vector<16x128xf32> to vector<2x128xf32>
    %cst_37 = arith.constant dense<0.000000e+00> : vector<2x128xf32>
    %75 = tpu.matmul %45, %1, %cst_37 {dimension_numbers = #tpu.dot_dimension_numbers<[1], [0], [0], [1], [0, 0, 1, 1], [], []>} : vector<2x32xf32>, vector<32x128xf32>, vector<2x128xf32> -> vector<2x128xf32>
    %76 = arith.addf %74, %75 : vector<2x128xf32>
    %77 = math.tanh %76 : vector<2x128xf32>
    %78 = vector.extract_strided_slice %77 {offsets = [0, 0], sizes = [2, 32], strides = [1, 1]} : vector<2x128xf32> to vector<2x32xf32>
    %cst_38 = arith.constant 5.000000e-01 : f32
    %79 = vector.broadcast %cst_38 : f32 to vector<2x32xf32>
    %80 = arith.mulf %79, %78 : vector<2x32xf32>
    %cst_39 = arith.constant 5.000000e-01 : f32
    %81 = vector.broadcast %cst_39 : f32 to vector<2x32xf32>
    %82 = arith.addf %80, %81 : vector<2x32xf32>
    %83 = vector.extract_strided_slice %77 {offsets = [0, 32], sizes = [2, 32], strides = [1, 1]} : vector<2x128xf32> to vector<2x32xf32>
    %cst_40 = arith.constant 5.000000e-01 : f32
    %84 = vector.broadcast %cst_40 : f32 to vector<2x32xf32>
    %85 = arith.mulf %84, %83 : vector<2x32xf32>
    %cst_41 = arith.constant 5.000000e-01 : f32
    %86 = vector.broadcast %cst_41 : f32 to vector<2x32xf32>
    %87 = arith.addf %85, %86 : vector<2x32xf32>
    %88 = vector.extract_strided_slice %77 {offsets = [0, 64], sizes = [2, 32], strides = [1, 1]} : vector<2x128xf32> to vector<2x32xf32>
    %89 = vector.extract_strided_slice %77 {offsets = [0, 96], sizes = [2, 32], strides = [1, 1]} : vector<2x128xf32> to vector<2x32xf32>
    %cst_42 = arith.constant 5.000000e-01 : f32
    %90 = vector.broadcast %cst_42 : f32 to vector<2x32xf32>
    %91 = arith.mulf %90, %89 : vector<2x32xf32>
    %cst_43 = arith.constant 5.000000e-01 : f32
    %92 = vector.broadcast %cst_43 : f32 to vector<2x32xf32>
    %93 = arith.addf %91, %92 : vector<2x32xf32>
    %94 = arith.mulf %87, %43 : vector<2x32xf32>
    %95 = arith.mulf %82, %88 : vector<2x32xf32>
    %96 = arith.addf %94, %95 : vector<2x32xf32>
    %97 = math.tanh %96 : vector<2x32xf32>
    %98 = arith.mulf %93, %97 : vector<2x32xf32>
    %cst_44 = arith.constant dense<0.000000e+00> : vector<2x128xf32>
    %99 = tpu.matmul %98, %3, %cst_44 {dimension_numbers = #tpu.dot_dimension_numbers<[1], [0], [0], [1], [0, 0, 1, 1], [], []>} : vector<2x32xf32>, vector<32x128xf32>, vector<2x128xf32> -> vector<2x128xf32>
    %100 = vector.broadcast %5 : vector<1x128xf32> to vector<2x128xf32>
    %101 = arith.addf %99, %100 : vector<2x128xf32>
    %cst_45 = arith.constant dense<0.000000e+00> : vector<2x128xf32>
    %102 = tpu.matmul %72, %4, %cst_45 {dimension_numbers = #tpu.dot_dimension_numbers<[1], [0], [0], [1], [0, 0, 1, 1], [], []>} : vector<2x32xf32>, vector<32x128xf32>, vector<2x128xf32> -> vector<2x128xf32>
    %103 = arith.addf %101, %102 : vector<2x128xf32>
    %104 = math.tanh %103 : vector<2x128xf32>
    %105 = vector.extract_strided_slice %104 {offsets = [0, 0], sizes = [2, 32], strides = [1, 1]} : vector<2x128xf32> to vector<2x32xf32>
    %cst_46 = arith.constant 5.000000e-01 : f32
    %106 = vector.broadcast %cst_46 : f32 to vector<2x32xf32>
    %107 = arith.mulf %106, %105 : vector<2x32xf32>
    %cst_47 = arith.constant 5.000000e-01 : f32
    %108 = vector.broadcast %cst_47 : f32 to vector<2x32xf32>
    %109 = arith.addf %107, %108 : vector<2x32xf32>
    %110 = vector.extract_strided_slice %104 {offsets = [0, 32], sizes = [2, 32], strides = [1, 1]} : vector<2x128xf32> to vector<2x32xf32>
    %cst_48 = arith.constant 5.000000e-01 : f32
    %111 = vector.broadcast %cst_48 : f32 to vector<2x32xf32>
    %112 = arith.mulf %111, %110 : vector<2x32xf32>
    %cst_49 = arith.constant 5.000000e-01 : f32
    %113 = vector.broadcast %cst_49 : f32 to vector<2x32xf32>
    %114 = arith.addf %112, %113 : vector<2x32xf32>
    %115 = vector.extract_strided_slice %104 {offsets = [0, 64], sizes = [2, 32], strides = [1, 1]} : vector<2x128xf32> to vector<2x32xf32>
    %116 = vector.extract_strided_slice %104 {offsets = [0, 96], sizes = [2, 32], strides = [1, 1]} : vector<2x128xf32> to vector<2x32xf32>
    %cst_50 = arith.constant 5.000000e-01 : f32
    %117 = vector.broadcast %cst_50 : f32 to vector<2x32xf32>
    %118 = arith.mulf %117, %116 : vector<2x32xf32>
    %cst_51 = arith.constant 5.000000e-01 : f32
    %119 = vector.broadcast %cst_51 : f32 to vector<2x32xf32>
    %120 = arith.addf %118, %119 : vector<2x32xf32>
    %121 = arith.mulf %114, %70 : vector<2x32xf32>
    %122 = arith.mulf %109, %115 : vector<2x32xf32>
    %123 = arith.addf %121, %122 : vector<2x32xf32>
    %124 = math.tanh %123 : vector<2x32xf32>
    %125 = arith.mulf %120, %124 : vector<2x32xf32>
    %c2 = arith.constant 2 : index
    %c0_52 = arith.constant 0 : index
    %126 = vector.load %arg4[%c2, %c0_52] : memref<16x32xf32, #tpu.memory_space<vmem>>, vector<2x32xf32>
    tpu.vector_store %arg4[%c2, %c0_52], %125 {strides = array<i32>} : memref<16x32xf32, #tpu.memory_space<vmem>>, vector<2x32xf32>,
    %127 = vector.extract_strided_slice %20 {offsets = [4, 0], sizes = [2, 128], strides = [1, 1]} : vector<16x128xf32> to vector<2x128xf32>
    %cst_53 = arith.constant dense<0.000000e+00> : vector<2x128xf32>
    %128 = tpu.matmul %98, %1, %cst_53 {dimension_numbers = #tpu.dot_dimension_numbers<[1], [0], [0], [1], [0, 0, 1, 1], [], []>} : vector<2x32xf32>, vector<32x128xf32>, vector<2x128xf32> -> vector<2x128xf32>
    %129 = arith.addf %127, %128 : vector<2x128xf32>
    %130 = math.tanh %129 : vector<2x128xf32>
    %131 = vector.extract_strided_slice %130 {offsets = [0, 0], sizes = [2, 32], strides = [1, 1]} : vector<2x128xf32> to vector<2x32xf32>
    %cst_54 = arith.constant 5.000000e-01 : f32
    %132 = vector.broadcast %cst_54 : f32 to vector<2x32xf32>
    %133 = arith.mulf %132, %131 : vector<2x32xf32>
    %cst_55 = arith.constant 5.000000e-01 : f32
    %134 = vector.broadcast %cst_55 : f32 to vector<2x32xf32>
    %135 = arith.addf %133, %134 : vector<2x32xf32>
    %136 = vector.extract_strided_slice %130 {offsets = [0, 32], sizes = [2, 32], strides = [1, 1]} : vector<2x128xf32> to vector<2x32xf32>
    %cst_56 = arith.constant 5.000000e-01 : f32
    %137 = vector.broadcast %cst_56 : f32 to vector<2x32xf32>
    %138 = arith.mulf %137, %136 : vector<2x32xf32>
    %cst_57 = arith.constant 5.000000e-01 : f32
    %139 = vector.broadcast %cst_57 : f32 to vector<2x32xf32>
    %140 = arith.addf %138, %139 : vector<2x32xf32>
    %141 = vector.extract_strided_slice %130 {offsets = [0, 64], sizes = [2, 32], strides = [1, 1]} : vector<2x128xf32> to vector<2x32xf32>
    %142 = vector.extract_strided_slice %130 {offsets = [0, 96], sizes = [2, 32], strides = [1, 1]} : vector<2x128xf32> to vector<2x32xf32>
    %cst_58 = arith.constant 5.000000e-01 : f32
    %143 = vector.broadcast %cst_58 : f32 to vector<2x32xf32>
    %144 = arith.mulf %143, %142 : vector<2x32xf32>
    %cst_59 = arith.constant 5.000000e-01 : f32
    %145 = vector.broadcast %cst_59 : f32 to vector<2x32xf32>
    %146 = arith.addf %144, %145 : vector<2x32xf32>
    %147 = arith.mulf %140, %96 : vector<2x32xf32>
    %148 = arith.mulf %135, %141 : vector<2x32xf32>
    %149 = arith.addf %147, %148 : vector<2x32xf32>
    %150 = math.tanh %149 : vector<2x32xf32>
    %151 = arith.mulf %146, %150 : vector<2x32xf32>
    %cst_60 = arith.constant dense<0.000000e+00> : vector<2x128xf32>
    %152 = tpu.matmul %151, %3, %cst_60 {dimension_numbers = #tpu.dot_dimension_numbers<[1], [0], [0], [1], [0, 0, 1, 1], [], []>} : vector<2x32xf32>, vector<32x128xf32>, vector<2x128xf32> -> vector<2x128xf32>
    %153 = vector.broadcast %5 : vector<1x128xf32> to vector<2x128xf32>
    %154 = arith.addf %152, %153 : vector<2x128xf32>
    %cst_61 = arith.constant dense<0.000000e+00> : vector<2x128xf32>
    %155 = tpu.matmul %125, %4, %cst_61 {dimension_numbers = #tpu.dot_dimension_numbers<[1], [0], [0], [1], [0, 0, 1, 1], [], []>} : vector<2x32xf32>, vector<32x128xf32>, vector<2x128xf32> -> vector<2x128xf32>
    %156 = arith.addf %154, %155 : vector<2x128xf32>
    %157 = math.tanh %156 : vector<2x128xf32>
    %158 = vector.extract_strided_slice %157 {offsets = [0, 0], sizes = [2, 32], strides = [1, 1]} : vector<2x128xf32> to vector<2x32xf32>
    %cst_62 = arith.constant 5.000000e-01 : f32
    %159 = vector.broadcast %cst_62 : f32 to vector<2x32xf32>
    %160 = arith.mulf %159, %158 : vector<2x32xf32>
    %cst_63 = arith.constant 5.000000e-01 : f32
    %161 = vector.broadcast %cst_63 : f32 to vector<2x32xf32>
    %162 = arith.addf %160, %161 : vector<2x32xf32>
    %163 = vector.extract_strided_slice %157 {offsets = [0, 32], sizes = [2, 32], strides = [1, 1]} : vector<2x128xf32> to vector<2x32xf32>
    %cst_64 = arith.constant 5.000000e-01 : f32
    %164 = vector.broadcast %cst_64 : f32 to vector<2x32xf32>
    %165 = arith.mulf %164, %163 : vector<2x32xf32>
    %cst_65 = arith.constant 5.000000e-01 : f32
    %166 = vector.broadcast %cst_65 : f32 to vector<2x32xf32>
    %167 = arith.addf %165, %166 : vector<2x32xf32>
    %168 = vector.extract_strided_slice %157 {offsets = [0, 64], sizes = [2, 32], strides = [1, 1]} : vector<2x128xf32> to vector<2x32xf32>
    %169 = vector.extract_strided_slice %157 {offsets = [0, 96], sizes = [2, 32], strides = [1, 1]} : vector<2x128xf32> to vector<2x32xf32>
    %cst_66 = arith.constant 5.000000e-01 : f32
    %170 = vector.broadcast %cst_66 : f32 to vector<2x32xf32>
    %171 = arith.mulf %170, %169 : vector<2x32xf32>
    %cst_67 = arith.constant 5.000000e-01 : f32
    %172 = vector.broadcast %cst_67 : f32 to vector<2x32xf32>
    %173 = arith.addf %171, %172 : vector<2x32xf32>
    %174 = arith.mulf %167, %123 : vector<2x32xf32>
    %175 = arith.mulf %162, %168 : vector<2x32xf32>
    %176 = arith.addf %174, %175 : vector<2x32xf32>
    %177 = math.tanh %176 : vector<2x32xf32>
    %178 = arith.mulf %173, %177 : vector<2x32xf32>
    %c4 = arith.constant 4 : index
    %c0_68 = arith.constant 0 : index
    %179 = vector.load %arg4[%c4, %c0_68] : memref<16x32xf32, #tpu.memory_space<vmem>>, vector<2x32xf32>
    tpu.vector_store %arg4[%c4, %c0_68], %178 {strides = array<i32>} : memref<16x32xf32, #tpu.memory_space<vmem>>, vector<2x32xf32>,
    %180 = vector.extract_strided_slice %20 {offsets = [6, 0], sizes = [2, 128], strides = [1, 1]} : vector<16x128xf32> to vector<2x128xf32>
    %cst_69 = arith.constant dense<0.000000e+00> : vector<2x128xf32>
    %181 = tpu.matmul %151, %1, %cst_69 {dimension_numbers = #tpu.dot_dimension_numbers<[1], [0], [0], [1], [0, 0, 1, 1], [], []>} : vector<2x32xf32>, vector<32x128xf32>, vector<2x128xf32> -> vector<2x128xf32>
    %182 = arith.addf %180, %181 : vector<2x128xf32>
    %183 = math.tanh %182 : vector<2x128xf32>
    %184 = vector.extract_strided_slice %183 {offsets = [0, 0], sizes = [2, 32], strides = [1, 1]} : vector<2x128xf32> to vector<2x32xf32>
    %cst_70 = arith.constant 5.000000e-01 : f32
    %185 = vector.broadcast %cst_70 : f32 to vector<2x32xf32>
    %186 = arith.mulf %185, %184 : vector<2x32xf32>
    %cst_71 = arith.constant 5.000000e-01 : f32
    %187 = vector.broadcast %cst_71 : f32 to vector<2x32xf32>
    %188 = arith.addf %186, %187 : vector<2x32xf32>
    %189 = vector.extract_strided_slice %183 {offsets = [0, 32], sizes = [2, 32], strides = [1, 1]} : vector<2x128xf32> to vector<2x32xf32>
    %cst_72 = arith.constant 5.000000e-01 : f32
    %190 = vector.broadcast %cst_72 : f32 to vector<2x32xf32>
    %191 = arith.mulf %190, %189 : vector<2x32xf32>
    %cst_73 = arith.constant 5.000000e-01 : f32
    %192 = vector.broadcast %cst_73 : f32 to vector<2x32xf32>
    %193 = arith.addf %191, %192 : vector<2x32xf32>
    %194 = vector.extract_strided_slice %183 {offsets = [0, 64], sizes = [2, 32], strides = [1, 1]} : vector<2x128xf32> to vector<2x32xf32>
    %195 = vector.extract_strided_slice %183 {offsets = [0, 96], sizes = [2, 32], strides = [1, 1]} : vector<2x128xf32> to vector<2x32xf32>
    %cst_74 = arith.constant 5.000000e-01 : f32
    %196 = vector.broadcast %cst_74 : f32 to vector<2x32xf32>
    %197 = arith.mulf %196, %195 : vector<2x32xf32>
    %cst_75 = arith.constant 5.000000e-01 : f32
    %198 = vector.broadcast %cst_75 : f32 to vector<2x32xf32>
    %199 = arith.addf %197, %198 : vector<2x32xf32>
    %200 = arith.mulf %193, %149 : vector<2x32xf32>
    %201 = arith.mulf %188, %194 : vector<2x32xf32>
    %202 = arith.addf %200, %201 : vector<2x32xf32>
    %203 = math.tanh %202 : vector<2x32xf32>
    %204 = arith.mulf %199, %203 : vector<2x32xf32>
    %cst_76 = arith.constant dense<0.000000e+00> : vector<2x128xf32>
    %205 = tpu.matmul %204, %3, %cst_76 {dimension_numbers = #tpu.dot_dimension_numbers<[1], [0], [0], [1], [0, 0, 1, 1], [], []>} : vector<2x32xf32>, vector<32x128xf32>, vector<2x128xf32> -> vector<2x128xf32>
    %206 = vector.broadcast %5 : vector<1x128xf32> to vector<2x128xf32>
    %207 = arith.addf %205, %206 : vector<2x128xf32>
    %cst_77 = arith.constant dense<0.000000e+00> : vector<2x128xf32>
    %208 = tpu.matmul %178, %4, %cst_77 {dimension_numbers = #tpu.dot_dimension_numbers<[1], [0], [0], [1], [0, 0, 1, 1], [], []>} : vector<2x32xf32>, vector<32x128xf32>, vector<2x128xf32> -> vector<2x128xf32>
    %209 = arith.addf %207, %208 : vector<2x128xf32>
    %210 = math.tanh %209 : vector<2x128xf32>
    %211 = vector.extract_strided_slice %210 {offsets = [0, 0], sizes = [2, 32], strides = [1, 1]} : vector<2x128xf32> to vector<2x32xf32>
    %cst_78 = arith.constant 5.000000e-01 : f32
    %212 = vector.broadcast %cst_78 : f32 to vector<2x32xf32>
    %213 = arith.mulf %212, %211 : vector<2x32xf32>
    %cst_79 = arith.constant 5.000000e-01 : f32
    %214 = vector.broadcast %cst_79 : f32 to vector<2x32xf32>
    %215 = arith.addf %213, %214 : vector<2x32xf32>
    %216 = vector.extract_strided_slice %210 {offsets = [0, 32], sizes = [2, 32], strides = [1, 1]} : vector<2x128xf32> to vector<2x32xf32>
    %cst_80 = arith.constant 5.000000e-01 : f32
    %217 = vector.broadcast %cst_80 : f32 to vector<2x32xf32>
    %218 = arith.mulf %217, %216 : vector<2x32xf32>
    %cst_81 = arith.constant 5.000000e-01 : f32
    %219 = vector.broadcast %cst_81 : f32 to vector<2x32xf32>
    %220 = arith.addf %218, %219 : vector<2x32xf32>
    %221 = vector.extract_strided_slice %210 {offsets = [0, 64], sizes = [2, 32], strides = [1, 1]} : vector<2x128xf32> to vector<2x32xf32>
    %222 = vector.extract_strided_slice %210 {offsets = [0, 96], sizes = [2, 32], strides = [1, 1]} : vector<2x128xf32> to vector<2x32xf32>
    %cst_82 = arith.constant 5.000000e-01 : f32
    %223 = vector.broadcast %cst_82 : f32 to vector<2x32xf32>
    %224 = arith.mulf %223, %222 : vector<2x32xf32>
    %cst_83 = arith.constant 5.000000e-01 : f32
    %225 = vector.broadcast %cst_83 : f32 to vector<2x32xf32>
    %226 = arith.addf %224, %225 : vector<2x32xf32>
    %227 = arith.mulf %220, %176 : vector<2x32xf32>
    %228 = arith.mulf %215, %221 : vector<2x32xf32>
    %229 = arith.addf %227, %228 : vector<2x32xf32>
    %230 = math.tanh %229 : vector<2x32xf32>
    %231 = arith.mulf %226, %230 : vector<2x32xf32>
    %c6 = arith.constant 6 : index
    %c0_84 = arith.constant 0 : index
    %232 = vector.load %arg4[%c6, %c0_84] : memref<16x32xf32, #tpu.memory_space<vmem>>, vector<2x32xf32>
    tpu.vector_store %arg4[%c6, %c0_84], %231 {strides = array<i32>} : memref<16x32xf32, #tpu.memory_space<vmem>>, vector<2x32xf32>,
    %233 = vector.extract_strided_slice %20 {offsets = [8, 0], sizes = [2, 128], strides = [1, 1]} : vector<16x128xf32> to vector<2x128xf32>
    %cst_85 = arith.constant dense<0.000000e+00> : vector<2x128xf32>
    %234 = tpu.matmul %204, %1, %cst_85 {dimension_numbers = #tpu.dot_dimension_numbers<[1], [0], [0], [1], [0, 0, 1, 1], [], []>} : vector<2x32xf32>, vector<32x128xf32>, vector<2x128xf32> -> vector<2x128xf32>
    %235 = arith.addf %233, %234 : vector<2x128xf32>
    %236 = math.tanh %235 : vector<2x128xf32>
    %237 = vector.extract_strided_slice %236 {offsets = [0, 0], sizes = [2, 32], strides = [1, 1]} : vector<2x128xf32> to vector<2x32xf32>
    %cst_86 = arith.constant 5.000000e-01 : f32
    %238 = vector.broadcast %cst_86 : f32 to vector<2x32xf32>
    %239 = arith.mulf %238, %237 : vector<2x32xf32>
    %cst_87 = arith.constant 5.000000e-01 : f32
    %240 = vector.broadcast %cst_87 : f32 to vector<2x32xf32>
    %241 = arith.addf %239, %240 : vector<2x32xf32>
    %242 = vector.extract_strided_slice %236 {offsets = [0, 32], sizes = [2, 32], strides = [1, 1]} : vector<2x128xf32> to vector<2x32xf32>
    %cst_88 = arith.constant 5.000000e-01 : f32
    %243 = vector.broadcast %cst_88 : f32 to vector<2x32xf32>
    %244 = arith.mulf %243, %242 : vector<2x32xf32>
    %cst_89 = arith.constant 5.000000e-01 : f32
    %245 = vector.broadcast %cst_89 : f32 to vector<2x32xf32>
    %246 = arith.addf %244, %245 : vector<2x32xf32>
    %247 = vector.extract_strided_slice %236 {offsets = [0, 64], sizes = [2, 32], strides = [1, 1]} : vector<2x128xf32> to vector<2x32xf32>
    %248 = vector.extract_strided_slice %236 {offsets = [0, 96], sizes = [2, 32], strides = [1, 1]} : vector<2x128xf32> to vector<2x32xf32>
    %cst_90 = arith.constant 5.000000e-01 : f32
    %249 = vector.broadcast %cst_90 : f32 to vector<2x32xf32>
    %250 = arith.mulf %249, %248 : vector<2x32xf32>
    %cst_91 = arith.constant 5.000000e-01 : f32
    %251 = vector.broadcast %cst_91 : f32 to vector<2x32xf32>
    %252 = arith.addf %250, %251 : vector<2x32xf32>
    %253 = arith.mulf %246, %202 : vector<2x32xf32>
    %254 = arith.mulf %241, %247 : vector<2x32xf32>
    %255 = arith.addf %253, %254 : vector<2x32xf32>
    %256 = math.tanh %255 : vector<2x32xf32>
    %257 = arith.mulf %252, %256 : vector<2x32xf32>
    %cst_92 = arith.constant dense<0.000000e+00> : vector<2x128xf32>
    %258 = tpu.matmul %257, %3, %cst_92 {dimension_numbers = #tpu.dot_dimension_numbers<[1], [0], [0], [1], [0, 0, 1, 1], [], []>} : vector<2x32xf32>, vector<32x128xf32>, vector<2x128xf32> -> vector<2x128xf32>
    %259 = vector.broadcast %5 : vector<1x128xf32> to vector<2x128xf32>
    %260 = arith.addf %258, %259 : vector<2x128xf32>
    %cst_93 = arith.constant dense<0.000000e+00> : vector<2x128xf32>
    %261 = tpu.matmul %231, %4, %cst_93 {dimension_numbers = #tpu.dot_dimension_numbers<[1], [0], [0], [1], [0, 0, 1, 1], [], []>} : vector<2x32xf32>, vector<32x128xf32>, vector<2x128xf32> -> vector<2x128xf32>
    %262 = arith.addf %260, %261 : vector<2x128xf32>
    %263 = math.tanh %262 : vector<2x128xf32>
    %264 = vector.extract_strided_slice %263 {offsets = [0, 0], sizes = [2, 32], strides = [1, 1]} : vector<2x128xf32> to vector<2x32xf32>
    %cst_94 = arith.constant 5.000000e-01 : f32
    %265 = vector.broadcast %cst_94 : f32 to vector<2x32xf32>
    %266 = arith.mulf %265, %264 : vector<2x32xf32>
    %cst_95 = arith.constant 5.000000e-01 : f32
    %267 = vector.broadcast %cst_95 : f32 to vector<2x32xf32>
    %268 = arith.addf %266, %267 : vector<2x32xf32>
    %269 = vector.extract_strided_slice %263 {offsets = [0, 32], sizes = [2, 32], strides = [1, 1]} : vector<2x128xf32> to vector<2x32xf32>
    %cst_96 = arith.constant 5.000000e-01 : f32
    %270 = vector.broadcast %cst_96 : f32 to vector<2x32xf32>
    %271 = arith.mulf %270, %269 : vector<2x32xf32>
    %cst_97 = arith.constant 5.000000e-01 : f32
    %272 = vector.broadcast %cst_97 : f32 to vector<2x32xf32>
    %273 = arith.addf %271, %272 : vector<2x32xf32>
    %274 = vector.extract_strided_slice %263 {offsets = [0, 64], sizes = [2, 32], strides = [1, 1]} : vector<2x128xf32> to vector<2x32xf32>
    %275 = vector.extract_strided_slice %263 {offsets = [0, 96], sizes = [2, 32], strides = [1, 1]} : vector<2x128xf32> to vector<2x32xf32>
    %cst_98 = arith.constant 5.000000e-01 : f32
    %276 = vector.broadcast %cst_98 : f32 to vector<2x32xf32>
    %277 = arith.mulf %276, %275 : vector<2x32xf32>
    %cst_99 = arith.constant 5.000000e-01 : f32
    %278 = vector.broadcast %cst_99 : f32 to vector<2x32xf32>
    %279 = arith.addf %277, %278 : vector<2x32xf32>
    %280 = arith.mulf %273, %229 : vector<2x32xf32>
    %281 = arith.mulf %268, %274 : vector<2x32xf32>
    %282 = arith.addf %280, %281 : vector<2x32xf32>
    %283 = math.tanh %282 : vector<2x32xf32>
    %284 = arith.mulf %279, %283 : vector<2x32xf32>
    %c8 = arith.constant 8 : index
    %c0_100 = arith.constant 0 : index
    %285 = vector.load %arg4[%c8, %c0_100] : memref<16x32xf32, #tpu.memory_space<vmem>>, vector<2x32xf32>
    tpu.vector_store %arg4[%c8, %c0_100], %284 {strides = array<i32>} : memref<16x32xf32, #tpu.memory_space<vmem>>, vector<2x32xf32>,
    %286 = vector.extract_strided_slice %20 {offsets = [10, 0], sizes = [2, 128], strides = [1, 1]} : vector<16x128xf32> to vector<2x128xf32>
    %cst_101 = arith.constant dense<0.000000e+00> : vector<2x128xf32>
    %287 = tpu.matmul %257, %1, %cst_101 {dimension_numbers = #tpu.dot_dimension_numbers<[1], [0], [0], [1], [0, 0, 1, 1], [], []>} : vector<2x32xf32>, vector<32x128xf32>, vector<2x128xf32> -> vector<2x128xf32>
    %288 = arith.addf %286, %287 : vector<2x128xf32>
    %289 = math.tanh %288 : vector<2x128xf32>
    %290 = vector.extract_strided_slice %289 {offsets = [0, 0], sizes = [2, 32], strides = [1, 1]} : vector<2x128xf32> to vector<2x32xf32>
    %cst_102 = arith.constant 5.000000e-01 : f32
    %291 = vector.broadcast %cst_102 : f32 to vector<2x32xf32>
    %292 = arith.mulf %291, %290 : vector<2x32xf32>
    %cst_103 = arith.constant 5.000000e-01 : f32
    %293 = vector.broadcast %cst_103 : f32 to vector<2x32xf32>
    %294 = arith.addf %292, %293 : vector<2x32xf32>
    %295 = vector.extract_strided_slice %289 {offsets = [0, 32], sizes = [2, 32], strides = [1, 1]} : vector<2x128xf32> to vector<2x32xf32>
    %cst_104 = arith.constant 5.000000e-01 : f32
    %296 = vector.broadcast %cst_104 : f32 to vector<2x32xf32>
    %297 = arith.mulf %296, %295 : vector<2x32xf32>
    %cst_105 = arith.constant 5.000000e-01 : f32
    %298 = vector.broadcast %cst_105 : f32 to vector<2x32xf32>
    %299 = arith.addf %297, %298 : vector<2x32xf32>
    %300 = vector.extract_strided_slice %289 {offsets = [0, 64], sizes = [2, 32], strides = [1, 1]} : vector<2x128xf32> to vector<2x32xf32>
    %301 = vector.extract_strided_slice %289 {offsets = [0, 96], sizes = [2, 32], strides = [1, 1]} : vector<2x128xf32> to vector<2x32xf32>
    %cst_106 = arith.constant 5.000000e-01 : f32
    %302 = vector.broadcast %cst_106 : f32 to vector<2x32xf32>
    %303 = arith.mulf %302, %301 : vector<2x32xf32>
    %cst_107 = arith.constant 5.000000e-01 : f32
    %304 = vector.broadcast %cst_107 : f32 to vector<2x32xf32>
    %305 = arith.addf %303, %304 : vector<2x32xf32>
    %306 = arith.mulf %299, %255 : vector<2x32xf32>
    %307 = arith.mulf %294, %300 : vector<2x32xf32>
    %308 = arith.addf %306, %307 : vector<2x32xf32>
    %309 = math.tanh %308 : vector<2x32xf32>
    %310 = arith.mulf %305, %309 : vector<2x32xf32>
    %cst_108 = arith.constant dense<0.000000e+00> : vector<2x128xf32>
    %311 = tpu.matmul %310, %3, %cst_108 {dimension_numbers = #tpu.dot_dimension_numbers<[1], [0], [0], [1], [0, 0, 1, 1], [], []>} : vector<2x32xf32>, vector<32x128xf32>, vector<2x128xf32> -> vector<2x128xf32>
    %312 = vector.broadcast %5 : vector<1x128xf32> to vector<2x128xf32>
    %313 = arith.addf %311, %312 : vector<2x128xf32>
    %cst_109 = arith.constant dense<0.000000e+00> : vector<2x128xf32>
    %314 = tpu.matmul %284, %4, %cst_109 {dimension_numbers = #tpu.dot_dimension_numbers<[1], [0], [0], [1], [0, 0, 1, 1], [], []>} : vector<2x32xf32>, vector<32x128xf32>, vector<2x128xf32> -> vector<2x128xf32>
    %315 = arith.addf %313, %314 : vector<2x128xf32>
    %316 = math.tanh %315 : vector<2x128xf32>
    %317 = vector.extract_strided_slice %316 {offsets = [0, 0], sizes = [2, 32], strides = [1, 1]} : vector<2x128xf32> to vector<2x32xf32>
    %cst_110 = arith.constant 5.000000e-01 : f32
    %318 = vector.broadcast %cst_110 : f32 to vector<2x32xf32>
    %319 = arith.mulf %318, %317 : vector<2x32xf32>
    %cst_111 = arith.constant 5.000000e-01 : f32
    %320 = vector.broadcast %cst_111 : f32 to vector<2x32xf32>
    %321 = arith.addf %319, %320 : vector<2x32xf32>
    %322 = vector.extract_strided_slice %316 {offsets = [0, 32], sizes = [2, 32], strides = [1, 1]} : vector<2x128xf32> to vector<2x32xf32>
    %cst_112 = arith.constant 5.000000e-01 : f32
    %323 = vector.broadcast %cst_112 : f32 to vector<2x32xf32>
    %324 = arith.mulf %323, %322 : vector<2x32xf32>
    %cst_113 = arith.constant 5.000000e-01 : f32
    %325 = vector.broadcast %cst_113 : f32 to vector<2x32xf32>
    %326 = arith.addf %324, %325 : vector<2x32xf32>
    %327 = vector.extract_strided_slice %316 {offsets = [0, 64], sizes = [2, 32], strides = [1, 1]} : vector<2x128xf32> to vector<2x32xf32>
    %328 = vector.extract_strided_slice %316 {offsets = [0, 96], sizes = [2, 32], strides = [1, 1]} : vector<2x128xf32> to vector<2x32xf32>
    %cst_114 = arith.constant 5.000000e-01 : f32
    %329 = vector.broadcast %cst_114 : f32 to vector<2x32xf32>
    %330 = arith.mulf %329, %328 : vector<2x32xf32>
    %cst_115 = arith.constant 5.000000e-01 : f32
    %331 = vector.broadcast %cst_115 : f32 to vector<2x32xf32>
    %332 = arith.addf %330, %331 : vector<2x32xf32>
    %333 = arith.mulf %326, %282 : vector<2x32xf32>
    %334 = arith.mulf %321, %327 : vector<2x32xf32>
    %335 = arith.addf %333, %334 : vector<2x32xf32>
    %336 = math.tanh %335 : vector<2x32xf32>
    %337 = arith.mulf %332, %336 : vector<2x32xf32>
    %c10 = arith.constant 10 : index
    %c0_116 = arith.constant 0 : index
    %338 = vector.load %arg4[%c10, %c0_116] : memref<16x32xf32, #tpu.memory_space<vmem>>, vector<2x32xf32>
    tpu.vector_store %arg4[%c10, %c0_116], %337 {strides = array<i32>} : memref<16x32xf32, #tpu.memory_space<vmem>>, vector<2x32xf32>,
    %339 = vector.extract_strided_slice %20 {offsets = [12, 0], sizes = [2, 128], strides = [1, 1]} : vector<16x128xf32> to vector<2x128xf32>
    %cst_117 = arith.constant dense<0.000000e+00> : vector<2x128xf32>
    %340 = tpu.matmul %310, %1, %cst_117 {dimension_numbers = #tpu.dot_dimension_numbers<[1], [0], [0], [1], [0, 0, 1, 1], [], []>} : vector<2x32xf32>, vector<32x128xf32>, vector<2x128xf32> -> vector<2x128xf32>
    %341 = arith.addf %339, %340 : vector<2x128xf32>
    %342 = math.tanh %341 : vector<2x128xf32>
    %343 = vector.extract_strided_slice %342 {offsets = [0, 0], sizes = [2, 32], strides = [1, 1]} : vector<2x128xf32> to vector<2x32xf32>
    %cst_118 = arith.constant 5.000000e-01 : f32
    %344 = vector.broadcast %cst_118 : f32 to vector<2x32xf32>
    %345 = arith.mulf %344, %343 : vector<2x32xf32>
    %cst_119 = arith.constant 5.000000e-01 : f32
    %346 = vector.broadcast %cst_119 : f32 to vector<2x32xf32>
    %347 = arith.addf %345, %346 : vector<2x32xf32>
    %348 = vector.extract_strided_slice %342 {offsets = [0, 32], sizes = [2, 32], strides = [1, 1]} : vector<2x128xf32> to vector<2x32xf32>
    %cst_120 = arith.constant 5.000000e-01 : f32
    %349 = vector.broadcast %cst_120 : f32 to vector<2x32xf32>
    %350 = arith.mulf %349, %348 : vector<2x32xf32>
    %cst_121 = arith.constant 5.000000e-01 : f32
    %351 = vector.broadcast %cst_121 : f32 to vector<2x32xf32>
    %352 = arith.addf %350, %351 : vector<2x32xf32>
    %353 = vector.extract_strided_slice %342 {offsets = [0, 64], sizes = [2, 32], strides = [1, 1]} : vector<2x128xf32> to vector<2x32xf32>
    %354 = vector.extract_strided_slice %342 {offsets = [0, 96], sizes = [2, 32], strides = [1, 1]} : vector<2x128xf32> to vector<2x32xf32>
    %cst_122 = arith.constant 5.000000e-01 : f32
    %355 = vector.broadcast %cst_122 : f32 to vector<2x32xf32>
    %356 = arith.mulf %355, %354 : vector<2x32xf32>
    %cst_123 = arith.constant 5.000000e-01 : f32
    %357 = vector.broadcast %cst_123 : f32 to vector<2x32xf32>
    %358 = arith.addf %356, %357 : vector<2x32xf32>
    %359 = arith.mulf %352, %308 : vector<2x32xf32>
    %360 = arith.mulf %347, %353 : vector<2x32xf32>
    %361 = arith.addf %359, %360 : vector<2x32xf32>
    %362 = math.tanh %361 : vector<2x32xf32>
    %363 = arith.mulf %358, %362 : vector<2x32xf32>
    %cst_124 = arith.constant dense<0.000000e+00> : vector<2x128xf32>
    %364 = tpu.matmul %363, %3, %cst_124 {dimension_numbers = #tpu.dot_dimension_numbers<[1], [0], [0], [1], [0, 0, 1, 1], [], []>} : vector<2x32xf32>, vector<32x128xf32>, vector<2x128xf32> -> vector<2x128xf32>
    %365 = vector.broadcast %5 : vector<1x128xf32> to vector<2x128xf32>
    %366 = arith.addf %364, %365 : vector<2x128xf32>
    %cst_125 = arith.constant dense<0.000000e+00> : vector<2x128xf32>
    %367 = tpu.matmul %337, %4, %cst_125 {dimension_numbers = #tpu.dot_dimension_numbers<[1], [0], [0], [1], [0, 0, 1, 1], [], []>} : vector<2x32xf32>, vector<32x128xf32>, vector<2x128xf32> -> vector<2x128xf32>
    %368 = arith.addf %366, %367 : vector<2x128xf32>
    %369 = math.tanh %368 : vector<2x128xf32>
    %370 = vector.extract_strided_slice %369 {offsets = [0, 0], sizes = [2, 32], strides = [1, 1]} : vector<2x128xf32> to vector<2x32xf32>
    %cst_126 = arith.constant 5.000000e-01 : f32
    %371 = vector.broadcast %cst_126 : f32 to vector<2x32xf32>
    %372 = arith.mulf %371, %370 : vector<2x32xf32>
    %cst_127 = arith.constant 5.000000e-01 : f32
    %373 = vector.broadcast %cst_127 : f32 to vector<2x32xf32>
    %374 = arith.addf %372, %373 : vector<2x32xf32>
    %375 = vector.extract_strided_slice %369 {offsets = [0, 32], sizes = [2, 32], strides = [1, 1]} : vector<2x128xf32> to vector<2x32xf32>
    %cst_128 = arith.constant 5.000000e-01 : f32
    %376 = vector.broadcast %cst_128 : f32 to vector<2x32xf32>
    %377 = arith.mulf %376, %375 : vector<2x32xf32>
    %cst_129 = arith.constant 5.000000e-01 : f32
    %378 = vector.broadcast %cst_129 : f32 to vector<2x32xf32>
    %379 = arith.addf %377, %378 : vector<2x32xf32>
    %380 = vector.extract_strided_slice %369 {offsets = [0, 64], sizes = [2, 32], strides = [1, 1]} : vector<2x128xf32> to vector<2x32xf32>
    %381 = vector.extract_strided_slice %369 {offsets = [0, 96], sizes = [2, 32], strides = [1, 1]} : vector<2x128xf32> to vector<2x32xf32>
    %cst_130 = arith.constant 5.000000e-01 : f32
    %382 = vector.broadcast %cst_130 : f32 to vector<2x32xf32>
    %383 = arith.mulf %382, %381 : vector<2x32xf32>
    %cst_131 = arith.constant 5.000000e-01 : f32
    %384 = vector.broadcast %cst_131 : f32 to vector<2x32xf32>
    %385 = arith.addf %383, %384 : vector<2x32xf32>
    %386 = arith.mulf %379, %335 : vector<2x32xf32>
    %387 = arith.mulf %374, %380 : vector<2x32xf32>
    %388 = arith.addf %386, %387 : vector<2x32xf32>
    %389 = math.tanh %388 : vector<2x32xf32>
    %390 = arith.mulf %385, %389 : vector<2x32xf32>
    %c12 = arith.constant 12 : index
    %c0_132 = arith.constant 0 : index
    %391 = vector.load %arg4[%c12, %c0_132] : memref<16x32xf32, #tpu.memory_space<vmem>>, vector<2x32xf32>
    tpu.vector_store %arg4[%c12, %c0_132], %390 {strides = array<i32>} : memref<16x32xf32, #tpu.memory_space<vmem>>, vector<2x32xf32>,
    %392 = vector.extract_strided_slice %20 {offsets = [14, 0], sizes = [2, 128], strides = [1, 1]} : vector<16x128xf32> to vector<2x128xf32>
    %cst_133 = arith.constant dense<0.000000e+00> : vector<2x128xf32>
    %393 = tpu.matmul %363, %1, %cst_133 {dimension_numbers = #tpu.dot_dimension_numbers<[1], [0], [0], [1], [0, 0, 1, 1], [], []>} : vector<2x32xf32>, vector<32x128xf32>, vector<2x128xf32> -> vector<2x128xf32>
    %394 = arith.addf %392, %393 : vector<2x128xf32>
    %395 = math.tanh %394 : vector<2x128xf32>
    %396 = vector.extract_strided_slice %395 {offsets = [0, 0], sizes = [2, 32], strides = [1, 1]} : vector<2x128xf32> to vector<2x32xf32>
    %cst_134 = arith.constant 5.000000e-01 : f32
    %397 = vector.broadcast %cst_134 : f32 to vector<2x32xf32>
    %398 = arith.mulf %397, %396 : vector<2x32xf32>
    %cst_135 = arith.constant 5.000000e-01 : f32
    %399 = vector.broadcast %cst_135 : f32 to vector<2x32xf32>
    %400 = arith.addf %398, %399 : vector<2x32xf32>
    %401 = vector.extract_strided_slice %395 {offsets = [0, 32], sizes = [2, 32], strides = [1, 1]} : vector<2x128xf32> to vector<2x32xf32>
    %cst_136 = arith.constant 5.000000e-01 : f32
    %402 = vector.broadcast %cst_136 : f32 to vector<2x32xf32>
    %403 = arith.mulf %402, %401 : vector<2x32xf32>
    %cst_137 = arith.constant 5.000000e-01 : f32
    %404 = vector.broadcast %cst_137 : f32 to vector<2x32xf32>
    %405 = arith.addf %403, %404 : vector<2x32xf32>
    %406 = vector.extract_strided_slice %395 {offsets = [0, 64], sizes = [2, 32], strides = [1, 1]} : vector<2x128xf32> to vector<2x32xf32>
    %407 = vector.extract_strided_slice %395 {offsets = [0, 96], sizes = [2, 32], strides = [1, 1]} : vector<2x128xf32> to vector<2x32xf32>
    %cst_138 = arith.constant 5.000000e-01 : f32
    %408 = vector.broadcast %cst_138 : f32 to vector<2x32xf32>
    %409 = arith.mulf %408, %407 : vector<2x32xf32>
    %cst_139 = arith.constant 5.000000e-01 : f32
    %410 = vector.broadcast %cst_139 : f32 to vector<2x32xf32>
    %411 = arith.addf %409, %410 : vector<2x32xf32>
    %412 = arith.mulf %405, %361 : vector<2x32xf32>
    %413 = arith.mulf %400, %406 : vector<2x32xf32>
    %414 = arith.addf %412, %413 : vector<2x32xf32>
    %415 = math.tanh %414 : vector<2x32xf32>
    %416 = arith.mulf %411, %415 : vector<2x32xf32>
    %cst_140 = arith.constant dense<0.000000e+00> : vector<2x128xf32>
    %417 = tpu.matmul %416, %3, %cst_140 {dimension_numbers = #tpu.dot_dimension_numbers<[1], [0], [0], [1], [0, 0, 1, 1], [], []>} : vector<2x32xf32>, vector<32x128xf32>, vector<2x128xf32> -> vector<2x128xf32>
    %418 = vector.broadcast %5 : vector<1x128xf32> to vector<2x128xf32>
    %419 = arith.addf %417, %418 : vector<2x128xf32>
    %cst_141 = arith.constant dense<0.000000e+00> : vector<2x128xf32>
    %420 = tpu.matmul %390, %4, %cst_141 {dimension_numbers = #tpu.dot_dimension_numbers<[1], [0], [0], [1], [0, 0, 1, 1], [], []>} : vector<2x32xf32>, vector<32x128xf32>, vector<2x128xf32> -> vector<2x128xf32>
    %421 = arith.addf %419, %420 : vector<2x128xf32>
    %422 = math.tanh %421 : vector<2x128xf32>
    %423 = vector.extract_strided_slice %422 {offsets = [0, 0], sizes = [2, 32], strides = [1, 1]} : vector<2x128xf32> to vector<2x32xf32>
    %cst_142 = arith.constant 5.000000e-01 : f32
    %424 = vector.broadcast %cst_142 : f32 to vector<2x32xf32>
    %425 = arith.mulf %424, %423 : vector<2x32xf32>
    %cst_143 = arith.constant 5.000000e-01 : f32
    %426 = vector.broadcast %cst_143 : f32 to vector<2x32xf32>
    %427 = arith.addf %425, %426 : vector<2x32xf32>
    %428 = vector.extract_strided_slice %422 {offsets = [0, 32], sizes = [2, 32], strides = [1, 1]} : vector<2x128xf32> to vector<2x32xf32>
    %cst_144 = arith.constant 5.000000e-01 : f32
    %429 = vector.broadcast %cst_144 : f32 to vector<2x32xf32>
    %430 = arith.mulf %429, %428 : vector<2x32xf32>
    %cst_145 = arith.constant 5.000000e-01 : f32
    %431 = vector.broadcast %cst_145 : f32 to vector<2x32xf32>
    %432 = arith.addf %430, %431 : vector<2x32xf32>
    %433 = vector.extract_strided_slice %422 {offsets = [0, 64], sizes = [2, 32], strides = [1, 1]} : vector<2x128xf32> to vector<2x32xf32>
    %434 = vector.extract_strided_slice %422 {offsets = [0, 96], sizes = [2, 32], strides = [1, 1]} : vector<2x128xf32> to vector<2x32xf32>
    %cst_146 = arith.constant 5.000000e-01 : f32
    %435 = vector.broadcast %cst_146 : f32 to vector<2x32xf32>
    %436 = arith.mulf %435, %434 : vector<2x32xf32>
    %cst_147 = arith.constant 5.000000e-01 : f32
    %437 = vector.broadcast %cst_147 : f32 to vector<2x32xf32>
    %438 = arith.addf %436, %437 : vector<2x32xf32>
    %439 = arith.mulf %432, %388 : vector<2x32xf32>
    %440 = arith.mulf %427, %433 : vector<2x32xf32>
    %441 = arith.addf %439, %440 : vector<2x32xf32>
    %442 = math.tanh %441 : vector<2x32xf32>
    %443 = arith.mulf %438, %442 : vector<2x32xf32>
    %c14 = arith.constant 14 : index
    %c0_148 = arith.constant 0 : index
    %444 = vector.load %arg4[%c14, %c0_148] : memref<16x32xf32, #tpu.memory_space<vmem>>, vector<2x32xf32>
    tpu.vector_store %arg4[%c14, %c0_148], %443 {strides = array<i32>} : memref<16x32xf32, #tpu.memory_space<vmem>>, vector<2x32xf32>,
    %c0_149 = arith.constant 0 : index
    %c0_150 = arith.constant 0 : index
    %445 = vector.load %arg4[%c0_149, %c0_150] : memref<16x32xf32, #tpu.memory_space<vmem>>, vector<16x32xf32>
    %cst_151 = arith.constant dense<0.000000e+00> : vector<16x128xf32>
    %446 = tpu.matmul %445, %12, %cst_151 {dimension_numbers = #tpu.dot_dimension_numbers<[1], [0], [0], [1], [0, 0, 1, 1], [], []>} : vector<16x32xf32>, vector<32x128xf32>, vector<16x128xf32> -> vector<16x128xf32>
    %447 = vector.broadcast %13 : vector<1x128xf32> to vector<16x128xf32>
    %448 = arith.addf %446, %447 : vector<16x128xf32>
    %449 = vector.extract_strided_slice %448 {offsets = [0, 0], sizes = [16, 32], strides = [1, 1]} : vector<16x128xf32> to vector<16x32xf32>
    %450 = vector.extract_strided_slice %448 {offsets = [0, 32], sizes = [16, 32], strides = [1, 1]} : vector<16x128xf32> to vector<16x32xf32>
    %451 = vector.extract_strided_slice %448 {offsets = [0, 64], sizes = [16, 32], strides = [1, 1]} : vector<16x128xf32> to vector<16x32xf32>
    %452 = tpu.iota {dimensions = array<i32: 0>} : vector<16x16xi32>
    %453 = tpu.iota {dimensions = array<i32: 1>} : vector<16x16xi32>
    %c1_i32 = arith.constant 1 : i32
    %454 = vector.broadcast %c1_i32 : i32 to vector<16x16xi32>
    %455 = arith.andi %452, %454 : vector<16x16xi32>
    %c1_i32_152 = arith.constant 1 : i32
    %456 = vector.broadcast %c1_i32_152 : i32 to vector<16x16xi32>
    %457 = arith.andi %453, %456 : vector<16x16xi32>
    %458 = arith.cmpi eq, %455, %457 : vector<16x16xi32>
    %cst_153 = arith.constant 0.000000e+00 : f32
    %cst_154 = arith.constant -1.000000e+30 : f32
    %459 = vector.broadcast %cst_153 : f32 to vector<16x16xf32>
    %460 = vector.broadcast %cst_154 : f32 to vector<16x16xf32>
    %461 = arith.select %458, %459, %460 : vector<16x16xi1>, vector<16x16xf32>
    %462 = tpu.iota {dimensions = array<i32: 1>} : vector<1x32xi32>
    %cst_155 = arith.constant 0.000000e+00 : f32
    %463 = vector.broadcast %cst_155 : f32 to vector<16x32xf32>
    %c0_i32 = arith.constant 0 : i32
    %464 = vector.broadcast %c0_i32 : i32 to vector<1x32xi32>
    %465 = arith.cmpi sge, %462, %464 : vector<1x32xi32>
    %c4_i32 = arith.constant 4 : i32
    %466 = vector.broadcast %c4_i32 : i32 to vector<1x32xi32>
    %467 = arith.cmpi slt, %462, %466 : vector<1x32xi32>
    %468 = arith.andi %465, %467 : vector<1x32xi1>
    %469 = arith.extui %468 : vector<1x32xi1> to vector<1x32xi32>
    %470 = arith.sitofp %469 : vector<1x32xi32> to vector<1x32xf32>
    %cst_156 = arith.constant 5.000000e-01 : f32
    %471 = vector.broadcast %cst_156 : f32 to vector<1x32xf32>
    %472 = arith.mulf %471, %470 : vector<1x32xf32>
    %473 = vector.broadcast %472 : vector<1x32xf32> to vector<16x32xf32>
    %474 = arith.mulf %449, %473 : vector<16x32xf32>
    "tpu.trace_start"() <{level = 10 : i32, message = "qd,kd->qk"}> : () -> ()
    %cst_157 = arith.constant dense<0.000000e+00> : vector<16x16xf32>
    %475 = tpu.matmul %474, %450, %cst_157 {dimension_numbers = #tpu.dot_dimension_numbers<[1], [1], [0], [0], [0, 0, 1, 0], [], []>} : vector<16x32xf32>, vector<16x32xf32>, vector<16x16xf32> -> vector<16x16xf32>
    "tpu.trace_stop"() : () -> ()
    %476 = arith.addf %475, %461 : vector<16x16xf32>
    %cst_158 = arith.constant dense<0xFF800000> : vector<16xf32>
    %477 = vector.multi_reduction <maximumf>, %476, %cst_158 [1] : vector<16x16xf32> to vector<16xf32>
    %478 = vector.shape_cast %477 : vector<16xf32> to vector<16x1xf32>
    %479 = vector.broadcast %478 : vector<16x1xf32> to vector<16x16xf32>
    %480 = arith.subf %476, %479 : vector<16x16xf32>
    %481 = math.exp %480 : vector<16x16xf32>
    %cst_159 = arith.constant dense<0.000000e+00> : vector<16xf32>
    %482 = vector.multi_reduction <add>, %481, %cst_159 [1] : vector<16x16xf32> to vector<16xf32>
    %483 = vector.shape_cast %482 : vector<16xf32> to vector<16x1xf32>
    %484 = tpu.reciprocal %483 {approx = true} : vector<16x1xf32> -> vector<16x1xf32>
    %485 = vector.broadcast %484 : vector<16x1xf32> to vector<16x16xf32>
    %486 = arith.mulf %481, %485 : vector<16x16xf32>
    %487 = vector.broadcast %470 : vector<1x32xf32> to vector<16x32xf32>
    %488 = arith.mulf %451, %487 : vector<16x32xf32>
    %cst_160 = arith.constant dense<0.000000e+00> : vector<16x32xf32>
    %489 = tpu.matmul %486, %488, %cst_160 {dimension_numbers = #tpu.dot_dimension_numbers<[1], [0], [0], [1], [0, 0, 1, 1], [], []>} : vector<16x16xf32>, vector<16x32xf32>, vector<16x32xf32> -> vector<16x32xf32>
    %490 = arith.addf %463, %489 : vector<16x32xf32>
    %c4_i32_161 = arith.constant 4 : i32
    %491 = vector.broadcast %c4_i32_161 : i32 to vector<1x32xi32>
    %492 = arith.cmpi sge, %462, %491 : vector<1x32xi32>
    %c8_i32 = arith.constant 8 : i32
    %493 = vector.broadcast %c8_i32 : i32 to vector<1x32xi32>
    %494 = arith.cmpi slt, %462, %493 : vector<1x32xi32>
    %495 = arith.andi %492, %494 : vector<1x32xi1>
    %496 = arith.extui %495 : vector<1x32xi1> to vector<1x32xi32>
    %497 = arith.sitofp %496 : vector<1x32xi32> to vector<1x32xf32>
    %cst_162 = arith.constant 5.000000e-01 : f32
    %498 = vector.broadcast %cst_162 : f32 to vector<1x32xf32>
    %499 = arith.mulf %498, %497 : vector<1x32xf32>
    %500 = vector.broadcast %499 : vector<1x32xf32> to vector<16x32xf32>
    %501 = arith.mulf %449, %500 : vector<16x32xf32>
    "tpu.trace_start"() <{level = 10 : i32, message = "qd,kd->qk"}> : () -> ()
    %cst_163 = arith.constant dense<0.000000e+00> : vector<16x16xf32>
    %502 = tpu.matmul %501, %450, %cst_163 {dimension_numbers = #tpu.dot_dimension_numbers<[1], [1], [0], [0], [0, 0, 1, 0], [], []>} : vector<16x32xf32>, vector<16x32xf32>, vector<16x16xf32> -> vector<16x16xf32>
    "tpu.trace_stop"() : () -> ()
    %503 = arith.addf %502, %461 : vector<16x16xf32>
    %cst_164 = arith.constant dense<0xFF800000> : vector<16xf32>
    %504 = vector.multi_reduction <maximumf>, %503, %cst_164 [1] : vector<16x16xf32> to vector<16xf32>
    %505 = vector.shape_cast %504 : vector<16xf32> to vector<16x1xf32>
    %506 = vector.broadcast %505 : vector<16x1xf32> to vector<16x16xf32>
    %507 = arith.subf %503, %506 : vector<16x16xf32>
    %508 = math.exp %507 : vector<16x16xf32>
    %cst_165 = arith.constant dense<0.000000e+00> : vector<16xf32>
    %509 = vector.multi_reduction <add>, %508, %cst_165 [1] : vector<16x16xf32> to vector<16xf32>
    %510 = vector.shape_cast %509 : vector<16xf32> to vector<16x1xf32>
    %511 = tpu.reciprocal %510 {approx = true} : vector<16x1xf32> -> vector<16x1xf32>
    %512 = vector.broadcast %511 : vector<16x1xf32> to vector<16x16xf32>
    %513 = arith.mulf %508, %512 : vector<16x16xf32>
    %514 = vector.broadcast %497 : vector<1x32xf32> to vector<16x32xf32>
    %515 = arith.mulf %451, %514 : vector<16x32xf32>
    %cst_166 = arith.constant dense<0.000000e+00> : vector<16x32xf32>
    %516 = tpu.matmul %513, %515, %cst_166 {dimension_numbers = #tpu.dot_dimension_numbers<[1], [0], [0], [1], [0, 0, 1, 1], [], []>} : vector<16x16xf32>, vector<16x32xf32>, vector<16x32xf32> -> vector<16x32xf32>
    %517 = arith.addf %490, %516 : vector<16x32xf32>
    %c8_i32_167 = arith.constant 8 : i32
    %518 = vector.broadcast %c8_i32_167 : i32 to vector<1x32xi32>
    %519 = arith.cmpi sge, %462, %518 : vector<1x32xi32>
    %c12_i32 = arith.constant 12 : i32
    %520 = vector.broadcast %c12_i32 : i32 to vector<1x32xi32>
    %521 = arith.cmpi slt, %462, %520 : vector<1x32xi32>
    %522 = arith.andi %519, %521 : vector<1x32xi1>
    %523 = arith.extui %522 : vector<1x32xi1> to vector<1x32xi32>
    %524 = arith.sitofp %523 : vector<1x32xi32> to vector<1x32xf32>
    %cst_168 = arith.constant 5.000000e-01 : f32
    %525 = vector.broadcast %cst_168 : f32 to vector<1x32xf32>
    %526 = arith.mulf %525, %524 : vector<1x32xf32>
    %527 = vector.broadcast %526 : vector<1x32xf32> to vector<16x32xf32>
    %528 = arith.mulf %449, %527 : vector<16x32xf32>
    "tpu.trace_start"() <{level = 10 : i32, message = "qd,kd->qk"}> : () -> ()
    %cst_169 = arith.constant dense<0.000000e+00> : vector<16x16xf32>
    %529 = tpu.matmul %528, %450, %cst_169 {dimension_numbers = #tpu.dot_dimension_numbers<[1], [1], [0], [0], [0, 0, 1, 0], [], []>} : vector<16x32xf32>, vector<16x32xf32>, vector<16x16xf32> -> vector<16x16xf32>
    "tpu.trace_stop"() : () -> ()
    %530 = arith.addf %529, %461 : vector<16x16xf32>
    %cst_170 = arith.constant dense<0xFF800000> : vector<16xf32>
    %531 = vector.multi_reduction <maximumf>, %530, %cst_170 [1] : vector<16x16xf32> to vector<16xf32>
    %532 = vector.shape_cast %531 : vector<16xf32> to vector<16x1xf32>
    %533 = vector.broadcast %532 : vector<16x1xf32> to vector<16x16xf32>
    %534 = arith.subf %530, %533 : vector<16x16xf32>
    %535 = math.exp %534 : vector<16x16xf32>
    %cst_171 = arith.constant dense<0.000000e+00> : vector<16xf32>
    %536 = vector.multi_reduction <add>, %535, %cst_171 [1] : vector<16x16xf32> to vector<16xf32>
    %537 = vector.shape_cast %536 : vector<16xf32> to vector<16x1xf32>
    %538 = tpu.reciprocal %537 {approx = true} : vector<16x1xf32> -> vector<16x1xf32>
    %539 = vector.broadcast %538 : vector<16x1xf32> to vector<16x16xf32>
    %540 = arith.mulf %535, %539 : vector<16x16xf32>
    %541 = vector.broadcast %524 : vector<1x32xf32> to vector<16x32xf32>
    %542 = arith.mulf %451, %541 : vector<16x32xf32>
    %cst_172 = arith.constant dense<0.000000e+00> : vector<16x32xf32>
    %543 = tpu.matmul %540, %542, %cst_172 {dimension_numbers = #tpu.dot_dimension_numbers<[1], [0], [0], [1], [0, 0, 1, 1], [], []>} : vector<16x16xf32>, vector<16x32xf32>, vector<16x32xf32> -> vector<16x32xf32>
    %544 = arith.addf %517, %543 : vector<16x32xf32>
    %c12_i32_173 = arith.constant 12 : i32
    %545 = vector.broadcast %c12_i32_173 : i32 to vector<1x32xi32>
    %546 = arith.cmpi sge, %462, %545 : vector<1x32xi32>
    %c16_i32 = arith.constant 16 : i32
    %547 = vector.broadcast %c16_i32 : i32 to vector<1x32xi32>
    %548 = arith.cmpi slt, %462, %547 : vector<1x32xi32>
    %549 = arith.andi %546, %548 : vector<1x32xi1>
    %550 = arith.extui %549 : vector<1x32xi1> to vector<1x32xi32>
    %551 = arith.sitofp %550 : vector<1x32xi32> to vector<1x32xf32>
    %cst_174 = arith.constant 5.000000e-01 : f32
    %552 = vector.broadcast %cst_174 : f32 to vector<1x32xf32>
    %553 = arith.mulf %552, %551 : vector<1x32xf32>
    %554 = vector.broadcast %553 : vector<1x32xf32> to vector<16x32xf32>
    %555 = arith.mulf %449, %554 : vector<16x32xf32>
    "tpu.trace_start"() <{level = 10 : i32, message = "qd,kd->qk"}> : () -> ()
    %cst_175 = arith.constant dense<0.000000e+00> : vector<16x16xf32>
    %556 = tpu.matmul %555, %450, %cst_175 {dimension_numbers = #tpu.dot_dimension_numbers<[1], [1], [0], [0], [0, 0, 1, 0], [], []>} : vector<16x32xf32>, vector<16x32xf32>, vector<16x16xf32> -> vector<16x16xf32>
    "tpu.trace_stop"() : () -> ()
    %557 = arith.addf %556, %461 : vector<16x16xf32>
    %cst_176 = arith.constant dense<0xFF800000> : vector<16xf32>
    %558 = vector.multi_reduction <maximumf>, %557, %cst_176 [1] : vector<16x16xf32> to vector<16xf32>
    %559 = vector.shape_cast %558 : vector<16xf32> to vector<16x1xf32>
    %560 = vector.broadcast %559 : vector<16x1xf32> to vector<16x16xf32>
    %561 = arith.subf %557, %560 : vector<16x16xf32>
    %562 = math.exp %561 : vector<16x16xf32>
    %cst_177 = arith.constant dense<0.000000e+00> : vector<16xf32>
    %563 = vector.multi_reduction <add>, %562, %cst_177 [1] : vector<16x16xf32> to vector<16xf32>
    %564 = vector.shape_cast %563 : vector<16xf32> to vector<16x1xf32>
    %565 = tpu.reciprocal %564 {approx = true} : vector<16x1xf32> -> vector<16x1xf32>
    %566 = vector.broadcast %565 : vector<16x1xf32> to vector<16x16xf32>
    %567 = arith.mulf %562, %566 : vector<16x16xf32>
    %568 = vector.broadcast %551 : vector<1x32xf32> to vector<16x32xf32>
    %569 = arith.mulf %451, %568 : vector<16x32xf32>
    %cst_178 = arith.constant dense<0.000000e+00> : vector<16x32xf32>
    %570 = tpu.matmul %567, %569, %cst_178 {dimension_numbers = #tpu.dot_dimension_numbers<[1], [0], [0], [1], [0, 0, 1, 1], [], []>} : vector<16x16xf32>, vector<16x32xf32>, vector<16x32xf32> -> vector<16x32xf32>
    %571 = arith.addf %544, %570 : vector<16x32xf32>
    %c16_i32_179 = arith.constant 16 : i32
    %572 = vector.broadcast %c16_i32_179 : i32 to vector<1x32xi32>
    %573 = arith.cmpi sge, %462, %572 : vector<1x32xi32>
    %c20_i32 = arith.constant 20 : i32
    %574 = vector.broadcast %c20_i32 : i32 to vector<1x32xi32>
    %575 = arith.cmpi slt, %462, %574 : vector<1x32xi32>
    %576 = arith.andi %573, %575 : vector<1x32xi1>
    %577 = arith.extui %576 : vector<1x32xi1> to vector<1x32xi32>
    %578 = arith.sitofp %577 : vector<1x32xi32> to vector<1x32xf32>
    %cst_180 = arith.constant 5.000000e-01 : f32
    %579 = vector.broadcast %cst_180 : f32 to vector<1x32xf32>
    %580 = arith.mulf %579, %578 : vector<1x32xf32>
    %581 = vector.broadcast %580 : vector<1x32xf32> to vector<16x32xf32>
    %582 = arith.mulf %449, %581 : vector<16x32xf32>
    "tpu.trace_start"() <{level = 10 : i32, message = "qd,kd->qk"}> : () -> ()
    %cst_181 = arith.constant dense<0.000000e+00> : vector<16x16xf32>
    %583 = tpu.matmul %582, %450, %cst_181 {dimension_numbers = #tpu.dot_dimension_numbers<[1], [1], [0], [0], [0, 0, 1, 0], [], []>} : vector<16x32xf32>, vector<16x32xf32>, vector<16x16xf32> -> vector<16x16xf32>
    "tpu.trace_stop"() : () -> ()
    %584 = arith.addf %583, %461 : vector<16x16xf32>
    %cst_182 = arith.constant dense<0xFF800000> : vector<16xf32>
    %585 = vector.multi_reduction <maximumf>, %584, %cst_182 [1] : vector<16x16xf32> to vector<16xf32>
    %586 = vector.shape_cast %585 : vector<16xf32> to vector<16x1xf32>
    %587 = vector.broadcast %586 : vector<16x1xf32> to vector<16x16xf32>
    %588 = arith.subf %584, %587 : vector<16x16xf32>
    %589 = math.exp %588 : vector<16x16xf32>
    %cst_183 = arith.constant dense<0.000000e+00> : vector<16xf32>
    %590 = vector.multi_reduction <add>, %589, %cst_183 [1] : vector<16x16xf32> to vector<16xf32>
    %591 = vector.shape_cast %590 : vector<16xf32> to vector<16x1xf32>
    %592 = tpu.reciprocal %591 {approx = true} : vector<16x1xf32> -> vector<16x1xf32>
    %593 = vector.broadcast %592 : vector<16x1xf32> to vector<16x16xf32>
    %594 = arith.mulf %589, %593 : vector<16x16xf32>
    %595 = vector.broadcast %578 : vector<1x32xf32> to vector<16x32xf32>
    %596 = arith.mulf %451, %595 : vector<16x32xf32>
    %cst_184 = arith.constant dense<0.000000e+00> : vector<16x32xf32>
    %597 = tpu.matmul %594, %596, %cst_184 {dimension_numbers = #tpu.dot_dimension_numbers<[1], [0], [0], [1], [0, 0, 1, 1], [], []>} : vector<16x16xf32>, vector<16x32xf32>, vector<16x32xf32> -> vector<16x32xf32>
    %598 = arith.addf %571, %597 : vector<16x32xf32>
    %c20_i32_185 = arith.constant 20 : i32
    %599 = vector.broadcast %c20_i32_185 : i32 to vector<1x32xi32>
    %600 = arith.cmpi sge, %462, %599 : vector<1x32xi32>
    %c24_i32 = arith.constant 24 : i32
    %601 = vector.broadcast %c24_i32 : i32 to vector<1x32xi32>
    %602 = arith.cmpi slt, %462, %601 : vector<1x32xi32>
    %603 = arith.andi %600, %602 : vector<1x32xi1>
    %604 = arith.extui %603 : vector<1x32xi1> to vector<1x32xi32>
    %605 = arith.sitofp %604 : vector<1x32xi32> to vector<1x32xf32>
    %cst_186 = arith.constant 5.000000e-01 : f32
    %606 = vector.broadcast %cst_186 : f32 to vector<1x32xf32>
    %607 = arith.mulf %606, %605 : vector<1x32xf32>
    %608 = vector.broadcast %607 : vector<1x32xf32> to vector<16x32xf32>
    %609 = arith.mulf %449, %608 : vector<16x32xf32>
    "tpu.trace_start"() <{level = 10 : i32, message = "qd,kd->qk"}> : () -> ()
    %cst_187 = arith.constant dense<0.000000e+00> : vector<16x16xf32>
    %610 = tpu.matmul %609, %450, %cst_187 {dimension_numbers = #tpu.dot_dimension_numbers<[1], [1], [0], [0], [0, 0, 1, 0], [], []>} : vector<16x32xf32>, vector<16x32xf32>, vector<16x16xf32> -> vector<16x16xf32>
    "tpu.trace_stop"() : () -> ()
    %611 = arith.addf %610, %461 : vector<16x16xf32>
    %cst_188 = arith.constant dense<0xFF800000> : vector<16xf32>
    %612 = vector.multi_reduction <maximumf>, %611, %cst_188 [1] : vector<16x16xf32> to vector<16xf32>
    %613 = vector.shape_cast %612 : vector<16xf32> to vector<16x1xf32>
    %614 = vector.broadcast %613 : vector<16x1xf32> to vector<16x16xf32>
    %615 = arith.subf %611, %614 : vector<16x16xf32>
    %616 = math.exp %615 : vector<16x16xf32>
    %cst_189 = arith.constant dense<0.000000e+00> : vector<16xf32>
    %617 = vector.multi_reduction <add>, %616, %cst_189 [1] : vector<16x16xf32> to vector<16xf32>
    %618 = vector.shape_cast %617 : vector<16xf32> to vector<16x1xf32>
    %619 = tpu.reciprocal %618 {approx = true} : vector<16x1xf32> -> vector<16x1xf32>
    %620 = vector.broadcast %619 : vector<16x1xf32> to vector<16x16xf32>
    %621 = arith.mulf %616, %620 : vector<16x16xf32>
    %622 = vector.broadcast %605 : vector<1x32xf32> to vector<16x32xf32>
    %623 = arith.mulf %451, %622 : vector<16x32xf32>
    %cst_190 = arith.constant dense<0.000000e+00> : vector<16x32xf32>
    %624 = tpu.matmul %621, %623, %cst_190 {dimension_numbers = #tpu.dot_dimension_numbers<[1], [0], [0], [1], [0, 0, 1, 1], [], []>} : vector<16x16xf32>, vector<16x32xf32>, vector<16x32xf32> -> vector<16x32xf32>
    %625 = arith.addf %598, %624 : vector<16x32xf32>
    %c24_i32_191 = arith.constant 24 : i32
    %626 = vector.broadcast %c24_i32_191 : i32 to vector<1x32xi32>
    %627 = arith.cmpi sge, %462, %626 : vector<1x32xi32>
    %c28_i32 = arith.constant 28 : i32
    %628 = vector.broadcast %c28_i32 : i32 to vector<1x32xi32>
    %629 = arith.cmpi slt, %462, %628 : vector<1x32xi32>
    %630 = arith.andi %627, %629 : vector<1x32xi1>
    %631 = arith.extui %630 : vector<1x32xi1> to vector<1x32xi32>
    %632 = arith.sitofp %631 : vector<1x32xi32> to vector<1x32xf32>
    %cst_192 = arith.constant 5.000000e-01 : f32
    %633 = vector.broadcast %cst_192 : f32 to vector<1x32xf32>
    %634 = arith.mulf %633, %632 : vector<1x32xf32>
    %635 = vector.broadcast %634 : vector<1x32xf32> to vector<16x32xf32>
    %636 = arith.mulf %449, %635 : vector<16x32xf32>
    "tpu.trace_start"() <{level = 10 : i32, message = "qd,kd->qk"}> : () -> ()
    %cst_193 = arith.constant dense<0.000000e+00> : vector<16x16xf32>
    %637 = tpu.matmul %636, %450, %cst_193 {dimension_numbers = #tpu.dot_dimension_numbers<[1], [1], [0], [0], [0, 0, 1, 0], [], []>} : vector<16x32xf32>, vector<16x32xf32>, vector<16x16xf32> -> vector<16x16xf32>
    "tpu.trace_stop"() : () -> ()
    %638 = arith.addf %637, %461 : vector<16x16xf32>
    %cst_194 = arith.constant dense<0xFF800000> : vector<16xf32>
    %639 = vector.multi_reduction <maximumf>, %638, %cst_194 [1] : vector<16x16xf32> to vector<16xf32>
    %640 = vector.shape_cast %639 : vector<16xf32> to vector<16x1xf32>
    %641 = vector.broadcast %640 : vector<16x1xf32> to vector<16x16xf32>
    %642 = arith.subf %638, %641 : vector<16x16xf32>
    %643 = math.exp %642 : vector<16x16xf32>
    %cst_195 = arith.constant dense<0.000000e+00> : vector<16xf32>
    %644 = vector.multi_reduction <add>, %643, %cst_195 [1] : vector<16x16xf32> to vector<16xf32>
    %645 = vector.shape_cast %644 : vector<16xf32> to vector<16x1xf32>
    %646 = tpu.reciprocal %645 {approx = true} : vector<16x1xf32> -> vector<16x1xf32>
    %647 = vector.broadcast %646 : vector<16x1xf32> to vector<16x16xf32>
    %648 = arith.mulf %643, %647 : vector<16x16xf32>
    %649 = vector.broadcast %632 : vector<1x32xf32> to vector<16x32xf32>
    %650 = arith.mulf %451, %649 : vector<16x32xf32>
    %cst_196 = arith.constant dense<0.000000e+00> : vector<16x32xf32>
    %651 = tpu.matmul %648, %650, %cst_196 {dimension_numbers = #tpu.dot_dimension_numbers<[1], [0], [0], [1], [0, 0, 1, 1], [], []>} : vector<16x16xf32>, vector<16x32xf32>, vector<16x32xf32> -> vector<16x32xf32>
    %652 = arith.addf %625, %651 : vector<16x32xf32>
    %c28_i32_197 = arith.constant 28 : i32
    %653 = vector.broadcast %c28_i32_197 : i32 to vector<1x32xi32>
    %654 = arith.cmpi sge, %462, %653 : vector<1x32xi32>
    %c32_i32 = arith.constant 32 : i32
    %655 = vector.broadcast %c32_i32 : i32 to vector<1x32xi32>
    %656 = arith.cmpi slt, %462, %655 : vector<1x32xi32>
    %657 = arith.andi %654, %656 : vector<1x32xi1>
    %658 = arith.extui %657 : vector<1x32xi1> to vector<1x32xi32>
    %659 = arith.sitofp %658 : vector<1x32xi32> to vector<1x32xf32>
    %cst_198 = arith.constant 5.000000e-01 : f32
    %660 = vector.broadcast %cst_198 : f32 to vector<1x32xf32>
    %661 = arith.mulf %660, %659 : vector<1x32xf32>
    %662 = vector.broadcast %661 : vector<1x32xf32> to vector<16x32xf32>
    %663 = arith.mulf %449, %662 : vector<16x32xf32>
    "tpu.trace_start"() <{level = 10 : i32, message = "qd,kd->qk"}> : () -> ()
    %cst_199 = arith.constant dense<0.000000e+00> : vector<16x16xf32>
    %664 = tpu.matmul %663, %450, %cst_199 {dimension_numbers = #tpu.dot_dimension_numbers<[1], [1], [0], [0], [0, 0, 1, 0], [], []>} : vector<16x32xf32>, vector<16x32xf32>, vector<16x16xf32> -> vector<16x16xf32>
    "tpu.trace_stop"() : () -> ()
    %665 = arith.addf %664, %461 : vector<16x16xf32>
    %cst_200 = arith.constant dense<0xFF800000> : vector<16xf32>
    %666 = vector.multi_reduction <maximumf>, %665, %cst_200 [1] : vector<16x16xf32> to vector<16xf32>
    %667 = vector.shape_cast %666 : vector<16xf32> to vector<16x1xf32>
    %668 = vector.broadcast %667 : vector<16x1xf32> to vector<16x16xf32>
    %669 = arith.subf %665, %668 : vector<16x16xf32>
    %670 = math.exp %669 : vector<16x16xf32>
    %cst_201 = arith.constant dense<0.000000e+00> : vector<16xf32>
    %671 = vector.multi_reduction <add>, %670, %cst_201 [1] : vector<16x16xf32> to vector<16xf32>
    %672 = vector.shape_cast %671 : vector<16xf32> to vector<16x1xf32>
    %673 = tpu.reciprocal %672 {approx = true} : vector<16x1xf32> -> vector<16x1xf32>
    %674 = vector.broadcast %673 : vector<16x1xf32> to vector<16x16xf32>
    %675 = arith.mulf %670, %674 : vector<16x16xf32>
    %676 = vector.broadcast %659 : vector<1x32xf32> to vector<16x32xf32>
    %677 = arith.mulf %451, %676 : vector<16x32xf32>
    %cst_202 = arith.constant dense<0.000000e+00> : vector<16x32xf32>
    %678 = tpu.matmul %675, %677, %cst_202 {dimension_numbers = #tpu.dot_dimension_numbers<[1], [0], [0], [1], [0, 0, 1, 1], [], []>} : vector<16x16xf32>, vector<16x32xf32>, vector<16x32xf32> -> vector<16x32xf32>
    %679 = arith.addf %652, %678 : vector<16x32xf32>
    %680 = vector.extract_strided_slice %12 {offsets = [0, 96], sizes = [32, 32], strides = [1, 1]} : vector<32x128xf32> to vector<32x32xf32>
    %cst_203 = arith.constant dense<0.000000e+00> : vector<16x32xf32>
    %681 = tpu.matmul %679, %680, %cst_203 {dimension_numbers = #tpu.dot_dimension_numbers<[1], [0], [0], [1], [0, 0, 1, 1], [], []>} : vector<16x32xf32>, vector<32x32xf32>, vector<16x32xf32> -> vector<16x32xf32>
    %682 = vector.extract_strided_slice %13 {offsets = [0, 96], sizes = [1, 32], strides = [1, 1]} : vector<1x128xf32> to vector<1x32xf32>
    %683 = vector.broadcast %682 : vector<1x32xf32> to vector<16x32xf32>
    %684 = arith.addf %681, %683 : vector<16x32xf32>
    %cst_204 = arith.constant dense<0.000000e+00> : vector<16x128xf32>
    %685 = tpu.matmul %684, %6, %cst_204 {dimension_numbers = #tpu.dot_dimension_numbers<[1], [0], [0], [1], [0, 0, 1, 1], [], []>} : vector<16x32xf32>, vector<32x128xf32>, vector<16x128xf32> -> vector<16x128xf32>
    %686 = vector.broadcast %8 : vector<1x128xf32> to vector<16x128xf32>
    %687 = arith.addf %685, %686 : vector<16x128xf32>
    %688 = vector.extract_strided_slice %687 {offsets = [0, 0], sizes = [2, 128], strides = [1, 1]} : vector<16x128xf32> to vector<2x128xf32>
    %cst_205 = arith.constant dense<0.000000e+00> : vector<2x128xf32>
    %689 = tpu.matmul %416, %7, %cst_205 {dimension_numbers = #tpu.dot_dimension_numbers<[1], [0], [0], [1], [0, 0, 1, 1], [], []>} : vector<2x32xf32>, vector<32x128xf32>, vector<2x128xf32> -> vector<2x128xf32>
    %690 = arith.addf %688, %689 : vector<2x128xf32>
    %691 = math.tanh %690 : vector<2x128xf32>
    %692 = vector.extract_strided_slice %691 {offsets = [0, 0], sizes = [2, 32], strides = [1, 1]} : vector<2x128xf32> to vector<2x32xf32>
    %cst_206 = arith.constant 5.000000e-01 : f32
    %693 = vector.broadcast %cst_206 : f32 to vector<2x32xf32>
    %694 = arith.mulf %693, %692 : vector<2x32xf32>
    %cst_207 = arith.constant 5.000000e-01 : f32
    %695 = vector.broadcast %cst_207 : f32 to vector<2x32xf32>
    %696 = arith.addf %694, %695 : vector<2x32xf32>
    %697 = vector.extract_strided_slice %691 {offsets = [0, 32], sizes = [2, 32], strides = [1, 1]} : vector<2x128xf32> to vector<2x32xf32>
    %cst_208 = arith.constant 5.000000e-01 : f32
    %698 = vector.broadcast %cst_208 : f32 to vector<2x32xf32>
    %699 = arith.mulf %698, %697 : vector<2x32xf32>
    %cst_209 = arith.constant 5.000000e-01 : f32
    %700 = vector.broadcast %cst_209 : f32 to vector<2x32xf32>
    %701 = arith.addf %699, %700 : vector<2x32xf32>
    %702 = vector.extract_strided_slice %691 {offsets = [0, 64], sizes = [2, 32], strides = [1, 1]} : vector<2x128xf32> to vector<2x32xf32>
    %703 = vector.extract_strided_slice %691 {offsets = [0, 96], sizes = [2, 32], strides = [1, 1]} : vector<2x128xf32> to vector<2x32xf32>
    %cst_210 = arith.constant 5.000000e-01 : f32
    %704 = vector.broadcast %cst_210 : f32 to vector<2x32xf32>
    %705 = arith.mulf %704, %703 : vector<2x32xf32>
    %cst_211 = arith.constant 5.000000e-01 : f32
    %706 = vector.broadcast %cst_211 : f32 to vector<2x32xf32>
    %707 = arith.addf %705, %706 : vector<2x32xf32>
    %708 = arith.mulf %701, %414 : vector<2x32xf32>
    %709 = arith.mulf %696, %702 : vector<2x32xf32>
    %710 = arith.addf %708, %709 : vector<2x32xf32>
    %711 = math.tanh %710 : vector<2x32xf32>
    %712 = arith.mulf %707, %711 : vector<2x32xf32>
    %cst_212 = arith.constant dense<0.000000e+00> : vector<2x128xf32>
    %713 = tpu.matmul %712, %9, %cst_212 {dimension_numbers = #tpu.dot_dimension_numbers<[1], [0], [0], [1], [0, 0, 1, 1], [], []>} : vector<2x32xf32>, vector<32x128xf32>, vector<2x128xf32> -> vector<2x128xf32>
    %714 = vector.broadcast %11 : vector<1x128xf32> to vector<2x128xf32>
    %715 = arith.addf %713, %714 : vector<2x128xf32>
    %cst_213 = arith.constant dense<0.000000e+00> : vector<2x128xf32>
    %716 = tpu.matmul %443, %10, %cst_213 {dimension_numbers = #tpu.dot_dimension_numbers<[1], [0], [0], [1], [0, 0, 1, 1], [], []>} : vector<2x32xf32>, vector<32x128xf32>, vector<2x128xf32> -> vector<2x128xf32>
    %717 = arith.addf %715, %716 : vector<2x128xf32>
    %718 = math.tanh %717 : vector<2x128xf32>
    %719 = vector.extract_strided_slice %718 {offsets = [0, 0], sizes = [2, 32], strides = [1, 1]} : vector<2x128xf32> to vector<2x32xf32>
    %cst_214 = arith.constant 5.000000e-01 : f32
    %720 = vector.broadcast %cst_214 : f32 to vector<2x32xf32>
    %721 = arith.mulf %720, %719 : vector<2x32xf32>
    %cst_215 = arith.constant 5.000000e-01 : f32
    %722 = vector.broadcast %cst_215 : f32 to vector<2x32xf32>
    %723 = arith.addf %721, %722 : vector<2x32xf32>
    %724 = vector.extract_strided_slice %718 {offsets = [0, 32], sizes = [2, 32], strides = [1, 1]} : vector<2x128xf32> to vector<2x32xf32>
    %cst_216 = arith.constant 5.000000e-01 : f32
    %725 = vector.broadcast %cst_216 : f32 to vector<2x32xf32>
    %726 = arith.mulf %725, %724 : vector<2x32xf32>
    %cst_217 = arith.constant 5.000000e-01 : f32
    %727 = vector.broadcast %cst_217 : f32 to vector<2x32xf32>
    %728 = arith.addf %726, %727 : vector<2x32xf32>
    %729 = vector.extract_strided_slice %718 {offsets = [0, 64], sizes = [2, 32], strides = [1, 1]} : vector<2x128xf32> to vector<2x32xf32>
    %730 = vector.extract_strided_slice %718 {offsets = [0, 96], sizes = [2, 32], strides = [1, 1]} : vector<2x128xf32> to vector<2x32xf32>
    %cst_218 = arith.constant 5.000000e-01 : f32
    %731 = vector.broadcast %cst_218 : f32 to vector<2x32xf32>
    %732 = arith.mulf %731, %730 : vector<2x32xf32>
    %cst_219 = arith.constant 5.000000e-01 : f32
    %733 = vector.broadcast %cst_219 : f32 to vector<2x32xf32>
    %734 = arith.addf %732, %733 : vector<2x32xf32>
    %735 = arith.mulf %728, %441 : vector<2x32xf32>
    %736 = arith.mulf %723, %729 : vector<2x32xf32>
    %737 = arith.addf %735, %736 : vector<2x32xf32>
    %738 = math.tanh %737 : vector<2x32xf32>
    %739 = arith.mulf %734, %738 : vector<2x32xf32>
    %c0_220 = arith.constant 0 : index
    %c0_221 = arith.constant 0 : index
    %740 = vector.load %arg4[%c0_220, %c0_221] : memref<16x32xf32, #tpu.memory_space<vmem>>, vector<2x32xf32>
    tpu.vector_store %arg4[%c0_220, %c0_221], %739 {strides = array<i32>} : memref<16x32xf32, #tpu.memory_space<vmem>>, vector<2x32xf32>,
    %741 = vector.extract_strided_slice %687 {offsets = [2, 0], sizes = [2, 128], strides = [1, 1]} : vector<16x128xf32> to vector<2x128xf32>
    %cst_222 = arith.constant dense<0.000000e+00> : vector<2x128xf32>
    %742 = tpu.matmul %712, %7, %cst_222 {dimension_numbers = #tpu.dot_dimension_numbers<[1], [0], [0], [1], [0, 0, 1, 1], [], []>} : vector<2x32xf32>, vector<32x128xf32>, vector<2x128xf32> -> vector<2x128xf32>
    %743 = arith.addf %741, %742 : vector<2x128xf32>
    %744 = math.tanh %743 : vector<2x128xf32>
    %745 = vector.extract_strided_slice %744 {offsets = [0, 0], sizes = [2, 32], strides = [1, 1]} : vector<2x128xf32> to vector<2x32xf32>
    %cst_223 = arith.constant 5.000000e-01 : f32
    %746 = vector.broadcast %cst_223 : f32 to vector<2x32xf32>
    %747 = arith.mulf %746, %745 : vector<2x32xf32>
    %cst_224 = arith.constant 5.000000e-01 : f32
    %748 = vector.broadcast %cst_224 : f32 to vector<2x32xf32>
    %749 = arith.addf %747, %748 : vector<2x32xf32>
    %750 = vector.extract_strided_slice %744 {offsets = [0, 32], sizes = [2, 32], strides = [1, 1]} : vector<2x128xf32> to vector<2x32xf32>
    %cst_225 = arith.constant 5.000000e-01 : f32
    %751 = vector.broadcast %cst_225 : f32 to vector<2x32xf32>
    %752 = arith.mulf %751, %750 : vector<2x32xf32>
    %cst_226 = arith.constant 5.000000e-01 : f32
    %753 = vector.broadcast %cst_226 : f32 to vector<2x32xf32>
    %754 = arith.addf %752, %753 : vector<2x32xf32>
    %755 = vector.extract_strided_slice %744 {offsets = [0, 64], sizes = [2, 32], strides = [1, 1]} : vector<2x128xf32> to vector<2x32xf32>
    %756 = vector.extract_strided_slice %744 {offsets = [0, 96], sizes = [2, 32], strides = [1, 1]} : vector<2x128xf32> to vector<2x32xf32>
    %cst_227 = arith.constant 5.000000e-01 : f32
    %757 = vector.broadcast %cst_227 : f32 to vector<2x32xf32>
    %758 = arith.mulf %757, %756 : vector<2x32xf32>
    %cst_228 = arith.constant 5.000000e-01 : f32
    %759 = vector.broadcast %cst_228 : f32 to vector<2x32xf32>
    %760 = arith.addf %758, %759 : vector<2x32xf32>
    %761 = arith.mulf %754, %710 : vector<2x32xf32>
    %762 = arith.mulf %749, %755 : vector<2x32xf32>
    %763 = arith.addf %761, %762 : vector<2x32xf32>
    %764 = math.tanh %763 : vector<2x32xf32>
    %765 = arith.mulf %760, %764 : vector<2x32xf32>
    %cst_229 = arith.constant dense<0.000000e+00> : vector<2x128xf32>
    %766 = tpu.matmul %765, %9, %cst_229 {dimension_numbers = #tpu.dot_dimension_numbers<[1], [0], [0], [1], [0, 0, 1, 1], [], []>} : vector<2x32xf32>, vector<32x128xf32>, vector<2x128xf32> -> vector<2x128xf32>
    %767 = vector.broadcast %11 : vector<1x128xf32> to vector<2x128xf32>
    %768 = arith.addf %766, %767 : vector<2x128xf32>
    %cst_230 = arith.constant dense<0.000000e+00> : vector<2x128xf32>
    %769 = tpu.matmul %739, %10, %cst_230 {dimension_numbers = #tpu.dot_dimension_numbers<[1], [0], [0], [1], [0, 0, 1, 1], [], []>} : vector<2x32xf32>, vector<32x128xf32>, vector<2x128xf32> -> vector<2x128xf32>
    %770 = arith.addf %768, %769 : vector<2x128xf32>
    %771 = math.tanh %770 : vector<2x128xf32>
    %772 = vector.extract_strided_slice %771 {offsets = [0, 0], sizes = [2, 32], strides = [1, 1]} : vector<2x128xf32> to vector<2x32xf32>
    %cst_231 = arith.constant 5.000000e-01 : f32
    %773 = vector.broadcast %cst_231 : f32 to vector<2x32xf32>
    %774 = arith.mulf %773, %772 : vector<2x32xf32>
    %cst_232 = arith.constant 5.000000e-01 : f32
    %775 = vector.broadcast %cst_232 : f32 to vector<2x32xf32>
    %776 = arith.addf %774, %775 : vector<2x32xf32>
    %777 = vector.extract_strided_slice %771 {offsets = [0, 32], sizes = [2, 32], strides = [1, 1]} : vector<2x128xf32> to vector<2x32xf32>
    %cst_233 = arith.constant 5.000000e-01 : f32
    %778 = vector.broadcast %cst_233 : f32 to vector<2x32xf32>
    %779 = arith.mulf %778, %777 : vector<2x32xf32>
    %cst_234 = arith.constant 5.000000e-01 : f32
    %780 = vector.broadcast %cst_234 : f32 to vector<2x32xf32>
    %781 = arith.addf %779, %780 : vector<2x32xf32>
    %782 = vector.extract_strided_slice %771 {offsets = [0, 64], sizes = [2, 32], strides = [1, 1]} : vector<2x128xf32> to vector<2x32xf32>
    %783 = vector.extract_strided_slice %771 {offsets = [0, 96], sizes = [2, 32], strides = [1, 1]} : vector<2x128xf32> to vector<2x32xf32>
    %cst_235 = arith.constant 5.000000e-01 : f32
    %784 = vector.broadcast %cst_235 : f32 to vector<2x32xf32>
    %785 = arith.mulf %784, %783 : vector<2x32xf32>
    %cst_236 = arith.constant 5.000000e-01 : f32
    %786 = vector.broadcast %cst_236 : f32 to vector<2x32xf32>
    %787 = arith.addf %785, %786 : vector<2x32xf32>
    %788 = arith.mulf %781, %737 : vector<2x32xf32>
    %789 = arith.mulf %776, %782 : vector<2x32xf32>
    %790 = arith.addf %788, %789 : vector<2x32xf32>
    %791 = math.tanh %790 : vector<2x32xf32>
    %792 = arith.mulf %787, %791 : vector<2x32xf32>
    %c2_237 = arith.constant 2 : index
    %c0_238 = arith.constant 0 : index
    %793 = vector.load %arg4[%c2_237, %c0_238] : memref<16x32xf32, #tpu.memory_space<vmem>>, vector<2x32xf32>
    tpu.vector_store %arg4[%c2_237, %c0_238], %792 {strides = array<i32>} : memref<16x32xf32, #tpu.memory_space<vmem>>, vector<2x32xf32>,
    %794 = vector.extract_strided_slice %687 {offsets = [4, 0], sizes = [2, 128], strides = [1, 1]} : vector<16x128xf32> to vector<2x128xf32>
    %cst_239 = arith.constant dense<0.000000e+00> : vector<2x128xf32>
    %795 = tpu.matmul %765, %7, %cst_239 {dimension_numbers = #tpu.dot_dimension_numbers<[1], [0], [0], [1], [0, 0, 1, 1], [], []>} : vector<2x32xf32>, vector<32x128xf32>, vector<2x128xf32> -> vector<2x128xf32>
    %796 = arith.addf %794, %795 : vector<2x128xf32>
    %797 = math.tanh %796 : vector<2x128xf32>
    %798 = vector.extract_strided_slice %797 {offsets = [0, 0], sizes = [2, 32], strides = [1, 1]} : vector<2x128xf32> to vector<2x32xf32>
    %cst_240 = arith.constant 5.000000e-01 : f32
    %799 = vector.broadcast %cst_240 : f32 to vector<2x32xf32>
    %800 = arith.mulf %799, %798 : vector<2x32xf32>
    %cst_241 = arith.constant 5.000000e-01 : f32
    %801 = vector.broadcast %cst_241 : f32 to vector<2x32xf32>
    %802 = arith.addf %800, %801 : vector<2x32xf32>
    %803 = vector.extract_strided_slice %797 {offsets = [0, 32], sizes = [2, 32], strides = [1, 1]} : vector<2x128xf32> to vector<2x32xf32>
    %cst_242 = arith.constant 5.000000e-01 : f32
    %804 = vector.broadcast %cst_242 : f32 to vector<2x32xf32>
    %805 = arith.mulf %804, %803 : vector<2x32xf32>
    %cst_243 = arith.constant 5.000000e-01 : f32
    %806 = vector.broadcast %cst_243 : f32 to vector<2x32xf32>
    %807 = arith.addf %805, %806 : vector<2x32xf32>
    %808 = vector.extract_strided_slice %797 {offsets = [0, 64], sizes = [2, 32], strides = [1, 1]} : vector<2x128xf32> to vector<2x32xf32>
    %809 = vector.extract_strided_slice %797 {offsets = [0, 96], sizes = [2, 32], strides = [1, 1]} : vector<2x128xf32> to vector<2x32xf32>
    %cst_244 = arith.constant 5.000000e-01 : f32
    %810 = vector.broadcast %cst_244 : f32 to vector<2x32xf32>
    %811 = arith.mulf %810, %809 : vector<2x32xf32>
    %cst_245 = arith.constant 5.000000e-01 : f32
    %812 = vector.broadcast %cst_245 : f32 to vector<2x32xf32>
    %813 = arith.addf %811, %812 : vector<2x32xf32>
    %814 = arith.mulf %807, %763 : vector<2x32xf32>
    %815 = arith.mulf %802, %808 : vector<2x32xf32>
    %816 = arith.addf %814, %815 : vector<2x32xf32>
    %817 = math.tanh %816 : vector<2x32xf32>
    %818 = arith.mulf %813, %817 : vector<2x32xf32>
    %cst_246 = arith.constant dense<0.000000e+00> : vector<2x128xf32>
    %819 = tpu.matmul %818, %9, %cst_246 {dimension_numbers = #tpu.dot_dimension_numbers<[1], [0], [0], [1], [0, 0, 1, 1], [], []>} : vector<2x32xf32>, vector<32x128xf32>, vector<2x128xf32> -> vector<2x128xf32>
    %820 = vector.broadcast %11 : vector<1x128xf32> to vector<2x128xf32>
    %821 = arith.addf %819, %820 : vector<2x128xf32>
    %cst_247 = arith.constant dense<0.000000e+00> : vector<2x128xf32>
    %822 = tpu.matmul %792, %10, %cst_247 {dimension_numbers = #tpu.dot_dimension_numbers<[1], [0], [0], [1], [0, 0, 1, 1], [], []>} : vector<2x32xf32>, vector<32x128xf32>, vector<2x128xf32> -> vector<2x128xf32>
    %823 = arith.addf %821, %822 : vector<2x128xf32>
    %824 = math.tanh %823 : vector<2x128xf32>
    %825 = vector.extract_strided_slice %824 {offsets = [0, 0], sizes = [2, 32], strides = [1, 1]} : vector<2x128xf32> to vector<2x32xf32>
    %cst_248 = arith.constant 5.000000e-01 : f32
    %826 = vector.broadcast %cst_248 : f32 to vector<2x32xf32>
    %827 = arith.mulf %826, %825 : vector<2x32xf32>
    %cst_249 = arith.constant 5.000000e-01 : f32
    %828 = vector.broadcast %cst_249 : f32 to vector<2x32xf32>
    %829 = arith.addf %827, %828 : vector<2x32xf32>
    %830 = vector.extract_strided_slice %824 {offsets = [0, 32], sizes = [2, 32], strides = [1, 1]} : vector<2x128xf32> to vector<2x32xf32>
    %cst_250 = arith.constant 5.000000e-01 : f32
    %831 = vector.broadcast %cst_250 : f32 to vector<2x32xf32>
    %832 = arith.mulf %831, %830 : vector<2x32xf32>
    %cst_251 = arith.constant 5.000000e-01 : f32
    %833 = vector.broadcast %cst_251 : f32 to vector<2x32xf32>
    %834 = arith.addf %832, %833 : vector<2x32xf32>
    %835 = vector.extract_strided_slice %824 {offsets = [0, 64], sizes = [2, 32], strides = [1, 1]} : vector<2x128xf32> to vector<2x32xf32>
    %836 = vector.extract_strided_slice %824 {offsets = [0, 96], sizes = [2, 32], strides = [1, 1]} : vector<2x128xf32> to vector<2x32xf32>
    %cst_252 = arith.constant 5.000000e-01 : f32
    %837 = vector.broadcast %cst_252 : f32 to vector<2x32xf32>
    %838 = arith.mulf %837, %836 : vector<2x32xf32>
    %cst_253 = arith.constant 5.000000e-01 : f32
    %839 = vector.broadcast %cst_253 : f32 to vector<2x32xf32>
    %840 = arith.addf %838, %839 : vector<2x32xf32>
    %841 = arith.mulf %834, %790 : vector<2x32xf32>
    %842 = arith.mulf %829, %835 : vector<2x32xf32>
    %843 = arith.addf %841, %842 : vector<2x32xf32>
    %844 = math.tanh %843 : vector<2x32xf32>
    %845 = arith.mulf %840, %844 : vector<2x32xf32>
    %c4_254 = arith.constant 4 : index
    %c0_255 = arith.constant 0 : index
    %846 = vector.load %arg4[%c4_254, %c0_255] : memref<16x32xf32, #tpu.memory_space<vmem>>, vector<2x32xf32>
    tpu.vector_store %arg4[%c4_254, %c0_255], %845 {strides = array<i32>} : memref<16x32xf32, #tpu.memory_space<vmem>>, vector<2x32xf32>,
    %847 = vector.extract_strided_slice %687 {offsets = [6, 0], sizes = [2, 128], strides = [1, 1]} : vector<16x128xf32> to vector<2x128xf32>
    %cst_256 = arith.constant dense<0.000000e+00> : vector<2x128xf32>
    %848 = tpu.matmul %818, %7, %cst_256 {dimension_numbers = #tpu.dot_dimension_numbers<[1], [0], [0], [1], [0, 0, 1, 1], [], []>} : vector<2x32xf32>, vector<32x128xf32>, vector<2x128xf32> -> vector<2x128xf32>
    %849 = arith.addf %847, %848 : vector<2x128xf32>
    %850 = math.tanh %849 : vector<2x128xf32>
    %851 = vector.extract_strided_slice %850 {offsets = [0, 0], sizes = [2, 32], strides = [1, 1]} : vector<2x128xf32> to vector<2x32xf32>
    %cst_257 = arith.constant 5.000000e-01 : f32
    %852 = vector.broadcast %cst_257 : f32 to vector<2x32xf32>
    %853 = arith.mulf %852, %851 : vector<2x32xf32>
    %cst_258 = arith.constant 5.000000e-01 : f32
    %854 = vector.broadcast %cst_258 : f32 to vector<2x32xf32>
    %855 = arith.addf %853, %854 : vector<2x32xf32>
    %856 = vector.extract_strided_slice %850 {offsets = [0, 32], sizes = [2, 32], strides = [1, 1]} : vector<2x128xf32> to vector<2x32xf32>
    %cst_259 = arith.constant 5.000000e-01 : f32
    %857 = vector.broadcast %cst_259 : f32 to vector<2x32xf32>
    %858 = arith.mulf %857, %856 : vector<2x32xf32>
    %cst_260 = arith.constant 5.000000e-01 : f32
    %859 = vector.broadcast %cst_260 : f32 to vector<2x32xf32>
    %860 = arith.addf %858, %859 : vector<2x32xf32>
    %861 = vector.extract_strided_slice %850 {offsets = [0, 64], sizes = [2, 32], strides = [1, 1]} : vector<2x128xf32> to vector<2x32xf32>
    %862 = vector.extract_strided_slice %850 {offsets = [0, 96], sizes = [2, 32], strides = [1, 1]} : vector<2x128xf32> to vector<2x32xf32>
    %cst_261 = arith.constant 5.000000e-01 : f32
    %863 = vector.broadcast %cst_261 : f32 to vector<2x32xf32>
    %864 = arith.mulf %863, %862 : vector<2x32xf32>
    %cst_262 = arith.constant 5.000000e-01 : f32
    %865 = vector.broadcast %cst_262 : f32 to vector<2x32xf32>
    %866 = arith.addf %864, %865 : vector<2x32xf32>
    %867 = arith.mulf %860, %816 : vector<2x32xf32>
    %868 = arith.mulf %855, %861 : vector<2x32xf32>
    %869 = arith.addf %867, %868 : vector<2x32xf32>
    %870 = math.tanh %869 : vector<2x32xf32>
    %871 = arith.mulf %866, %870 : vector<2x32xf32>
    %cst_263 = arith.constant dense<0.000000e+00> : vector<2x128xf32>
    %872 = tpu.matmul %871, %9, %cst_263 {dimension_numbers = #tpu.dot_dimension_numbers<[1], [0], [0], [1], [0, 0, 1, 1], [], []>} : vector<2x32xf32>, vector<32x128xf32>, vector<2x128xf32> -> vector<2x128xf32>
    %873 = vector.broadcast %11 : vector<1x128xf32> to vector<2x128xf32>
    %874 = arith.addf %872, %873 : vector<2x128xf32>
    %cst_264 = arith.constant dense<0.000000e+00> : vector<2x128xf32>
    %875 = tpu.matmul %845, %10, %cst_264 {dimension_numbers = #tpu.dot_dimension_numbers<[1], [0], [0], [1], [0, 0, 1, 1], [], []>} : vector<2x32xf32>, vector<32x128xf32>, vector<2x128xf32> -> vector<2x128xf32>
    %876 = arith.addf %874, %875 : vector<2x128xf32>
    %877 = math.tanh %876 : vector<2x128xf32>
    %878 = vector.extract_strided_slice %877 {offsets = [0, 0], sizes = [2, 32], strides = [1, 1]} : vector<2x128xf32> to vector<2x32xf32>
    %cst_265 = arith.constant 5.000000e-01 : f32
    %879 = vector.broadcast %cst_265 : f32 to vector<2x32xf32>
    %880 = arith.mulf %879, %878 : vector<2x32xf32>
    %cst_266 = arith.constant 5.000000e-01 : f32
    %881 = vector.broadcast %cst_266 : f32 to vector<2x32xf32>
    %882 = arith.addf %880, %881 : vector<2x32xf32>
    %883 = vector.extract_strided_slice %877 {offsets = [0, 32], sizes = [2, 32], strides = [1, 1]} : vector<2x128xf32> to vector<2x32xf32>
    %cst_267 = arith.constant 5.000000e-01 : f32
    %884 = vector.broadcast %cst_267 : f32 to vector<2x32xf32>
    %885 = arith.mulf %884, %883 : vector<2x32xf32>
    %cst_268 = arith.constant 5.000000e-01 : f32
    %886 = vector.broadcast %cst_268 : f32 to vector<2x32xf32>
    %887 = arith.addf %885, %886 : vector<2x32xf32>
    %888 = vector.extract_strided_slice %877 {offsets = [0, 64], sizes = [2, 32], strides = [1, 1]} : vector<2x128xf32> to vector<2x32xf32>
    %889 = vector.extract_strided_slice %877 {offsets = [0, 96], sizes = [2, 32], strides = [1, 1]} : vector<2x128xf32> to vector<2x32xf32>
    %cst_269 = arith.constant 5.000000e-01 : f32
    %890 = vector.broadcast %cst_269 : f32 to vector<2x32xf32>
    %891 = arith.mulf %890, %889 : vector<2x32xf32>
    %cst_270 = arith.constant 5.000000e-01 : f32
    %892 = vector.broadcast %cst_270 : f32 to vector<2x32xf32>
    %893 = arith.addf %891, %892 : vector<2x32xf32>
    %894 = arith.mulf %887, %843 : vector<2x32xf32>
    %895 = arith.mulf %882, %888 : vector<2x32xf32>
    %896 = arith.addf %894, %895 : vector<2x32xf32>
    %897 = math.tanh %896 : vector<2x32xf32>
    %898 = arith.mulf %893, %897 : vector<2x32xf32>
    %c6_271 = arith.constant 6 : index
    %c0_272 = arith.constant 0 : index
    %899 = vector.load %arg4[%c6_271, %c0_272] : memref<16x32xf32, #tpu.memory_space<vmem>>, vector<2x32xf32>
    tpu.vector_store %arg4[%c6_271, %c0_272], %898 {strides = array<i32>} : memref<16x32xf32, #tpu.memory_space<vmem>>, vector<2x32xf32>,
    %900 = vector.extract_strided_slice %687 {offsets = [8, 0], sizes = [2, 128], strides = [1, 1]} : vector<16x128xf32> to vector<2x128xf32>
    %cst_273 = arith.constant dense<0.000000e+00> : vector<2x128xf32>
    %901 = tpu.matmul %871, %7, %cst_273 {dimension_numbers = #tpu.dot_dimension_numbers<[1], [0], [0], [1], [0, 0, 1, 1], [], []>} : vector<2x32xf32>, vector<32x128xf32>, vector<2x128xf32> -> vector<2x128xf32>
    %902 = arith.addf %900, %901 : vector<2x128xf32>
    %903 = math.tanh %902 : vector<2x128xf32>
    %904 = vector.extract_strided_slice %903 {offsets = [0, 0], sizes = [2, 32], strides = [1, 1]} : vector<2x128xf32> to vector<2x32xf32>
    %cst_274 = arith.constant 5.000000e-01 : f32
    %905 = vector.broadcast %cst_274 : f32 to vector<2x32xf32>
    %906 = arith.mulf %905, %904 : vector<2x32xf32>
    %cst_275 = arith.constant 5.000000e-01 : f32
    %907 = vector.broadcast %cst_275 : f32 to vector<2x32xf32>
    %908 = arith.addf %906, %907 : vector<2x32xf32>
    %909 = vector.extract_strided_slice %903 {offsets = [0, 32], sizes = [2, 32], strides = [1, 1]} : vector<2x128xf32> to vector<2x32xf32>
    %cst_276 = arith.constant 5.000000e-01 : f32
    %910 = vector.broadcast %cst_276 : f32 to vector<2x32xf32>
    %911 = arith.mulf %910, %909 : vector<2x32xf32>
    %cst_277 = arith.constant 5.000000e-01 : f32
    %912 = vector.broadcast %cst_277 : f32 to vector<2x32xf32>
    %913 = arith.addf %911, %912 : vector<2x32xf32>
    %914 = vector.extract_strided_slice %903 {offsets = [0, 64], sizes = [2, 32], strides = [1, 1]} : vector<2x128xf32> to vector<2x32xf32>
    %915 = vector.extract_strided_slice %903 {offsets = [0, 96], sizes = [2, 32], strides = [1, 1]} : vector<2x128xf32> to vector<2x32xf32>
    %cst_278 = arith.constant 5.000000e-01 : f32
    %916 = vector.broadcast %cst_278 : f32 to vector<2x32xf32>
    %917 = arith.mulf %916, %915 : vector<2x32xf32>
    %cst_279 = arith.constant 5.000000e-01 : f32
    %918 = vector.broadcast %cst_279 : f32 to vector<2x32xf32>
    %919 = arith.addf %917, %918 : vector<2x32xf32>
    %920 = arith.mulf %913, %869 : vector<2x32xf32>
    %921 = arith.mulf %908, %914 : vector<2x32xf32>
    %922 = arith.addf %920, %921 : vector<2x32xf32>
    %923 = math.tanh %922 : vector<2x32xf32>
    %924 = arith.mulf %919, %923 : vector<2x32xf32>
    %cst_280 = arith.constant dense<0.000000e+00> : vector<2x128xf32>
    %925 = tpu.matmul %924, %9, %cst_280 {dimension_numbers = #tpu.dot_dimension_numbers<[1], [0], [0], [1], [0, 0, 1, 1], [], []>} : vector<2x32xf32>, vector<32x128xf32>, vector<2x128xf32> -> vector<2x128xf32>
    %926 = vector.broadcast %11 : vector<1x128xf32> to vector<2x128xf32>
    %927 = arith.addf %925, %926 : vector<2x128xf32>
    %cst_281 = arith.constant dense<0.000000e+00> : vector<2x128xf32>
    %928 = tpu.matmul %898, %10, %cst_281 {dimension_numbers = #tpu.dot_dimension_numbers<[1], [0], [0], [1], [0, 0, 1, 1], [], []>} : vector<2x32xf32>, vector<32x128xf32>, vector<2x128xf32> -> vector<2x128xf32>
    %929 = arith.addf %927, %928 : vector<2x128xf32>
    %930 = math.tanh %929 : vector<2x128xf32>
    %931 = vector.extract_strided_slice %930 {offsets = [0, 0], sizes = [2, 32], strides = [1, 1]} : vector<2x128xf32> to vector<2x32xf32>
    %cst_282 = arith.constant 5.000000e-01 : f32
    %932 = vector.broadcast %cst_282 : f32 to vector<2x32xf32>
    %933 = arith.mulf %932, %931 : vector<2x32xf32>
    %cst_283 = arith.constant 5.000000e-01 : f32
    %934 = vector.broadcast %cst_283 : f32 to vector<2x32xf32>
    %935 = arith.addf %933, %934 : vector<2x32xf32>
    %936 = vector.extract_strided_slice %930 {offsets = [0, 32], sizes = [2, 32], strides = [1, 1]} : vector<2x128xf32> to vector<2x32xf32>
    %cst_284 = arith.constant 5.000000e-01 : f32
    %937 = vector.broadcast %cst_284 : f32 to vector<2x32xf32>
    %938 = arith.mulf %937, %936 : vector<2x32xf32>
    %cst_285 = arith.constant 5.000000e-01 : f32
    %939 = vector.broadcast %cst_285 : f32 to vector<2x32xf32>
    %940 = arith.addf %938, %939 : vector<2x32xf32>
    %941 = vector.extract_strided_slice %930 {offsets = [0, 64], sizes = [2, 32], strides = [1, 1]} : vector<2x128xf32> to vector<2x32xf32>
    %942 = vector.extract_strided_slice %930 {offsets = [0, 96], sizes = [2, 32], strides = [1, 1]} : vector<2x128xf32> to vector<2x32xf32>
    %cst_286 = arith.constant 5.000000e-01 : f32
    %943 = vector.broadcast %cst_286 : f32 to vector<2x32xf32>
    %944 = arith.mulf %943, %942 : vector<2x32xf32>
    %cst_287 = arith.constant 5.000000e-01 : f32
    %945 = vector.broadcast %cst_287 : f32 to vector<2x32xf32>
    %946 = arith.addf %944, %945 : vector<2x32xf32>
    %947 = arith.mulf %940, %896 : vector<2x32xf32>
    %948 = arith.mulf %935, %941 : vector<2x32xf32>
    %949 = arith.addf %947, %948 : vector<2x32xf32>
    %950 = math.tanh %949 : vector<2x32xf32>
    %951 = arith.mulf %946, %950 : vector<2x32xf32>
    %c8_288 = arith.constant 8 : index
    %c0_289 = arith.constant 0 : index
    %952 = vector.load %arg4[%c8_288, %c0_289] : memref<16x32xf32, #tpu.memory_space<vmem>>, vector<2x32xf32>
    tpu.vector_store %arg4[%c8_288, %c0_289], %951 {strides = array<i32>} : memref<16x32xf32, #tpu.memory_space<vmem>>, vector<2x32xf32>,
    %953 = vector.extract_strided_slice %687 {offsets = [10, 0], sizes = [2, 128], strides = [1, 1]} : vector<16x128xf32> to vector<2x128xf32>
    %cst_290 = arith.constant dense<0.000000e+00> : vector<2x128xf32>
    %954 = tpu.matmul %924, %7, %cst_290 {dimension_numbers = #tpu.dot_dimension_numbers<[1], [0], [0], [1], [0, 0, 1, 1], [], []>} : vector<2x32xf32>, vector<32x128xf32>, vector<2x128xf32> -> vector<2x128xf32>
    %955 = arith.addf %953, %954 : vector<2x128xf32>
    %956 = math.tanh %955 : vector<2x128xf32>
    %957 = vector.extract_strided_slice %956 {offsets = [0, 0], sizes = [2, 32], strides = [1, 1]} : vector<2x128xf32> to vector<2x32xf32>
    %cst_291 = arith.constant 5.000000e-01 : f32
    %958 = vector.broadcast %cst_291 : f32 to vector<2x32xf32>
    %959 = arith.mulf %958, %957 : vector<2x32xf32>
    %cst_292 = arith.constant 5.000000e-01 : f32
    %960 = vector.broadcast %cst_292 : f32 to vector<2x32xf32>
    %961 = arith.addf %959, %960 : vector<2x32xf32>
    %962 = vector.extract_strided_slice %956 {offsets = [0, 32], sizes = [2, 32], strides = [1, 1]} : vector<2x128xf32> to vector<2x32xf32>
    %cst_293 = arith.constant 5.000000e-01 : f32
    %963 = vector.broadcast %cst_293 : f32 to vector<2x32xf32>
    %964 = arith.mulf %963, %962 : vector<2x32xf32>
    %cst_294 = arith.constant 5.000000e-01 : f32
    %965 = vector.broadcast %cst_294 : f32 to vector<2x32xf32>
    %966 = arith.addf %964, %965 : vector<2x32xf32>
    %967 = vector.extract_strided_slice %956 {offsets = [0, 64], sizes = [2, 32], strides = [1, 1]} : vector<2x128xf32> to vector<2x32xf32>
    %968 = vector.extract_strided_slice %956 {offsets = [0, 96], sizes = [2, 32], strides = [1, 1]} : vector<2x128xf32> to vector<2x32xf32>
    %cst_295 = arith.constant 5.000000e-01 : f32
    %969 = vector.broadcast %cst_295 : f32 to vector<2x32xf32>
    %970 = arith.mulf %969, %968 : vector<2x32xf32>
    %cst_296 = arith.constant 5.000000e-01 : f32
    %971 = vector.broadcast %cst_296 : f32 to vector<2x32xf32>
    %972 = arith.addf %970, %971 : vector<2x32xf32>
    %973 = arith.mulf %966, %922 : vector<2x32xf32>
    %974 = arith.mulf %961, %967 : vector<2x32xf32>
    %975 = arith.addf %973, %974 : vector<2x32xf32>
    %976 = math.tanh %975 : vector<2x32xf32>
    %977 = arith.mulf %972, %976 : vector<2x32xf32>
    %cst_297 = arith.constant dense<0.000000e+00> : vector<2x128xf32>
    %978 = tpu.matmul %977, %9, %cst_297 {dimension_numbers = #tpu.dot_dimension_numbers<[1], [0], [0], [1], [0, 0, 1, 1], [], []>} : vector<2x32xf32>, vector<32x128xf32>, vector<2x128xf32> -> vector<2x128xf32>
    %979 = vector.broadcast %11 : vector<1x128xf32> to vector<2x128xf32>
    %980 = arith.addf %978, %979 : vector<2x128xf32>
    %cst_298 = arith.constant dense<0.000000e+00> : vector<2x128xf32>
    %981 = tpu.matmul %951, %10, %cst_298 {dimension_numbers = #tpu.dot_dimension_numbers<[1], [0], [0], [1], [0, 0, 1, 1], [], []>} : vector<2x32xf32>, vector<32x128xf32>, vector<2x128xf32> -> vector<2x128xf32>
    %982 = arith.addf %980, %981 : vector<2x128xf32>
    %983 = math.tanh %982 : vector<2x128xf32>
    %984 = vector.extract_strided_slice %983 {offsets = [0, 0], sizes = [2, 32], strides = [1, 1]} : vector<2x128xf32> to vector<2x32xf32>
    %cst_299 = arith.constant 5.000000e-01 : f32
    %985 = vector.broadcast %cst_299 : f32 to vector<2x32xf32>
    %986 = arith.mulf %985, %984 : vector<2x32xf32>
    %cst_300 = arith.constant 5.000000e-01 : f32
    %987 = vector.broadcast %cst_300 : f32 to vector<2x32xf32>
    %988 = arith.addf %986, %987 : vector<2x32xf32>
    %989 = vector.extract_strided_slice %983 {offsets = [0, 32], sizes = [2, 32], strides = [1, 1]} : vector<2x128xf32> to vector<2x32xf32>
    %cst_301 = arith.constant 5.000000e-01 : f32
    %990 = vector.broadcast %cst_301 : f32 to vector<2x32xf32>
    %991 = arith.mulf %990, %989 : vector<2x32xf32>
    %cst_302 = arith.constant 5.000000e-01 : f32
    %992 = vector.broadcast %cst_302 : f32 to vector<2x32xf32>
    %993 = arith.addf %991, %992 : vector<2x32xf32>
    %994 = vector.extract_strided_slice %983 {offsets = [0, 64], sizes = [2, 32], strides = [1, 1]} : vector<2x128xf32> to vector<2x32xf32>
    %995 = vector.extract_strided_slice %983 {offsets = [0, 96], sizes = [2, 32], strides = [1, 1]} : vector<2x128xf32> to vector<2x32xf32>
    %cst_303 = arith.constant 5.000000e-01 : f32
    %996 = vector.broadcast %cst_303 : f32 to vector<2x32xf32>
    %997 = arith.mulf %996, %995 : vector<2x32xf32>
    %cst_304 = arith.constant 5.000000e-01 : f32
    %998 = vector.broadcast %cst_304 : f32 to vector<2x32xf32>
    %999 = arith.addf %997, %998 : vector<2x32xf32>
    %1000 = arith.mulf %993, %949 : vector<2x32xf32>
    %1001 = arith.mulf %988, %994 : vector<2x32xf32>
    %1002 = arith.addf %1000, %1001 : vector<2x32xf32>
    %1003 = math.tanh %1002 : vector<2x32xf32>
    %1004 = arith.mulf %999, %1003 : vector<2x32xf32>
    %c10_305 = arith.constant 10 : index
    %c0_306 = arith.constant 0 : index
    %1005 = vector.load %arg4[%c10_305, %c0_306] : memref<16x32xf32, #tpu.memory_space<vmem>>, vector<2x32xf32>
    tpu.vector_store %arg4[%c10_305, %c0_306], %1004 {strides = array<i32>} : memref<16x32xf32, #tpu.memory_space<vmem>>, vector<2x32xf32>,
    %1006 = vector.extract_strided_slice %687 {offsets = [12, 0], sizes = [2, 128], strides = [1, 1]} : vector<16x128xf32> to vector<2x128xf32>
    %cst_307 = arith.constant dense<0.000000e+00> : vector<2x128xf32>
    %1007 = tpu.matmul %977, %7, %cst_307 {dimension_numbers = #tpu.dot_dimension_numbers<[1], [0], [0], [1], [0, 0, 1, 1], [], []>} : vector<2x32xf32>, vector<32x128xf32>, vector<2x128xf32> -> vector<2x128xf32>
    %1008 = arith.addf %1006, %1007 : vector<2x128xf32>
    %1009 = math.tanh %1008 : vector<2x128xf32>
    %1010 = vector.extract_strided_slice %1009 {offsets = [0, 0], sizes = [2, 32], strides = [1, 1]} : vector<2x128xf32> to vector<2x32xf32>
    %cst_308 = arith.constant 5.000000e-01 : f32
    %1011 = vector.broadcast %cst_308 : f32 to vector<2x32xf32>
    %1012 = arith.mulf %1011, %1010 : vector<2x32xf32>
    %cst_309 = arith.constant 5.000000e-01 : f32
    %1013 = vector.broadcast %cst_309 : f32 to vector<2x32xf32>
    %1014 = arith.addf %1012, %1013 : vector<2x32xf32>
    %1015 = vector.extract_strided_slice %1009 {offsets = [0, 32], sizes = [2, 32], strides = [1, 1]} : vector<2x128xf32> to vector<2x32xf32>
    %cst_310 = arith.constant 5.000000e-01 : f32
    %1016 = vector.broadcast %cst_310 : f32 to vector<2x32xf32>
    %1017 = arith.mulf %1016, %1015 : vector<2x32xf32>
    %cst_311 = arith.constant 5.000000e-01 : f32
    %1018 = vector.broadcast %cst_311 : f32 to vector<2x32xf32>
    %1019 = arith.addf %1017, %1018 : vector<2x32xf32>
    %1020 = vector.extract_strided_slice %1009 {offsets = [0, 64], sizes = [2, 32], strides = [1, 1]} : vector<2x128xf32> to vector<2x32xf32>
    %1021 = vector.extract_strided_slice %1009 {offsets = [0, 96], sizes = [2, 32], strides = [1, 1]} : vector<2x128xf32> to vector<2x32xf32>
    %cst_312 = arith.constant 5.000000e-01 : f32
    %1022 = vector.broadcast %cst_312 : f32 to vector<2x32xf32>
    %1023 = arith.mulf %1022, %1021 : vector<2x32xf32>
    %cst_313 = arith.constant 5.000000e-01 : f32
    %1024 = vector.broadcast %cst_313 : f32 to vector<2x32xf32>
    %1025 = arith.addf %1023, %1024 : vector<2x32xf32>
    %1026 = arith.mulf %1019, %975 : vector<2x32xf32>
    %1027 = arith.mulf %1014, %1020 : vector<2x32xf32>
    %1028 = arith.addf %1026, %1027 : vector<2x32xf32>
    %1029 = math.tanh %1028 : vector<2x32xf32>
    %1030 = arith.mulf %1025, %1029 : vector<2x32xf32>
    %cst_314 = arith.constant dense<0.000000e+00> : vector<2x128xf32>
    %1031 = tpu.matmul %1030, %9, %cst_314 {dimension_numbers = #tpu.dot_dimension_numbers<[1], [0], [0], [1], [0, 0, 1, 1], [], []>} : vector<2x32xf32>, vector<32x128xf32>, vector<2x128xf32> -> vector<2x128xf32>
    %1032 = vector.broadcast %11 : vector<1x128xf32> to vector<2x128xf32>
    %1033 = arith.addf %1031, %1032 : vector<2x128xf32>
    %cst_315 = arith.constant dense<0.000000e+00> : vector<2x128xf32>
    %1034 = tpu.matmul %1004, %10, %cst_315 {dimension_numbers = #tpu.dot_dimension_numbers<[1], [0], [0], [1], [0, 0, 1, 1], [], []>} : vector<2x32xf32>, vector<32x128xf32>, vector<2x128xf32> -> vector<2x128xf32>
    %1035 = arith.addf %1033, %1034 : vector<2x128xf32>
    %1036 = math.tanh %1035 : vector<2x128xf32>
    %1037 = vector.extract_strided_slice %1036 {offsets = [0, 0], sizes = [2, 32], strides = [1, 1]} : vector<2x128xf32> to vector<2x32xf32>
    %cst_316 = arith.constant 5.000000e-01 : f32
    %1038 = vector.broadcast %cst_316 : f32 to vector<2x32xf32>
    %1039 = arith.mulf %1038, %1037 : vector<2x32xf32>
    %cst_317 = arith.constant 5.000000e-01 : f32
    %1040 = vector.broadcast %cst_317 : f32 to vector<2x32xf32>
    %1041 = arith.addf %1039, %1040 : vector<2x32xf32>
    %1042 = vector.extract_strided_slice %1036 {offsets = [0, 32], sizes = [2, 32], strides = [1, 1]} : vector<2x128xf32> to vector<2x32xf32>
    %cst_318 = arith.constant 5.000000e-01 : f32
    %1043 = vector.broadcast %cst_318 : f32 to vector<2x32xf32>
    %1044 = arith.mulf %1043, %1042 : vector<2x32xf32>
    %cst_319 = arith.constant 5.000000e-01 : f32
    %1045 = vector.broadcast %cst_319 : f32 to vector<2x32xf32>
    %1046 = arith.addf %1044, %1045 : vector<2x32xf32>
    %1047 = vector.extract_strided_slice %1036 {offsets = [0, 64], sizes = [2, 32], strides = [1, 1]} : vector<2x128xf32> to vector<2x32xf32>
    %1048 = vector.extract_strided_slice %1036 {offsets = [0, 96], sizes = [2, 32], strides = [1, 1]} : vector<2x128xf32> to vector<2x32xf32>
    %cst_320 = arith.constant 5.000000e-01 : f32
    %1049 = vector.broadcast %cst_320 : f32 to vector<2x32xf32>
    %1050 = arith.mulf %1049, %1048 : vector<2x32xf32>
    %cst_321 = arith.constant 5.000000e-01 : f32
    %1051 = vector.broadcast %cst_321 : f32 to vector<2x32xf32>
    %1052 = arith.addf %1050, %1051 : vector<2x32xf32>
    %1053 = arith.mulf %1046, %1002 : vector<2x32xf32>
    %1054 = arith.mulf %1041, %1047 : vector<2x32xf32>
    %1055 = arith.addf %1053, %1054 : vector<2x32xf32>
    %1056 = math.tanh %1055 : vector<2x32xf32>
    %1057 = arith.mulf %1052, %1056 : vector<2x32xf32>
    %c12_322 = arith.constant 12 : index
    %c0_323 = arith.constant 0 : index
    %1058 = vector.load %arg4[%c12_322, %c0_323] : memref<16x32xf32, #tpu.memory_space<vmem>>, vector<2x32xf32>
    tpu.vector_store %arg4[%c12_322, %c0_323], %1057 {strides = array<i32>} : memref<16x32xf32, #tpu.memory_space<vmem>>, vector<2x32xf32>,
    %1059 = vector.extract_strided_slice %687 {offsets = [14, 0], sizes = [2, 128], strides = [1, 1]} : vector<16x128xf32> to vector<2x128xf32>
    %cst_324 = arith.constant dense<0.000000e+00> : vector<2x128xf32>
    %1060 = tpu.matmul %1030, %7, %cst_324 {dimension_numbers = #tpu.dot_dimension_numbers<[1], [0], [0], [1], [0, 0, 1, 1], [], []>} : vector<2x32xf32>, vector<32x128xf32>, vector<2x128xf32> -> vector<2x128xf32>
    %1061 = arith.addf %1059, %1060 : vector<2x128xf32>
    %1062 = math.tanh %1061 : vector<2x128xf32>
    %1063 = vector.extract_strided_slice %1062 {offsets = [0, 0], sizes = [2, 32], strides = [1, 1]} : vector<2x128xf32> to vector<2x32xf32>
    %cst_325 = arith.constant 5.000000e-01 : f32
    %1064 = vector.broadcast %cst_325 : f32 to vector<2x32xf32>
    %1065 = arith.mulf %1064, %1063 : vector<2x32xf32>
    %cst_326 = arith.constant 5.000000e-01 : f32
    %1066 = vector.broadcast %cst_326 : f32 to vector<2x32xf32>
    %1067 = arith.addf %1065, %1066 : vector<2x32xf32>
    %1068 = vector.extract_strided_slice %1062 {offsets = [0, 32], sizes = [2, 32], strides = [1, 1]} : vector<2x128xf32> to vector<2x32xf32>
    %cst_327 = arith.constant 5.000000e-01 : f32
    %1069 = vector.broadcast %cst_327 : f32 to vector<2x32xf32>
    %1070 = arith.mulf %1069, %1068 : vector<2x32xf32>
    %cst_328 = arith.constant 5.000000e-01 : f32
    %1071 = vector.broadcast %cst_328 : f32 to vector<2x32xf32>
    %1072 = arith.addf %1070, %1071 : vector<2x32xf32>
    %1073 = vector.extract_strided_slice %1062 {offsets = [0, 64], sizes = [2, 32], strides = [1, 1]} : vector<2x128xf32> to vector<2x32xf32>
    %1074 = vector.extract_strided_slice %1062 {offsets = [0, 96], sizes = [2, 32], strides = [1, 1]} : vector<2x128xf32> to vector<2x32xf32>
    %cst_329 = arith.constant 5.000000e-01 : f32
    %1075 = vector.broadcast %cst_329 : f32 to vector<2x32xf32>
    %1076 = arith.mulf %1075, %1074 : vector<2x32xf32>
    %cst_330 = arith.constant 5.000000e-01 : f32
    %1077 = vector.broadcast %cst_330 : f32 to vector<2x32xf32>
    %1078 = arith.addf %1076, %1077 : vector<2x32xf32>
    %1079 = arith.mulf %1072, %1028 : vector<2x32xf32>
    %1080 = arith.mulf %1067, %1073 : vector<2x32xf32>
    %1081 = arith.addf %1079, %1080 : vector<2x32xf32>
    %1082 = math.tanh %1081 : vector<2x32xf32>
    %1083 = arith.mulf %1078, %1082 : vector<2x32xf32>
    %cst_331 = arith.constant dense<0.000000e+00> : vector<2x128xf32>
    %1084 = tpu.matmul %1083, %9, %cst_331 {dimension_numbers = #tpu.dot_dimension_numbers<[1], [0], [0], [1], [0, 0, 1, 1], [], []>} : vector<2x32xf32>, vector<32x128xf32>, vector<2x128xf32> -> vector<2x128xf32>
    %1085 = vector.broadcast %11 : vector<1x128xf32> to vector<2x128xf32>
    %1086 = arith.addf %1084, %1085 : vector<2x128xf32>
    %cst_332 = arith.constant dense<0.000000e+00> : vector<2x128xf32>
    %1087 = tpu.matmul %1057, %10, %cst_332 {dimension_numbers = #tpu.dot_dimension_numbers<[1], [0], [0], [1], [0, 0, 1, 1], [], []>} : vector<2x32xf32>, vector<32x128xf32>, vector<2x128xf32> -> vector<2x128xf32>
    %1088 = arith.addf %1086, %1087 : vector<2x128xf32>
    %1089 = math.tanh %1088 : vector<2x128xf32>
    %1090 = vector.extract_strided_slice %1089 {offsets = [0, 0], sizes = [2, 32], strides = [1, 1]} : vector<2x128xf32> to vector<2x32xf32>
    %cst_333 = arith.constant 5.000000e-01 : f32
    %1091 = vector.broadcast %cst_333 : f32 to vector<2x32xf32>
    %1092 = arith.mulf %1091, %1090 : vector<2x32xf32>
    %cst_334 = arith.constant 5.000000e-01 : f32
    %1093 = vector.broadcast %cst_334 : f32 to vector<2x32xf32>
    %1094 = arith.addf %1092, %1093 : vector<2x32xf32>
    %1095 = vector.extract_strided_slice %1089 {offsets = [0, 32], sizes = [2, 32], strides = [1, 1]} : vector<2x128xf32> to vector<2x32xf32>
    %cst_335 = arith.constant 5.000000e-01 : f32
    %1096 = vector.broadcast %cst_335 : f32 to vector<2x32xf32>
    %1097 = arith.mulf %1096, %1095 : vector<2x32xf32>
    %cst_336 = arith.constant 5.000000e-01 : f32
    %1098 = vector.broadcast %cst_336 : f32 to vector<2x32xf32>
    %1099 = arith.addf %1097, %1098 : vector<2x32xf32>
    %1100 = vector.extract_strided_slice %1089 {offsets = [0, 64], sizes = [2, 32], strides = [1, 1]} : vector<2x128xf32> to vector<2x32xf32>
    %1101 = vector.extract_strided_slice %1089 {offsets = [0, 96], sizes = [2, 32], strides = [1, 1]} : vector<2x128xf32> to vector<2x32xf32>
    %cst_337 = arith.constant 5.000000e-01 : f32
    %1102 = vector.broadcast %cst_337 : f32 to vector<2x32xf32>
    %1103 = arith.mulf %1102, %1101 : vector<2x32xf32>
    %cst_338 = arith.constant 5.000000e-01 : f32
    %1104 = vector.broadcast %cst_338 : f32 to vector<2x32xf32>
    %1105 = arith.addf %1103, %1104 : vector<2x32xf32>
    %1106 = arith.mulf %1099, %1055 : vector<2x32xf32>
    %1107 = arith.mulf %1094, %1100 : vector<2x32xf32>
    %1108 = arith.addf %1106, %1107 : vector<2x32xf32>
    %1109 = math.tanh %1108 : vector<2x32xf32>
    %1110 = arith.mulf %1105, %1109 : vector<2x32xf32>
    %c14_339 = arith.constant 14 : index
    %c0_340 = arith.constant 0 : index
    %1111 = vector.load %arg4[%c14_339, %c0_340] : memref<16x32xf32, #tpu.memory_space<vmem>>, vector<2x32xf32>
    tpu.vector_store %arg4[%c14_339, %c0_340], %1110 {strides = array<i32>} : memref<16x32xf32, #tpu.memory_space<vmem>>, vector<2x32xf32>,
    %c0_341 = arith.constant 0 : index
    %c0_342 = arith.constant 0 : index
    %1112 = vector.load %arg4[%c0_341, %c0_342] : memref<16x32xf32, #tpu.memory_space<vmem>>, vector<16x32xf32>
    %cst_343 = arith.constant dense<0.000000e+00> : vector<16x128xf32>
    %1113 = tpu.matmul %1112, %14, %cst_343 {dimension_numbers = #tpu.dot_dimension_numbers<[1], [0], [0], [1], [0, 0, 1, 1], [], []>} : vector<16x32xf32>, vector<32x128xf32>, vector<16x128xf32> -> vector<16x128xf32>
    %1114 = vector.broadcast %15 : vector<1x128xf32> to vector<16x128xf32>
    %1115 = arith.addf %1113, %1114 : vector<16x128xf32>
    %1116 = vector.extract_strided_slice %1115 {offsets = [0, 0], sizes = [16, 16], strides = [1, 1]} : vector<16x128xf32> to vector<16x16xf32>
    %c0_344 = arith.constant 0 : index
    %c0_345 = arith.constant 0 : index
    %1117 = vector.load %arg3[%c0_344, %c0_345] : memref<16x16xf32, #tpu.memory_space<vmem>>, vector<16x16xf32>
    tpu.vector_store %arg3[%c0_344, %c0_345], %1116 {strides = array<i32>} : memref<16x16xf32, #tpu.memory_space<vmem>>, vector<16x16xf32>,
    return
  }
}

</mosaic_0001>

<bundles_post_ra>
// kernel: lstm_autoencoder_forward.1
= control target key start
LH: loop header
LB: loop body
LE: loop exit
PB: predicated region body
PF: predicated region fallthrough
CT: control target
= control target key end

     0   :  { %8 = vsyncpa [#allocation4], 0  ;;  %s9486_s0 = inlined_call_operand.vmem [shape: f32[16,16], index: 0, kind: input, shape index: {}]   ;;  %s9487_s1 = inlined_call_operand.hbm [shape: f32[272,128], index: 1, kind: input, shape index: {}]   ;;  %s9488_s2 = inlined_call_operand.hbm [shape: f32[80,128], index: 2, kind: input, shape index: {}]   ;;  %s9489_s3 = inlined_call_operand.vmem [shape: f32[16,16], index: 3, kind: output, shape index: {}]  }
   0x1   :  { %9 = vsyncpa [#allocation6], 0  ;;  %s8475_s12 = smov [#allocation3]   ;;  %s8427_s16 = scalar_lea.hbm %s9487_s1, 4352 }
   0x2   :  { %s17_s13 = sshll.u32 %s8475_s12, 4  ;;  %p8428_p0 = scmp.ne.s32.totalorder %s9487_s1, %s8427_s16  ;;  %s18_s13 = int_to_ptr.vmem [resolvable:$true] %s17_s13 }
   0x3   :  { %p8431_p1 = scmp.lt.u32.totalorder %s8427_s16, %s9487_s1 }
   0x5   :  { %p8433_p2 = pnand %p8431_p1, %p8428_p0 }
   0x7   :  { %8436 = shalt.err (!%p8433_p2)
}
   0x8   :  { %s8437_s21 = scalar_lea.vmem %s18_s13, 4352  ;;  %p8442_p4 = scmp.lt.s32.totalorder %s18_s13, %s18_s13 }
   0x9   :  { %p8438_p3 = scmp.ne.s32.totalorder %s18_s13, %s8437_s21  ;;  %p8443_p5 = scmp.lt.s32.totalorder %s8437_s21, %s8437_s21 }
   0xb   :  { %p8444_p6 = por %p8443_p5, %p8442_p4 }
   0xd   :  { %p8445_p7 = pnand %p8444_p6, %p8438_p3 }
   0xf   :  { %8448 = shalt.err (!%p8445_p7)
}
  0x10   :  { %s8476_s22 = smov 128   ;;  %s8477_s23 = smov 8  }
  0x11   :  { %23 = dma.hbm_to_vmem [thread:$0]  %s9487_s1, 4352, %s18_s13, [#allocation4], %s8476_s22, %s8476_s22, %s8477_s23  }
  0x12   :  { %s8478_s26 = smov [#allocation5]   ;;  %s8449_s30 = scalar_lea.hbm %s9488_s2, 1280 }
  0x13   :  { %s29_s27 = sshll.u32 %s8478_s26, 4  ;;  %p8450_p8 = scmp.ne.s32.totalorder %s9488_s2, %s8449_s30  ;;  %s30_s27 = int_to_ptr.vmem [resolvable:$true] %s29_s27 }
  0x14   :  { %p8453_p9 = scmp.lt.u32.totalorder %s8449_s30, %s9488_s2 }
  0x16   :  { %p8455_p10 = pnand %p8453_p9, %p8450_p8 }
  0x18   :  { %8458 = shalt.err (!%p8455_p10)
}
  0x19   :  { %s8459_s8 = scalar_lea.vmem %s30_s27, 1280  ;;  %p8464_p12 = scmp.lt.s32.totalorder %s30_s27, %s30_s27 }
  0x1a   :  { %p8460_p11 = scmp.ne.s32.totalorder %s30_s27, %s8459_s8  ;;  %p8465_p13 = scmp.lt.s32.totalorder %s8459_s8, %s8459_s8 }
  0x1c   :  { %p8466_p0 = por %p8465_p13, %p8464_p12 }
  0x1e   :  { %p8467_p1 = pnand %p8466_p0, %p8460_p11 }
  0x20   :  { %8470 = shalt.err (!%p8467_p1)
}
  0x21   :  { %35 = dma.hbm_to_vmem [thread:$0]  %s9488_s2, 1280, %s30_s27, [#allocation6], %s8476_s22, %s8476_s22, %s8477_s23  }
  0x22   :  { %8471 = dma.done.wait [#allocation4], 4352  }
  0x23   :  { %8472 = vsyncadd [#allocation4], 4294962944 }
  0x24   :  { %8473 = dma.done.wait [#allocation6], 1280  }
  0x25   :  { %8474 = vsyncadd [#allocation6], 4294966016  ;;  %v8479_v0 = vmov 0.0|0.0   ;;  %vm8480_vm0 = vmmov 0   ;;  %v8481_v1 = vmov 0.0   ;;  %vm92_vm1 = vcmask 130048  }
  0x26   :  { %7697 = vmatprep.subr.bf16.mxu1 %v8479_v0  ;;  %7017 = vmatprep.mubr.msk.f32.mxu1 %vm8480_vm0, %v8481_v1  ;;  %v42_v2 = vld [vmem:[#allocation3] sm:$0xff]  ;;  %v43_v3 = vld [vmem:[#allocation3 + $0x8] sm:$0xff]  ;;  %v44_v4 = vld [vmem:[#allocation3 + $0x10] sm:$0xff]  ;;  %s8483_s13 = smov 32   ;;  %vm174_vm2 = vcmask 261120   ;;  %vm443_vm3 = vcmask 254976  }
  0x27   :  { %v7693_v5 = vpack.c.bf16 %v43_v3, %v42_v2  ;;  %v45_v6 = vld [vmem:[#allocation3 + $0x18] sm:$0xff]  ;;  %v86_v7 = vld [vmem:[%s9486_s0] sm:$0xff]  ;;  %v46_v9 = vld [vmem:[#allocation3 + $0x20] sm:$0xff]  ;;  %s8484_s14 = smov 96  }
  0x28   :  { %v8536_v8 = vpack.c.bf16 %v45_v6, %v44_v4  ;;  %7006 = vmatprep.mubr.msk.f32.mxu0 %vm92_vm1, %v86_v7  ;;  %v47_v10 = vld [vmem:[#allocation3 + $0x28] sm:$0xff]  ;;  %v87_v11 = vld [vmem:[%s9486_s0 + $0x8] sm:$0xff]  ;;  %v6552_v13 = vld [vmem:[#allocation3 + $0x30] ss:$0 sm:$0xff]  ;;  %s8482_s0 = smov 64  }
  0x29   :  { %7694 = vmatprep.subr.bf16.mxu0 %v7693_v5  ;;  %v8543_v12 = vpack.c.bf16 %v47_v10, %v46_v9  ;;  %v49_v29 = vld [vmem:[#allocation3 + $0x38] sm:$0xff]  ;;  %v50_v30 = vld [vmem:[#allocation3 + $0x40] sm:$0xff]  ;;  %v51_v31 = vld [vmem:[#allocation3 + $0x48] sm:$0xff] }
  0x2a   :  { %7699 = vmatpush3.bf16.msra.mxu1 %v8536_v8  ;;  %7696 = vmatpush3.bf16.msra.mxu0 %v7693_v5  ;;  %v8569_v32 = vpack.c.bf16 %v50_v30, %v49_v29  ;;  %v52_v33 = vld [vmem:[#allocation3 + $0x50] sm:$0xff]  ;;  %v53_v38 = vld [vmem:[#allocation3 + $0x58] sm:$0xff]  ;;  %v54_v39 = vld [vmem:[#allocation3 + $0x60] sm:$0xff] }
  0x2b   :  { %7700 = vmatprep.subr.bf16.mxu1 %v8479_v0  ;;  %7703 = vmatprep.subr.bf16.mxu0 %v8479_v0  ;;  %v8572_v34 = vpack.c.bf16 %v52_v33, %v51_v31  ;;  %v8579_v40 = vpack.c.bf16 %v54_v39, %v53_v38  ;;  %v55_v41 = vld [vmem:[#allocation3 + $0x68] sm:$0xff]  ;;  %v56_v42 = vld [vmem:[#allocation3 + $0x70] sm:$0xff]  ;;  %v8605_v49 = vld [vmem:[#allocation3 + $0x78] ss:$0 sm:$0xff] }
  0x2c   :  { %v8584_v44 = vpack.c.bf16 %v56_v42, %v55_v41  ;;  %vm8894_vm11 = vmpackc.low %vm174_vm2, %vm174_vm2 }
  0x2d   :  { %7007 = vmatmul.mubr.msk.f32.vlgmr.msra.gmra.mrb[0].mxu0 %vm92_vm1, %v87_v11 }
  0x2e   :  { %7702 = vmatpush3.bf16.msra.mxu1 %v8543_v12  ;;  %7028 = vmatprep.mubr.msk.f32.mxu0 %vm8480_vm0, %v8481_v1 }
  0x2f   :  { %7715 = vmatprep.subr.bf16.mxu1 %v8479_v0  ;;  %7705 = vmatpush3.bf16.msra.mxu0 %v8569_v32 }
  0x30   :  { %7706 = vmatprep.subr.bf16.mxu0 %v8479_v0 }
  0x31   :  { %7018 = vmatmul.mubr.f32.vlgmr.msra.gmra.mrb[0].mxu1 %v8481_v1 }
  0x32   :  { %7717 = vmatpush3.bf16.msra.mxu1 %v8536_v8  ;;  %7050 = vmatprep.mubr.msk.f32.mxu1 %vm8480_vm0, %v8481_v1 }
  0x33   :  { %7718 = vmatprep.subr.bf16.mxu1 %v8479_v0  ;;  %7708 = vmatpush3.bf16.msra.mxu0 %v8572_v34 }
  0x34   :  { %7709 = vmatprep.subr.bf16.mxu0 %v8479_v0 }
  0x36   :  { %7720 = vmatpush3.bf16.msra.mxu1 %v8543_v12 }
  0x37   :  { %7721 = vmatprep.subr.bf16.mxu1 %v8479_v0 }
 0x100   :  { %v7008_v14 = vpop.f32.mrb[0].mxu0 }
 0x101   :  { %v8559_v15 = vadd.f32 %v7008_v14, %v6552_v13  ;;  %v165_v16 = vpop.f32.mrb[1].mxu0 }
 0x102   :  { %v8561_v17 = vadd.f32 %v6552_v13, %v165_v16 }
 0x104   :  { %v244_v18 = vpop.f32.mrb[0].mxu1 }
 0x105   :  { %v248_v19 = vadd.f32 %v244_v18, %v8561_v17  ;;  %v7019_v20 = vpop.f32.mrb[1].mxu1 }
 0x107   :  { %8235 = vtanh.f32 %v248_v19 }
 0x111   :  { %v8236_v21 = vpop.eup %8235 }
 0x112   :  { %254 = vrot.lane.b32.xlu0 %v8236_v21, %s8482_s0  ;;  %v250_v22 = vmul.f32 0.5, %v8236_v21 }
 0x114   :  { %v251_v23 = vadd.f32 0.5, %v250_v22 }
 0x116   :  { %v252_v26 = vmul.f32 0.0, %v251_v23 }
 0x184   :  { %v255_v24 = vpop.permute.xlu0 %254 }
 0x185   :  { %v257_v25 = vmul.f32 %v255_v24, %v251_v23 }
 0x187   :  { %259 = vrot.lane.b32.xlu0 %v257_v25, %s8483_s13 }
 0x1f9   :  { %v260_v27 = vpop.permute.xlu0 %259 }
 0x1fa   :  { %v8566_v28 = vadd.f32 %v260_v27, %v252_v26 }
 0x1fc   :  { %8237 = vtanh.f32 %v8566_v28  ;;  %v523_v63 = vrot.slane %v8566_v28, 6 }
 0x206   :  { %v8238_v35 = vpop.eup %8237 }
 0x207   :  { %265 = vrot.lane.b32.xlu1 %v8238_v35, %s8482_s0 }
 0x279   :  { %v266_v36 = vpop.permute.xlu1 %265 }
 0x27a   :  { %v268_v37 = vmul.f32 %v266_v36, %v251_v23 }
 0x27c   :  { %274 = vrot.lane.b32.xlu1 %v268_v37, %s8483_s13 }
 0x2ee   :  { %v275_v43 = vpop.permute.xlu1 %274 }
 0x2ef   :  { %7029 = vmatmul.mubr.msk.f32.vlgmr.msra.gmra.mrb[2].mxu0 %vm174_vm2, %v275_v43  ;;  %7051 = vmatmul.mubr.msk.f32.vlgmr.msra.gmra.mrb[2].mxu1 %vm174_vm2, %v275_v43 }
 0x2f0   :  { %7711 = vmatpush3.bf16.msra.mxu0 %v8579_v40  ;;  %7039 = vmatprep.mubr.msk.f32.mxu0 %vm8480_vm0, %v8481_v1 }
 0x2f1   :  { %7712 = vmatprep.subr.bf16.mxu0 %v8479_v0  ;;  %7723 = vmatpush3.bf16.msra.mxu1 %v8569_v32 }
 0x2f2   :  { %7724 = vmatprep.subr.bf16.mxu1 %v8479_v0  ;;  %7061 = vmatprep.mubr.msk.f32.mxu1 %vm8480_vm0, %v8481_v1 }
 0x2f4   :  { %7714 = vmatpush3.bf16.msra.mxu0 %v8584_v44 }
 0x2f5   :  { %7733 = vmatprep.subr.bf16.mxu0 %v8479_v0  ;;  %7726 = vmatpush3.bf16.msra.mxu1 %v8572_v34 }
 0x2f6   :  { %7727 = vmatprep.subr.bf16.mxu1 %v8479_v0 }
 0x2f7   :  { %7040 = vmatmul.mubr.f32.vlgmr.msra.gmra.mrb[2].mxu0 %v8481_v1 }
 0x2f8   :  { %7735 = vmatpush3.bf16.msra.mxu0 %v8536_v8  ;;  %7083 = vmatprep.mubr.msk.f32.mxu0 %vm8480_vm0, %v8481_v1 }
 0x2f9   :  { %7736 = vmatprep.subr.bf16.mxu0 %v8479_v0 }
 0x2fc   :  { %7738 = vmatpush3.bf16.msra.mxu0 %v8543_v12 }
 0x2fd   :  { %7739 = vmatprep.subr.bf16.mxu0 %v8479_v0 }
 0x3c2   :  { %v511_v45 = vpop.f32.mrb[2].mxu1 }
 0x3c3   :  { %v516_v46 = vrot.slane %v511_v45, 6  ;;  %v7052_v47 = vpop.f32.mrb[3].mxu1 }
 0x3c5   :  { %v518_v48 = vadd.f32 %v516_v46, %v8561_v17 }
 0x3c7   :  { %8239 = vtanh.f32 %v518_v48 }
 0x3ca   :  { %v414_v50 = vpop.f32.mrb[2].mxu0 }
 0x3cb   :  { %v8097_v51 = vadd.f32 %v8605_v49, %v414_v50  ;;  %v7041_v52 = vpop.f32.mrb[3].mxu0 }
 0x3cd   :  { %8241 = vtanh.f32 %v8097_v51 }
 0x3d1   :  { %v8240_v53 = vpop.eup %8239 }
 0x3d2   :  { %527 = vrot.lane.b32.xlu0 %v8240_v53, %s8482_s0  ;;  %v520_v55 = vmul.f32 0.5, %v8240_v53 }
 0x3d4   :  { %v521_v56 = vadd.f32 0.5, %v520_v55 }
 0x3d6   :  { %v525_v2 = vmul.f32 %v523_v63, %v521_v56 }
 0x3d7   :  { %v8242_v54 = vpop.eup %8241 }
 0x3d8   :  { %424 = vrot.lane.b32.xlu1 %v8242_v54, %s8482_s0  ;;  %v420_v59 = vmul.f32 0.5, %v8242_v54 }
 0x3da   :  { %v421_v60 = vadd.f32 0.5, %v420_v59 }
 0x3dc   :  { %v422_v5 = vmul.f32 0.0, %v421_v60 }
 0x444   :  { %v528_v57 = vpop.permute.xlu0 %527 }
 0x445   :  { %v530_v58 = vmul.f32 %v528_v57, %v521_v56 }
 0x447   :  { %532 = vrot.lane.b32.xlu0 %v530_v58, %s8483_s13 }
 0x44a   :  { %v425_v61 = vpop.permute.xlu1 %424 }
 0x44b   :  { %v427_v62 = vmul.f32 %v425_v61, %v421_v60 }
 0x44d   :  { %429 = vrot.lane.b32.xlu1 %v427_v62, %s8483_s13 }
 0x4b9   :  { %v533_v3 = vpop.permute.xlu0 %532 }
 0x4ba   :  { %v8613_v4 = vadd.f32 %v533_v3, %v525_v2 }
 0x4bc   :  { %8243 = vtanh.f32 %v8613_v4  ;;  %v794_v41 = vrot.slane %v8613_v4, 6 }
 0x4bf   :  { %v430_v6 = vpop.permute.xlu1 %429 }
 0x4c0   :  { %v8616_v7 = vadd.f32 %v430_v6, %v422_v5 }
 0x4c2   :  { %8245 = vtanh.f32 %v8616_v7 }
 0x4c6   :  { %v8244_v9 = vpop.eup %8243 }
 0x4c7   :  { %538 = vrot.lane.b32.xlu0 %v8244_v9, %s8482_s0 }
 0x4cc   :  { %v8246_v10 = vpop.eup %8245 }
 0x4cd   :  { %435 = vrot.lane.b32.xlu1 %v8246_v10, %s8482_s0 }
 0x539   :  { %v539_v11 = vpop.permute.xlu0 %538 }
 0x53a   :  { %v541_v13 = vmul.f32 %v539_v11, %v521_v56 }
 0x53c   :  { %v543_v14 = vrot.slane %v541_v13, 2 }
 0x53e   :  { %544 = vrot.lane.b32.xlu0 %v543_v14, %s8483_s13 }
 0x53f   :  { %v436_v16 = vpop.permute.xlu1 %435 }
 0x540   :  { %v438_v18 = vmul.f32 %v436_v16, %v421_v60 }
 0x542   :  { %440 = vrot.lane.b32.xlu1 %v438_v18, %s8483_s13 }
 0x5b0   :  { %v545_v19 = vpop.permute.xlu0 %544 }
 0x5b1   :  { %7062 = vmatmul.mubr.msk.f32.vlgmr.msra.gmra.mrb[4].mxu1 %vm174_vm2, %v545_v19  ;;  %7084 = vmatmul.mubr.msk.f32.vlgmr.msra.gmra.mrb[4].mxu0 %vm174_vm2, %v545_v19 }
 0x5b2   :  { %7729 = vmatpush3.bf16.msra.mxu1 %v8579_v40  ;;  %7072 = vmatprep.mubr.msk.f32.mxu1 %vm8480_vm0, %v8481_v1 }
 0x5b3   :  { %7730 = vmatprep.subr.bf16.mxu1 %v8479_v0  ;;  %7741 = vmatpush3.bf16.msra.mxu0 %v8569_v32 }
 0x5b4   :  { %v441_v20 = vpop.permute.xlu1 %440  ;;  %7742 = vmatprep.subr.bf16.mxu0 %v8479_v0  ;;  %7094 = vmatprep.mubr.msk.f32.mxu0 %vm8480_vm0, %v8481_v1 }
 0x5b5   :  { %444 = vst.msk [vmem:[#allocation2] sm:$0x3] %vm443_vm3, %v441_v20 }
 0x5b6   :  { %7732 = vmatpush3.bf16.msra.mxu1 %v8584_v44 }
 0x5b7   :  { %7751 = vmatprep.subr.bf16.mxu1 %v8479_v0  ;;  %7744 = vmatpush3.bf16.msra.mxu0 %v8572_v34 }
 0x5b8   :  { %7745 = vmatprep.subr.bf16.mxu0 %v8479_v0 }
 0x5b9   :  { %7073 = vmatmul.mubr.msk.f32.vlgmr.msra.gmra.mrb[4].mxu1 %vm174_vm2, %v441_v20 }
 0x5ba   :  { %7753 = vmatpush3.bf16.msra.mxu1 %v8536_v8  ;;  %7116 = vmatprep.mubr.msk.f32.mxu1 %vm8480_vm0, %v8481_v1 }
 0x5bb   :  { %7754 = vmatprep.subr.bf16.mxu1 %v8479_v0 }
 0x5be   :  { %7756 = vmatpush3.bf16.msra.mxu1 %v8543_v12 }
 0x5bf   :  { %7757 = vmatprep.subr.bf16.mxu1 %v8479_v0 }
 0x684   :  { %v782_v21 = vpop.f32.mrb[4].mxu0 }
 0x685   :  { %v787_v22 = vrot.slane %v782_v21, 4  ;;  %v7085_v23 = vpop.f32.mrb[5].mxu0 }
 0x687   :  { %v789_v24 = vadd.f32 %v787_v22, %v8561_v17 }
 0x689   :  { %8247 = vtanh.f32 %v789_v24 }
 0x68c   :  { %v686_v25 = vpop.f32.mrb[4].mxu1 }
 0x68d   :  { %v8098_v26 = vadd.f32 %v8605_v49, %v686_v25  ;;  %v7074_v27 = vpop.f32.mrb[5].mxu1 }
 0x68f   :  { %8249 = vtanh.f32 %v8098_v26 }
 0x693   :  { %v8248_v28 = vpop.eup %8247 }
 0x694   :  { %798 = vrot.lane.b32.xlu0 %v8248_v28, %s8482_s0  ;;  %v791_v30 = vmul.f32 0.5, %v8248_v28 }
 0x696   :  { %v792_v31 = vadd.f32 0.5, %v791_v30 }
 0x698   :  { %v796_v42 = vmul.f32 %v794_v41, %v792_v31 }
 0x699   :  { %v8250_v29 = vpop.eup %8249 }
 0x69a   :  { %696 = vrot.lane.b32.xlu1 %v8250_v29, %s8482_s0  ;;  %v692_v36 = vmul.f32 0.5, %v8250_v29 }
 0x69c   :  { %v693_v37 = vadd.f32 0.5, %v692_v36 }
 0x69e   :  { %v694_v46 = vmul.f32 %v693_v37, %v8616_v7 }
 0x706   :  { %v799_v33 = vpop.permute.xlu0 %798 }
 0x707   :  { %v801_v35 = vmul.f32 %v799_v33, %v792_v31 }
 0x709   :  { %803 = vrot.lane.b32.xlu0 %v801_v35, %s8483_s13 }
 0x70c   :  { %v697_v38 = vpop.permute.xlu1 %696 }
 0x70d   :  { %v699_v39 = vmul.f32 %v697_v38, %v693_v37 }
 0x70f   :  { %701 = vrot.lane.b32.xlu1 %v699_v39, %s8483_s13 }
 0x77b   :  { %v804_v43 = vpop.permute.xlu0 %803 }
 0x77c   :  { %v8652_v45 = vadd.f32 %v804_v43, %v796_v42 }
 0x77e   :  { %8251 = vtanh.f32 %v8652_v45  ;;  %v1065_v16 = vrot.slane %v8652_v45, 6 }
 0x781   :  { %v702_v47 = vpop.permute.xlu1 %701 }
 0x782   :  { %v704_v48 = vadd.f32 %v702_v47, %v694_v46 }
 0x784   :  { %8253 = vtanh.f32 %v704_v48 }
 0x788   :  { %v8252_v50 = vpop.eup %8251 }
 0x789   :  { %809 = vrot.lane.b32.xlu0 %v8252_v50, %s8482_s0 }
 0x78e   :  { %v8254_v51 = vpop.eup %8253 }
 0x78f   :  { %707 = vrot.lane.b32.xlu1 %v8254_v51, %s8482_s0 }
 0x7fb   :  { %v810_v52 = vpop.permute.xlu0 %809 }
 0x7fc   :  { %v812_v53 = vmul.f32 %v810_v52, %v792_v31 }
 0x7fe   :  { %v814_v54 = vrot.slane %v812_v53, 4 }
 0x800   :  { %815 = vrot.lane.b32.xlu0 %v814_v54, %s8483_s13 }
 0x801   :  { %v708_v55 = vpop.permute.xlu1 %707 }
 0x802   :  { %v710_v56 = vmul.f32 %v708_v55, %v693_v37 }
 0x804   :  { %712 = vrot.lane.b32.xlu1 %v710_v56, %s8483_s13 }
 0x872   :  { %v816_v57 = vpop.permute.xlu0 %815 }
 0x873   :  { %7095 = vmatmul.mubr.msk.f32.vlgmr.msra.gmra.mrb[6].mxu0 %vm174_vm2, %v816_v57  ;;  %7117 = vmatmul.mubr.msk.f32.vlgmr.msra.gmra.mrb[6].mxu1 %vm174_vm2, %v816_v57 }
 0x874   :  { %7747 = vmatpush3.bf16.msra.mxu0 %v8579_v40  ;;  %7105 = vmatprep.mubr.msk.f32.mxu0 %vm8480_vm0, %v8481_v1 }
 0x875   :  { %7748 = vmatprep.subr.bf16.mxu0 %v8479_v0  ;;  %7759 = vmatpush3.bf16.msra.mxu1 %v8569_v32 }
 0x876   :  { %v713_v58 = vpop.permute.xlu1 %712  ;;  %7760 = vmatprep.subr.bf16.mxu1 %v8479_v0  ;;  %7127 = vmatprep.mubr.msk.f32.mxu1 %vm8480_vm0, %v8481_v1 }
 0x877   :  { %715 = vst.msk [vmem:[#allocation2 + $0x2] sm:$0x3] %vm443_vm3, %v713_v58 }
 0x878   :  { %7750 = vmatpush3.bf16.msra.mxu0 %v8584_v44 }
 0x879   :  { %7769 = vmatprep.subr.bf16.mxu0 %v8479_v0  ;;  %7762 = vmatpush3.bf16.msra.mxu1 %v8572_v34 }
 0x87a   :  { %7763 = vmatprep.subr.bf16.mxu1 %v8479_v0 }
 0x87b   :  { %7106 = vmatmul.mubr.msk.f32.vlgmr.msra.gmra.mrb[6].mxu0 %vm174_vm2, %v713_v58 }
 0x87c   :  { %7771 = vmatpush3.bf16.msra.mxu0 %v8536_v8  ;;  %7149 = vmatprep.mubr.msk.f32.mxu0 %vm8480_vm0, %v8481_v1 }
 0x87d   :  { %7772 = vmatprep.subr.bf16.mxu0 %v8479_v0 }
 0x880   :  { %7774 = vmatpush3.bf16.msra.mxu0 %v8543_v12 }
 0x881   :  { %7775 = vmatprep.subr.bf16.mxu0 %v8479_v0 }
 0x946   :  { %v1053_v59 = vpop.f32.mrb[6].mxu1 }
 0x947   :  { %v1058_v60 = vrot.slane %v1053_v59, 2  ;;  %v7118_v61 = vpop.f32.mrb[7].mxu1 }
 0x949   :  { %v1060_v62 = vadd.f32 %v1058_v60, %v8561_v17 }
 0x94b   :  { %8255 = vtanh.f32 %v1060_v62 }
 0x94e   :  { %v957_v63 = vpop.f32.mrb[6].mxu0 }
 0x94f   :  { %v8099_v2 = vadd.f32 %v8605_v49, %v957_v63  ;;  %v7107_v3 = vpop.f32.mrb[7].mxu0 }
 0x951   :  { %8257 = vtanh.f32 %v8099_v2 }
 0x955   :  { %v8256_v4 = vpop.eup %8255 }
 0x956   :  { %1069 = vrot.lane.b32.xlu0 %v8256_v4, %s8482_s0  ;;  %v1062_v6 = vmul.f32 0.5, %v8256_v4 }
 0x958   :  { %v1063_v7 = vadd.f32 0.5, %v1062_v6 }
 0x95a   :  { %v1067_v18 = vmul.f32 %v1065_v16, %v1063_v7 }
 0x95b   :  { %v8258_v5 = vpop.eup %8257 }
 0x95c   :  { %967 = vrot.lane.b32.xlu1 %v8258_v5, %s8482_s0  ;;  %v963_v11 = vmul.f32 0.5, %v8258_v5 }
 0x95e   :  { %v964_v17 = vadd.f32 0.5, %v963_v11 }
 0x960   :  { %v965_v21 = vmul.f32 %v964_v17, %v704_v48 }
 0x9c8   :  { %v1070_v9 = vpop.permute.xlu0 %1069 }
 0x9c9   :  { %v1072_v10 = vmul.f32 %v1070_v9, %v1063_v7 }
 0x9cb   :  { %1074 = vrot.lane.b32.xlu0 %v1072_v10, %s8483_s13 }
 0x9ce   :  { %v968_v13 = vpop.permute.xlu1 %967 }
 0x9cf   :  { %v970_v14 = vmul.f32 %v968_v13, %v964_v17 }
 0x9d1   :  { %972 = vrot.lane.b32.xlu1 %v970_v14, %s8483_s13 }
 0xa3d   :  { %v1075_v19 = vpop.permute.xlu0 %1074 }
 0xa3e   :  { %v1077_v20 = vadd.f32 %v1075_v19, %v1067_v18 }
 0xa40   :  { %8259 = vtanh.f32 %v1077_v20  ;;  %v1333_v54 = vrot.slane %v1077_v20, 6 }
 0xa43   :  { %v973_v22 = vpop.permute.xlu1 %972 }
 0xa44   :  { %v975_v23 = vadd.f32 %v973_v22, %v965_v21 }
 0xa46   :  { %8261 = vtanh.f32 %v975_v23 }
 0xa4a   :  { %v8260_v24 = vpop.eup %8259 }
 0xa4b   :  { %1080 = vrot.lane.b32.xlu0 %v8260_v24, %s8482_s0 }
 0xa50   :  { %v8262_v25 = vpop.eup %8261 }
 0xa51   :  { %978 = vrot.lane.b32.xlu1 %v8262_v25, %s8482_s0 }
 0xabd   :  { %v1081_v26 = vpop.permute.xlu0 %1080 }
 0xabe   :  { %v1083_v27 = vmul.f32 %v1081_v26, %v1063_v7 }
 0xac0   :  { %v1085_v28 = vrot.slane %v1083_v27, 6 }
 0xac2   :  { %1086 = vrot.lane.b32.xlu0 %v1085_v28, %s8483_s13 }
 0xac3   :  { %v979_v29 = vpop.permute.xlu1 %978 }
 0xac4   :  { %v981_v30 = vmul.f32 %v979_v29, %v964_v17 }
 0xac6   :  { %983 = vrot.lane.b32.xlu1 %v981_v30, %s8483_s13 }
 0xb34   :  { %v1087_v31 = vpop.permute.xlu0 %1086 }
 0xb35   :  { %7128 = vmatmul.mubr.msk.f32.vlgmr.msra.gmra.mrb[8].mxu1 %vm174_vm2, %v1087_v31  ;;  %7150 = vmatmul.mubr.msk.f32.vlgmr.msra.gmra.mrb[8].mxu0 %vm174_vm2, %v1087_v31 }
 0xb36   :  { %7765 = vmatpush3.bf16.msra.mxu1 %v8579_v40  ;;  %7138 = vmatprep.mubr.msk.f32.mxu1 %vm8480_vm0, %v8481_v1 }
 0xb37   :  { %7766 = vmatprep.subr.bf16.mxu1 %v8479_v0  ;;  %7777 = vmatpush3.bf16.msra.mxu0 %v8569_v32 }
 0xb38   :  { %v984_v33 = vpop.permute.xlu1 %983  ;;  %7778 = vmatprep.subr.bf16.mxu0 %v8479_v0  ;;  %7160 = vmatprep.mubr.msk.f32.mxu0 %vm8480_vm0, %v8481_v1 }
 0xb39   :  { %986 = vst.msk [vmem:[#allocation2 + $0x4] sm:$0x3] %vm443_vm3, %v984_v33 }
 0xb3a   :  { %7768 = vmatpush3.bf16.msra.mxu1 %v8584_v44 }
 0xb3b   :  { %7787 = vmatprep.subr.bf16.mxu1 %v8479_v0  ;;  %7780 = vmatpush3.bf16.msra.mxu0 %v8572_v34 }
 0xb3c   :  { %7781 = vmatprep.subr.bf16.mxu0 %v8479_v0 }
 0xb3d   :  { %7139 = vmatmul.mubr.msk.f32.vlgmr.msra.gmra.mrb[8].mxu1 %vm174_vm2, %v984_v33 }
 0xb3e   :  { %7789 = vmatpush3.bf16.msra.mxu1 %v8536_v8  ;;  %7182 = vmatprep.mubr.msk.f32.mxu1 %vm8480_vm0, %v8481_v1 }
 0xb3f   :  { %7790 = vmatprep.subr.bf16.mxu1 %v8479_v0 }
 0xb42   :  { %7792 = vmatpush3.bf16.msra.mxu1 %v8543_v12 }
 0xb43   :  { %7793 = vmatprep.subr.bf16.mxu1 %v8479_v0 }
 0xc08   :  { %v1324_v35 = vpop.f32.mrb[8].mxu0 }
 0xc09   :  { %v1328_v36 = vadd.f32 %v1324_v35, %v8559_v15  ;;  %v7151_v37 = vpop.f32.mrb[9].mxu0 }
 0xc0b   :  { %8263 = vtanh.f32 %v1328_v36 }
 0xc10   :  { %v1228_v38 = vpop.f32.mrb[8].mxu1 }
 0xc11   :  { %v8100_v39 = vadd.f32 %v8605_v49, %v1228_v38  ;;  %v7140_v41 = vpop.f32.mrb[9].mxu1 }
 0xc13   :  { %8265 = vtanh.f32 %v8100_v39 }
 0xc15   :  { %v8264_v42 = vpop.eup %8263 }
 0xc16   :  { %1337 = vrot.lane.b32.xlu0 %v8264_v42, %s8482_s0  ;;  %v1330_v45 = vmul.f32 0.5, %v8264_v42 }
 0xc18   :  { %v1331_v46 = vadd.f32 0.5, %v1330_v45 }
 0xc1a   :  { %v1335_v55 = vmul.f32 %v1333_v54, %v1331_v46 }
 0xc1d   :  { %v8266_v43 = vpop.eup %8265 }
 0xc1e   :  { %1238 = vrot.lane.b32.xlu1 %v8266_v43, %s8482_s0  ;;  %v1234_v50 = vmul.f32 0.5, %v8266_v43 }
 0xc20   :  { %v1235_v51 = vadd.f32 0.5, %v1234_v50 }
 0xc22   :  { %v1236_v58 = vmul.f32 %v1235_v51, %v975_v23 }
 0xc88   :  { %v1338_v47 = vpop.permute.xlu0 %1337 }
 0xc89   :  { %v1340_v48 = vmul.f32 %v1338_v47, %v1331_v46 }
 0xc8b   :  { %1342 = vrot.lane.b32.xlu0 %v1340_v48, %s8483_s13 }
 0xc90   :  { %v1239_v52 = vpop.permute.xlu1 %1238 }
 0xc91   :  { %v1241_v53 = vmul.f32 %v1239_v52, %v1235_v51 }
 0xc93   :  { %1243 = vrot.lane.b32.xlu1 %v1241_v53, %s8483_s13 }
 0xcfd   :  { %v1343_v56 = vpop.permute.xlu0 %1342 }
 0xcfe   :  { %v1345_v57 = vadd.f32 %v1343_v56, %v1335_v55 }
 0xd00   :  { %8267 = vtanh.f32 %v1345_v57  ;;  %v1603_v27 = vrot.slane %v1345_v57, 6 }
 0xd05   :  { %v1244_v59 = vpop.permute.xlu1 %1243 }
 0xd06   :  { %v1246_v60 = vadd.f32 %v1244_v59, %v1236_v58 }
 0xd08   :  { %8269 = vtanh.f32 %v1246_v60 }
 0xd0a   :  { %v8268_v61 = vpop.eup %8267 }
 0xd0b   :  { %1348 = vrot.lane.b32.xlu0 %v8268_v61, %s8482_s0 }
 0xd12   :  { %v8270_v62 = vpop.eup %8269 }
 0xd13   :  { %1249 = vrot.lane.b32.xlu1 %v8270_v62, %s8482_s0 }
 0xd7d   :  { %v1349_v63 = vpop.permute.xlu0 %1348 }
 0xd7e   :  { %v1351_v2 = vmul.f32 %v1349_v63, %v1331_v46 }
 0xd80   :  { %1353 = vrot.lane.b32.xlu0 %v1351_v2, %s8483_s13 }
 0xd85   :  { %v1250_v3 = vpop.permute.xlu1 %1249 }
 0xd86   :  { %v1252_v4 = vmul.f32 %v1250_v3, %v1235_v51 }
 0xd88   :  { %1254 = vrot.lane.b32.xlu1 %v1252_v4, %s8483_s13 }
 0xdf2   :  { %v1354_v5 = vpop.permute.xlu0 %1353 }
 0xdf3   :  { %7161 = vmatmul.mubr.msk.f32.vlgmr.msra.gmra.mrb[10].mxu0 %vm174_vm2, %v1354_v5  ;;  %7183 = vmatmul.mubr.msk.f32.vlgmr.msra.gmra.mrb[10].mxu1 %vm174_vm2, %v1354_v5 }
 0xdf4   :  { %7783 = vmatpush3.bf16.msra.mxu0 %v8579_v40  ;;  %7171 = vmatprep.mubr.msk.f32.mxu0 %vm8480_vm0, %v8481_v1 }
 0xdf5   :  { %7784 = vmatprep.subr.bf16.mxu0 %v8479_v0  ;;  %7795 = vmatpush3.bf16.msra.mxu1 %v8569_v32 }
 0xdf6   :  { %7796 = vmatprep.subr.bf16.mxu1 %v8479_v0  ;;  %7193 = vmatprep.mubr.msk.f32.mxu1 %vm8480_vm0, %v8481_v1 }
 0xdf8   :  { %7786 = vmatpush3.bf16.msra.mxu0 %v8584_v44 }
 0xdf9   :  { %7805 = vmatprep.subr.bf16.mxu0 %v8479_v0  ;;  %7798 = vmatpush3.bf16.msra.mxu1 %v8572_v34 }
 0xdfa   :  { %v1255_v6 = vpop.permute.xlu1 %1254  ;;  %7799 = vmatprep.subr.bf16.mxu1 %v8479_v0 }
 0xdfb   :  { %1257 = vst.msk [vmem:[#allocation2 + $0x6] sm:$0x3] %vm443_vm3, %v1255_v6  ;;  %7172 = vmatmul.mubr.msk.f32.vlgmr.msra.gmra.mrb[10].mxu0 %vm174_vm2, %v1255_v6 }
 0xdfc   :  { %7807 = vmatpush3.bf16.msra.mxu0 %v8536_v8  ;;  %7215 = vmatprep.mubr.msk.f32.mxu0 %vm8480_vm0, %v8481_v1 }
 0xdfd   :  { %7808 = vmatprep.subr.bf16.mxu0 %v8479_v0 }
 0xe00   :  { %7810 = vmatpush3.bf16.msra.mxu0 %v8543_v12 }
 0xe01   :  { %7811 = vmatprep.subr.bf16.mxu0 %v8479_v0 }
 0xec6   :  { %v1591_v7 = vpop.f32.mrb[10].mxu1 }
 0xec7   :  { %v1596_v9 = vrot.slane %v1591_v7, 6  ;;  %v7184_v10 = vpop.f32.mrb[11].mxu1 }
 0xec9   :  { %v1598_v11 = vadd.f32 %v1596_v9, %v8559_v15 }
 0xecb   :  { %8271 = vtanh.f32 %v1598_v11 }
 0xece   :  { %v1495_v17 = vpop.f32.mrb[10].mxu0 }
 0xecf   :  { %v8101_v13 = vadd.f32 %v8605_v49, %v1495_v17  ;;  %v7173_v14 = vpop.f32.mrb[11].mxu0 }
 0xed1   :  { %8273 = vtanh.f32 %v8101_v13 }
 0xed5   :  { %v8272_v16 = vpop.eup %8271 }
 0xed6   :  { %1607 = vrot.lane.b32.xlu0 %v8272_v16, %s8482_s0  ;;  %v1600_v19 = vmul.f32 0.5, %v8272_v16 }
 0xed8   :  { %v1601_v20 = vadd.f32 0.5, %v1600_v19 }
 0xeda   :  { %v1605_v28 = vmul.f32 %v1603_v27, %v1601_v20 }
 0xedb   :  { %v8274_v18 = vpop.eup %8273 }
 0xedc   :  { %1505 = vrot.lane.b32.xlu1 %v8274_v18, %s8482_s0  ;;  %v1501_v23 = vmul.f32 0.5, %v8274_v18 }
 0xede   :  { %v1502_v24 = vadd.f32 0.5, %v1501_v23 }
 0xee0   :  { %v1503_v31 = vmul.f32 %v1502_v24, %v1246_v60 }
 0xf48   :  { %v1608_v21 = vpop.permute.xlu0 %1607 }
 0xf49   :  { %v1610_v22 = vmul.f32 %v1608_v21, %v1601_v20 }
 0xf4b   :  { %1612 = vrot.lane.b32.xlu0 %v1610_v22, %s8483_s13 }
 0xf4e   :  { %v1506_v25 = vpop.permute.xlu1 %1505 }
 0xf4f   :  { %v1508_v26 = vmul.f32 %v1506_v25, %v1502_v24 }
 0xf51   :  { %1510 = vrot.lane.b32.xlu1 %v1508_v26, %s8483_s13 }
 0xfbd   :  { %v1613_v29 = vpop.permute.xlu0 %1612 }
 0xfbe   :  { %v8753_v30 = vadd.f32 %v1613_v29, %v1605_v28 }
 0xfc0   :  { %8275 = vtanh.f32 %v8753_v30  ;;  %v1874_v63 = vrot.slane %v8753_v30, 6 }
 0xfc3   :  { %v1511_v33 = vpop.permute.xlu1 %1510 }
 0xfc4   :  { %v1513_v35 = vadd.f32 %v1511_v33, %v1503_v31 }
 0xfc6   :  { %8277 = vtanh.f32 %v1513_v35 }
 0xfca   :  { %v8276_v36 = vpop.eup %8275 }
 0xfcb   :  { %1618 = vrot.lane.b32.xlu0 %v8276_v36, %s8482_s0 }
 0xfd0   :  { %v8278_v37 = vpop.eup %8277 }
 0xfd1   :  { %1516 = vrot.lane.b32.xlu1 %v8278_v37, %s8482_s0 }
0x103d   :  { %v1619_v38 = vpop.permute.xlu0 %1618 }
0x103e   :  { %v1621_v39 = vmul.f32 %v1619_v38, %v1601_v20  ;;  %v2338_v20 = vld [vmem:[#allocation2] sm:$0xff] }
0x1040   :  { %v1623_v41 = vrot.slane %v1621_v39, 2 }
0x1042   :  { %1624 = vrot.lane.b32.xlu0 %v1623_v41, %s8483_s13 }
0x1043   :  { %v1517_v42 = vpop.permute.xlu1 %1516 }
0x1044   :  { %v1519_v43 = vmul.f32 %v1517_v42, %v1502_v24 }
0x1046   :  { %1521 = vrot.lane.b32.xlu1 %v1519_v43, %s8483_s13 }
0x10b4   :  { %v1625_v45 = vpop.permute.xlu0 %1624 }
0x10b5   :  { %7194 = vmatmul.mubr.msk.f32.vlgmr.msra.gmra.mrb[12].mxu1 %vm174_vm2, %v1625_v45  ;;  %7216 = vmatmul.mubr.msk.f32.vlgmr.msra.gmra.mrb[12].mxu0 %vm174_vm2, %v1625_v45 }
0x10b6   :  { %7801 = vmatpush3.bf16.msra.mxu1 %v8579_v40  ;;  %7204 = vmatprep.mubr.msk.f32.mxu1 %vm8480_vm0, %v8481_v1 }
0x10b7   :  { %7802 = vmatprep.subr.bf16.mxu1 %v8479_v0  ;;  %7813 = vmatpush3.bf16.msra.mxu0 %v8569_v32 }
0x10b8   :  { %v1522_v46 = vpop.permute.xlu1 %1521  ;;  %7814 = vmatprep.subr.bf16.mxu0 %v8479_v0  ;;  %7226 = vmatprep.mubr.msk.f32.mxu0 %vm8480_vm0, %v8481_v1 }
0x10b9   :  { %1524 = vst.msk [vmem:[#allocation2 + $0x8] sm:$0x3] %vm443_vm3, %v1522_v46 }
0x10ba   :  { %7804 = vmatpush3.bf16.msra.mxu1 %v8584_v44 }
0x10bb   :  { %7823 = vmatprep.subr.bf16.mxu1 %v8479_v0  ;;  %7816 = vmatpush3.bf16.msra.mxu0 %v8572_v34 }
0x10bc   :  { %7817 = vmatprep.subr.bf16.mxu0 %v8479_v0 }
0x10bd   :  { %7205 = vmatmul.mubr.msk.f32.vlgmr.msra.gmra.mrb[12].mxu1 %vm174_vm2, %v1522_v46 }
0x10be   :  { %7825 = vmatpush3.bf16.msra.mxu1 %v8536_v8  ;;  %7248 = vmatprep.mubr.msk.f32.mxu1 %vm8480_vm0, %v8481_v1 }
0x10bf   :  { %7826 = vmatprep.subr.bf16.mxu1 %v8479_v0 }
0x10c2   :  { %7828 = vmatpush3.bf16.msra.mxu1 %v8543_v12 }
0x10c3   :  { %7829 = vmatprep.subr.bf16.mxu1 %v8479_v0 }
0x1188   :  { %v1862_v47 = vpop.f32.mrb[12].mxu0 }
0x1189   :  { %v1867_v48 = vrot.slane %v1862_v47, 4  ;;  %v7217_v50 = vpop.f32.mrb[13].mxu0 }
0x118b   :  { %v1869_v51 = vadd.f32 %v1867_v48, %v8559_v15 }
0x118d   :  { %8279 = vtanh.f32 %v1869_v51 }
0x1190   :  { %v1766_v52 = vpop.f32.mrb[12].mxu1 }
0x1191   :  { %v8102_v53 = vadd.f32 %v8605_v49, %v1766_v52  ;;  %v7206_v54 = vpop.f32.mrb[13].mxu1 }
0x1193   :  { %8281 = vtanh.f32 %v8102_v53 }
0x1197   :  { %v8280_v8 = vpop.eup %8279 }
0x1198   :  { %1878 = vrot.lane.b32.xlu0 %v8280_v8, %s8482_s0  ;;  %v1871_v12 = vmul.f32 0.5, %v8280_v8 }
0x119a   :  { %v1872_v56 = vadd.f32 0.5, %v1871_v12 }
0x119c   :  { %v1876_v2 = vmul.f32 %v1874_v63, %v1872_v56 }
0x119d   :  { %v8282_v55 = vpop.eup %8281 }
0x119e   :  { %1776 = vrot.lane.b32.xlu1 %v8282_v55, %s8482_s0  ;;  %v1772_v59 = vmul.f32 0.5, %v8282_v55 }
0x11a0   :  { %v1773_v60 = vadd.f32 0.5, %v1772_v59 }
0x11a2   :  { %v1774_v5 = vmul.f32 %v1773_v60, %v1513_v35 }
0x120a   :  { %v1879_v57 = vpop.permute.xlu0 %1878 }
0x120b   :  { %v1881_v58 = vmul.f32 %v1879_v57, %v1872_v56 }
0x120d   :  { %1883 = vrot.lane.b32.xlu0 %v1881_v58, %s8483_s13 }
0x1210   :  { %v1777_v61 = vpop.permute.xlu1 %1776 }
0x1211   :  { %v1779_v62 = vmul.f32 %v1777_v61, %v1773_v60 }
0x1213   :  { %1781 = vrot.lane.b32.xlu1 %v1779_v62, %s8483_s13 }
0x127f   :  { %v1884_v3 = vpop.permute.xlu0 %1883 }
0x1280   :  { %v1886_v4 = vadd.f32 %v1884_v3, %v1876_v2  ;;  %v8842_v2 = vld [vmem:[#allocation5 + $0x8] sm:$0xff] }
0x1282   :  { %8283 = vtanh.f32 %v1886_v4  ;;  %v2145_v37 = vrot.slane %v1886_v4, 6 }
0x1285   :  { %v1782_v6 = vpop.permute.xlu1 %1781 }
0x1286   :  { %v1784_v7 = vadd.f32 %v1782_v6, %v1774_v5  ;;  %v8848_v5 = vld [vmem:[#allocation5 + $0x10] sm:$0xff]  ;;  %v8850_v6 = vld [vmem:[#allocation5 + $0x18] sm:$0xff] }
0x1288   :  { %8285 = vtanh.f32 %v1784_v7 }
0x128c   :  { %v8284_v9 = vpop.eup %8283 }
0x128d   :  { %1889 = vrot.lane.b32.xlu0 %v8284_v9, %s8482_s0  ;;  %v7845_v9 = vpack.c.bf16 %v8850_v6, %v8848_v5 }
0x1292   :  { %v8286_v10 = vpop.eup %8285 }
0x1293   :  { %1787 = vrot.lane.b32.xlu1 %v8286_v10, %s8482_s0 }
0x12ff   :  { %v1890_v11 = vpop.permute.xlu0 %1889 }
0x1300   :  { %v1892_v17 = vmul.f32 %v1890_v11, %v1872_v56 }
0x1302   :  { %v1894_v13 = vrot.slane %v1892_v17, 4 }
0x1304   :  { %1895 = vrot.lane.b32.xlu0 %v1894_v13, %s8483_s13 }
0x1305   :  { %v1788_v14 = vpop.permute.xlu1 %1787 }
0x1306   :  { %v1790_v16 = vmul.f32 %v1788_v14, %v1773_v60  ;;  %v2425_v14 = vlaneseq }
0x1308   :  { %1792 = vrot.lane.b32.xlu1 %v1790_v16, %s8483_s13  ;;  %v8863_v16 = vand.u32 127, %v2425_v14 }
0x130a   :  { %vm2564_vm4 = vcmp.ge.s32.totalorder %v8863_v16, 4  ;;  %vm2565_vm5 = vcmp.lt.s32.totalorder %v8863_v16, 8  ;;  %vm2438_vm6 = vcmp.lt.s32.totalorder %v8863_v16, 4  ;;  %vm2859_vm8 = vcmp.ge.s32.totalorder %v8863_v16, 8 }
0x130b   :  { %vm2566_vm7 = vmand %vm2564_vm4, %vm2565_vm5  ;;  %vm2860_vm9 = vcmp.lt.s32.totalorder %v8863_v16, 12  ;;  %vm3275_vm12 = vcmp.ge.s32.totalorder %v8863_v16, 16  ;;  %vm3276_vm13 = vcmp.lt.s32.totalorder %v8863_v16, 20  ;;  %vm3483_vm15 = vcmp.ge.s32.totalorder %v8863_v16, 20 }
0x130c   :  { %vm2861_vm10 = vmand %vm2859_vm8, %vm2860_vm9  ;;  %vm3484_vm4 = vcmp.lt.s32.totalorder %v8863_v16, 24 }
0x130d   :  { %vm3277_vm14 = vmand %vm3275_vm12, %vm3276_vm13  ;;  %vm3067_vm12 = vcmp.ge.s32.totalorder %v8863_v16, 12  ;;  %vm3068_vm13 = vcmp.lt.s32.totalorder %v8863_v16, 16 }
0x130e   :  { %vm3485_vm5 = vmand %vm3483_vm15, %vm3484_vm4  ;;  %vm3899_vm15 = vcmp.ge.s32.totalorder %v8863_v16, 28  ;;  %vm3900_vm4 = vcmp.lt.s32.totalorder %v8863_v16, 32 }
0x1376   :  { %v1896_v18 = vpop.permute.xlu0 %1895 }
0x1377   :  { %7227 = vmatmul.mubr.msk.f32.vlgmr.msra.gmra.mrb[14].mxu0 %vm174_vm2, %v1896_v18  ;;  %7249 = vmatmul.mubr.msk.f32.vlgmr.msra.gmra.mrb[14].mxu1 %vm174_vm2, %v1896_v18  ;;  %v8869_v18 = vsel %vm2438_vm6, 1.0, %v8481_v1  ;;  %vm3691_vm6 = vcmp.ge.s32.totalorder %v8863_v16, 24 }
0x1378   :  { %7819 = vmatpush3.bf16.msra.mxu0 %v8579_v40  ;;  %7237 = vmatprep.mubr.msk.f32.mxu0 %vm8480_vm0, %v8481_v1 }
0x1379   :  { %7820 = vmatprep.subr.bf16.mxu0 %v8479_v0  ;;  %7831 = vmatpush3.bf16.msra.mxu1 %v8569_v32 }
0x137a   :  { %v1793_v19 = vpop.permute.xlu1 %1792  ;;  %7832 = vmatprep.subr.bf16.mxu1 %v8479_v0  ;;  %7259 = vmatprep.mubr.msk.f32.mxu1 %vm8480_vm0, %v8481_v1 }
0x137b   :  { %1795 = vst.msk [vmem:[#allocation2 + $0xa] sm:$0x3] %vm443_vm3, %v1793_v19 }
0x137c   :  { %7822 = vmatpush3.bf16.msra.mxu0 %v8584_v44 }
0x137d   :  { %7834 = vmatpush3.bf16.msra.mxu1 %v8572_v34 }
0x137e   :  { %7835 = vmatprep.subr.bf16.mxu1 %v8479_v0 }
0x137f   :  { %7238 = vmatmul.mubr.msk.f32.vlgmr.msra.gmra.mrb[14].mxu0 %vm174_vm2, %v1793_v19  ;;  %v8872_v19 = vsel %vm2566_vm7, 1.0, %v8481_v1  ;;  %vm3692_vm7 = vcmp.lt.s32.totalorder %v8863_v16, 28 }
0x1380   :  { %7281 = vmatprep.mubr.msk.f32.mxu0 %vm174_vm2, %v2338_v20  ;;  %v8874_v20 = vld [vmem:[#allocation5 + $0x20] ss:$0 sm:$0xff]  ;;  %vm3693_vm8 = vmand %vm3691_vm6, %vm3692_vm7 }
0x144a   :  { %v2133_v32 = vpop.f32.mrb[14].mxu1 }
0x144b   :  { %v2138_v21 = vrot.slane %v2133_v32, 2  ;;  %v7250_v22 = vpop.f32.mrb[15].mxu1 }
0x144c   :  { %v2569_v22 = vmul.f32 0.5, %v8872_v19 }
0x144d   :  { %v2140_v23 = vadd.f32 %v2138_v21, %v8559_v15  ;;  %v2442_v21 = vmul.f32 0.5, %v8869_v18 }
0x144f   :  { %8287 = vtanh.f32 %v2140_v23 }
0x1452   :  { %v2037_v24 = vpop.f32.mrb[14].mxu0 }
0x1453   :  { %v8103_v25 = vadd.f32 %v8605_v49, %v2037_v24  ;;  %v7239_v26 = vpop.f32.mrb[15].mxu0 }
0x1455   :  { %8289 = vtanh.f32 %v8103_v25 }
0x1459   :  { %v8288_v27 = vpop.eup %8287 }
0x145a   :  { %2149 = vrot.lane.b32.xlu0 %v8288_v27, %s8482_s0  ;;  %v2142_v28 = vmul.f32 0.5, %v8288_v27 }
0x145c   :  { %v2143_v29 = vadd.f32 0.5, %v2142_v28 }
0x145e   :  { %v2147_v38 = vmul.f32 %v2145_v37, %v2143_v29 }
0x145f   :  { %v8290_v34 = vpop.eup %8289 }
0x1460   :  { %2047 = vrot.lane.b32.xlu1 %v8290_v34, %s8482_s0  ;;  %v2043_v33 = vmul.f32 0.5, %v8290_v34 }
0x1462   :  { %v2044_v15 = vadd.f32 0.5, %v2043_v33 }
0x1464   :  { %v2045_v42 = vmul.f32 %v2044_v15, %v1784_v7  ;;  %v8230_v7 = vpack.i.bf16 %v8850_v6, %v8848_v5 }
0x14cc   :  { %v2150_v30 = vpop.permute.xlu0 %2149 }
0x14cd   :  { %v2152_v31 = vmul.f32 %v2150_v30, %v2143_v29 }
0x14cf   :  { %2154 = vrot.lane.b32.xlu0 %v2152_v31, %s8483_s13 }
0x14d2   :  { %v2048_v35 = vpop.permute.xlu1 %2047 }
0x14d3   :  { %v2050_v36 = vmul.f32 %v2048_v35, %v2044_v15 }
0x14d5   :  { %2052 = vrot.lane.b32.xlu1 %v2050_v36, %s8483_s13 }
0x1541   :  { %v2155_v39 = vpop.permute.xlu0 %2154 }
0x1542   :  { %v8815_v41 = vadd.f32 %v2155_v39, %v2147_v38  ;;  %v8927_v39 = vsel %vm3277_vm14, 1.0, %v8481_v1  ;;  %vm3069_vm14 = vmand %vm3067_vm12, %vm3068_vm13 }
0x1544   :  { %8291 = vtanh.f32 %v8815_v41 }
0x1547   :  { %v2053_v43 = vpop.permute.xlu1 %2052 }
0x1548   :  { %v2055_v45 = vadd.f32 %v2053_v43, %v2045_v42  ;;  %v3280_v42 = vmul.f32 0.5, %v8927_v39 }
0x154a   :  { %8293 = vtanh.f32 %v2055_v45 }
0x154e   :  { %v8292_v46 = vpop.eup %8291 }
0x154f   :  { %2160 = vrot.lane.b32.xlu0 %v8292_v46, %s8482_s0  ;;  %v8943_v46 = vsel %vm3485_vm5, 1.0, %v8481_v1  ;;  %vm3901_vm5 = vmand %vm3899_vm15, %vm3900_vm4 }
0x1554   :  { %v8294_v47 = vpop.eup %8293 }
0x1555   :  { %2058 = vrot.lane.b32.xlu1 %v8294_v47, %s8482_s0  ;;  %v3488_v47 = vmul.f32 0.5, %v8943_v46 }
0x15c1   :  { %v2161_v48 = vpop.permute.xlu0 %2160 }
0x15c2   :  { %v2163_v50 = vmul.f32 %v2161_v48, %v2143_v29 }
0x15c4   :  { %v2165_v51 = vrot.slane %v2163_v50, 6 }
0x15c6   :  { %2166 = vrot.lane.b32.xlu0 %v2165_v51, %s8483_s13  ;;  %v8959_v51 = vsel %vm3693_vm8, 1.0, %v8481_v1 }
0x15c7   :  { %v2059_v52 = vpop.permute.xlu1 %2058 }
0x15c8   :  { %v2061_v53 = vmul.f32 %v2059_v52, %v2044_v15  ;;  %v8907_v15 = vsel %vm2861_vm10, 1.0, %v8481_v1  ;;  %v3696_v52 = vmul.f32 0.5, %v8959_v51 }
0x15c9   :  { %v2864_v35 = vmul.f32 0.5, %v8907_v15 }
0x15ca   :  { %2063 = vrot.lane.b32.xlu1 %v2061_v53, %s8483_s13 }
0x1638   :  { %v8822_v54 = vpop.permute.xlu0 %2166 }
0x1639   :  { %7260 = vmatmul.mubr.msk.f32.vlgmr.msra.gmra.mrb[16].mxu1 %vm174_vm2, %v8822_v54 }
0x163a   :  { %7837 = vmatpush3.bf16.msra.mxu1 %v8579_v40  ;;  %7270 = vmatprep.mubr.msk.f32.mxu1 %vm8480_vm0, %v8481_v1 }
0x163b   :  { %7838 = vmatprep.subr.bf16.mxu1 %v8479_v0 }
0x163c   :  { %v2064_v8 = vpop.permute.xlu1 %2063 }
0x163d   :  { %2066 = vst.msk [vmem:[#allocation2 + $0xc] sm:$0x3] %vm443_vm3, %v2064_v8 }
0x163e   :  { %7840 = vmatpush3.bf16.msra.mxu1 %v8584_v44 }
0x1641   :  { %7271 = vmatmul.mubr.msk.f32.vlgmr.msra.gmra.mrb[16].mxu1 %vm174_vm2, %v2064_v8 }
0x1714   :  { %v2308_v55 = vpop.f32.mrb[16].mxu1 }
0x1715   :  { %v8104_v12 = vadd.f32 %v8605_v49, %v2308_v55  ;;  %v7272_v56 = vpop.f32.mrb[17].mxu1  ;;  %v8840_v49 = vld [vmem:[#allocation5] sm:$0xff] }
0x1716   :  { %v7841_v3 = vpack.c.bf16 %v8842_v2, %v8840_v49  ;;  %v8225_v4 = vpack.i.bf16 %v8842_v2, %v8840_v49 }
0x1717   :  { %8295 = vtanh.f32 %v8104_v12  ;;  %v2426_v12 = vshrl.u32 %v2425_v14, 7 }
0x1718   :  { %7842 = vmatprep.subr.bf16.mxu0 %v7841_v3 }
0x1719   :  { %7844 = vmatpush3.bf16.msra.mxu0 %v7841_v3  ;;  %v2427_v56 = vadd.s32 8, %v2426_v12 }
0x171a   :  { %7846 = vmatprep.subr.bf16.mxu0 %v7845_v9 }
0x171d   :  { %7848 = vmatpush3.bf16.msra.mxu0 %v7845_v9 }
0x1721   :  { %v8296_v57 = vpop.eup %8295 }
0x1722   :  { %2318 = vrot.lane.b32.xlu0 %v8296_v57, %s8482_s0  ;;  %v2314_v40 = vmul.f32 0.5, %v8296_v57  ;;  %v2431_v57 = vand.u32 1, %v2427_v56 }
0x1724   :  { %v2315_v58 = vadd.f32 0.5, %v2314_v40  ;;  %v2432_v40 = vand.u32 1, %v8863_v16 }
0x1726   :  { %v2316_v61 = vmul.f32 %v2315_v58, %v2055_v45  ;;  %vm2434_vm9 = vcmp.eq.s32.totalorder %v2431_v57, %v2432_v40 }
0x1794   :  { %v2319_v59 = vpop.permute.xlu0 %2318 }
0x1795   :  { %v2321_v60 = vmul.f32 %v2319_v59, %v2315_v58  ;;  %v8485_v59 = vmov -1e+30  }
0x1797   :  { %2323 = vrot.lane.b32.xlu1 %v2321_v60, %s8483_s13  ;;  %v8980_v60 = vsel %vm2434_vm9, 0.0, %v8485_v59 }
0x1809   :  { %v2324_v62 = vpop.permute.xlu1 %2323 }
0x180a   :  { %v8836_v63 = vadd.f32 %v2324_v62, %v2316_v61 }
0x180c   :  { %8297 = vtanh.f32 %v8836_v63 }
0x1816   :  { %v8298_v44 = vpop.eup %8297 }
0x1817   :  { %2329 = vrot.lane.b32.xlu0 %v8298_v44, %s8482_s0 }
0x1889   :  { %v2330_v10 = vpop.permute.xlu0 %2329 }
0x188a   :  { %v2332_v11 = vmul.f32 %v2330_v10, %v2315_v58  ;;  %v2430_v58 = vand.u32 1, %v2426_v12 }
0x188c   :  { %2334 = vrot.lane.b32.xlu1 %v2332_v11, %s8483_s13  ;;  %vm2433_vm10 = vcmp.eq.s32.totalorder %v2430_v58, %v2432_v40 }
0x188d   :  { %v8982_v61 = vsel %vm2433_vm10, 0.0, %v8485_v59 }
0x18fe   :  { %v8857_v17 = vpop.permute.xlu1 %2334 }
0x18ff   :  { %2337 = vst.msk [vmem:[#allocation2 + $0xe] sm:$0x3] %vm443_vm3, %v8857_v17 }
0x1906   :  { %v2339_v13 = vld [vmem:[#allocation2 + $0x8] sm:$0xff] }
0x1907   :  { %7282 = vmatmul.mubr.msk.f32.vlgmr.msra.gmra.mrb[16].mxu0 %vm174_vm2, %v2339_v13 }
0x19da   :  { %v7283_v32 = vpop.f32.mrb[16].mxu0 }
0x19db   :  { %v8879_v23 = vadd.f32 %v7283_v32, %v8874_v20  ;;  %v2416_v24 = vpop.f32.mrb[17].mxu0 }
0x19dc   :  { %v8882_v25 = vadd.f32 %v8874_v20, %v2416_v24 }
0x19dd   :  { %v2444_v36 = vmul.f32 %v2442_v21, %v8879_v23  ;;  %v2571_v37 = vmul.f32 %v2569_v22, %v8879_v23  ;;  %v2866_v43 = vmul.f32 %v2864_v35, %v8879_v23  ;;  %v3282_v48 = vmul.f32 %v3280_v42, %v8879_v23 }
0x19de   :  { %v8170_v26 = vpack.i.bf16 %v8879_v23, %v8882_v25  ;;  %v2443_v27 = vmul.f32 %v2442_v21, %v8882_v25  ;;  %v2570_v34 = vmul.f32 %v2569_v22, %v8882_v25  ;;  %v2865_v38 = vmul.f32 %v2864_v35, %v8882_v25 }
0x19df   :  { %v3281_v45 = vmul.f32 %v3280_v42, %v8882_v25  ;;  %v3489_v50 = vmul.f32 %v3488_v47, %v8882_v25  ;;  %v3490_v53 = vmul.f32 %v3488_v47, %v8879_v23  ;;  %v3697_v8 = vmul.f32 %v3696_v52, %v8882_v25 }
0x19e0   :  { %8171 = vrot.lane.b32.xlu0 %v8170_v26, %s8484_s14  ;;  %7288 = vmatprep.mubr.msk.f32.mxu0 %vm174_vm2, %v2443_v27  ;;  %v3698_v55 = vmul.f32 %v3696_v52, %v8879_v23 }
0x19e1   :  { %7295 = vmatprep.mubr.msk.f32.mxu1 %vm174_vm2, %v2570_v34 }
0x1a52   :  { %v8172_v28 = vpop.permute.xlu0 %8171 }
0x1a53   :  { %v8174_v29 = vunpack.i.h.bf16 %v8172_v28  ;;  %v8173_v30 = vunpack.i.l.bf16 %v8172_v28 }
0x1a55   :  { %v8898_v33 = vpack.c.bf16 %v8174_v29, %v8173_v30 }
0x1a57   :  { %7851 = vmatprep.subr.msk.bf16.mxu0 %vm8894_vm11, %v8898_v33  ;;  %7857 = vmatprep.subr.msk.bf16.mxu1 %vm8894_vm11, %v8898_v33 }
0x1a58   :  { %7854 = vmatpush3.bf16.xpose.msk.msra.mxu0 %vm8894_vm11, %v8898_v33  ;;  %7860 = vmatpush3.bf16.xpose.msk.msra.mxu1 %vm8894_vm11, %v8898_v33 }
0x1a59   :  { %7871 = vmatprep.subr.msk.bf16.mxu1 %vm8894_vm11, %v8898_v33 }
0x1a5f   :  { %7289 = vmatmul.mubr.msk.f32.vlgmr.msra.gmra.mrb[18].mxu0 %vm174_vm2, %v2444_v36  ;;  %7296 = vmatmul.mubr.msk.f32.vlgmr.msra.gmra.mrb[18].mxu1 %vm174_vm2, %v2571_v37 }
0x1a60   :  { %7874 = vmatpush3.bf16.xpose.msk.msra.mxu1 %vm8894_vm11, %v8898_v33  ;;  %7316 = vmatprep.mubr.msk.f32.mxu1 %vm174_vm2, %v2865_v38 }
0x1a61   :  { %7891 = vmatprep.subr.msk.bf16.mxu1 %vm8894_vm11, %v8898_v33 }
0x1a67   :  { %7317 = vmatmul.mubr.msk.f32.vlgmr.msra.gmra.mrb[20].mxu1 %vm174_vm2, %v2866_v43 }
0x1a68   :  { %7894 = vmatpush3.bf16.xpose.msk.msra.mxu1 %vm8894_vm11, %v8898_v33  ;;  %7344 = vmatprep.mubr.msk.f32.mxu1 %vm174_vm2, %v3281_v45 }
0x1a69   :  { %7901 = vmatprep.subr.msk.bf16.mxu1 %vm8894_vm11, %v8898_v33 }
0x1a6f   :  { %7345 = vmatmul.mubr.msk.f32.vlgmr.msra.gmra.mrb[22].mxu1 %vm174_vm2, %v3282_v48 }
0x1a70   :  { %7904 = vmatpush3.bf16.xpose.msk.msra.mxu1 %vm8894_vm11, %v8898_v33  ;;  %7358 = vmatprep.mubr.msk.f32.mxu1 %vm174_vm2, %v3489_v50 }
0x1a71   :  { %7911 = vmatprep.subr.msk.bf16.mxu1 %vm8894_vm11, %v8898_v33 }
0x1a77   :  { %7359 = vmatmul.mubr.msk.f32.vlgmr.msra.gmra.mrb[24].mxu1 %vm174_vm2, %v3490_v53 }
0x1a78   :  { %7914 = vmatpush3.bf16.xpose.msk.msra.mxu1 %vm8894_vm11, %v8898_v33  ;;  %7372 = vmatprep.mubr.msk.f32.mxu1 %vm174_vm2, %v3697_v8 }
0x1a7f   :  { %7373 = vmatmul.mubr.msk.f32.vlgmr.msra.gmra.mrb[26].mxu1 %vm174_vm2, %v3698_v55 }
0x1b32   :  { %v7290_v62 = vpop.f32.mrb[18].mxu0  ;;  %v7297_v44 = vpop.f32.mrb[18].mxu1 }
0x1b33   :  { %v8985_v3 = vadd.f32 %v7297_v44, %v8980_v60  ;;  %v2527_v9 = vpop.f32.mrb[19].mxu0  ;;  %v2644_v10 = vpop.f32.mrb[19].mxu1  ;;  %v2533_v32 = vadd.f32 %v7290_v62, %v8980_v60 }
0x1b34   :  { %v2645_v11 = vadd.f32 %v2644_v10, %v8982_v61  ;;  %v2528_v13 = vadd.f32 %v2527_v9, %v8982_v61 }
0x1b35   :  { %v2656_v14 = vsel %vm92_vm1, %v8985_v3, -inf  ;;  %v2539_v26 = vsel %vm92_vm1, %v2533_v32, -inf }
0x1b36   :  { %2657 = vmax.xlane.f32.xlu0 %v2656_v14  ;;  %v2653_v21 = vsel %vm92_vm1, %v2645_v11, -inf  ;;  %v2536_v22 = vsel %vm92_vm1, %v2528_v13, -inf }
0x1b37   :  { %2654 = vmax.xlane.f32.xlu1 %v2653_v21 }
0x1b3a   :  { %v7318_v24 = vpop.f32.mrb[20].mxu1  ;;  %2537 = vmax.xlane.f32.xlu0 %v2536_v22 }
0x1b3b   :  { %v2945_v27 = vadd.f32 %v7318_v24, %v8980_v60  ;;  %v2939_v34 = vpop.f32.mrb[21].mxu1  ;;  %2540 = vmax.xlane.f32.xlu1 %v2539_v26 }
0x1b3c   :  { %v2940_v28 = vadd.f32 %v2939_v34, %v8982_v61 }
0x1b3d   :  { %v2951_v29 = vsel %vm92_vm1, %v2945_v27, -inf }
0x1b3e   :  { %v2948_v30 = vsel %vm92_vm1, %v2940_v28, -inf }
0x1b3f   :  { %2952 = vmax.xlane.f32.xlu1 %v2951_v29  ;;  %2949 = vmax.xlane.f32.xlu0 %v2948_v30 }
0x1b42   :  { %v8999_v35 = vpop.f32.mrb[22].mxu1 }
0x1b43   :  { %v9001_v36 = vpop.f32.mrb[23].mxu1 }
0x1b4a   :  { %v9003_v37 = vpop.f32.mrb[24].mxu1 }
0x1b4b   :  { %v9005_v38 = vpop.f32.mrb[25].mxu1 }
0x1b50   :  { %2559 = vrot.lane.b32.xlu1 %v8869_v18, %s8482_s0 }
0x1b52   :  { %v9009_v42 = vpop.f32.mrb[26].mxu1 }
0x1b53   :  { %v9011_v43 = vpop.f32.mrb[27].mxu1 }
0x1b54   :  { %2971 = vrot.lane.b32.xlu1 %v8907_v15, %s8482_s0 }
0x1b55   :  { %2676 = vrot.lane.b32.xlu0 %v8872_v19, %s8482_s0 }
0x1bc3   :  { %v2658_v45 = vpop.xlane.xlu0 %2657 }
0x1bc4   :  { %v2655_v47 = vpop.xlane.xlu1 %2654  ;;  %v2660_v21 = vsub.f32 %v8985_v3, %v2658_v45 }
0x1bc5   :  { %v2659_v48 = vsub.f32 %v2645_v11, %v2655_v47 }
0x1bc6   :  { %v2663_v24 = vmul.f32 1.442695, %v2660_v21 }
0x1bc7   :  { %v2538_v50 = vpop.xlane.xlu0 %2537  ;;  %v2661_v8 = vmul.f32 1.442695, %v2659_v48 }
0x1bc8   :  { %v2541_v52 = vpop.xlane.xlu1 %2540  ;;  %v2542_v55 = vsub.f32 %v2528_v13, %v2538_v50 }
0x1bc9   :  { %v2543_v53 = vsub.f32 %v2533_v32, %v2541_v52 }
0x1bca   :  { %v2544_v57 = vmul.f32 1.442695, %v2542_v55 }
0x1bcb   :  { %v2546_v12 = vmul.f32 1.442695, %v2543_v53 }
0x1bcc   :  { %v2953_v18 = vpop.xlane.xlu1 %2952  ;;  %v2950_v56 = vpop.xlane.xlu0 %2949 }
0x1bcd   :  { %8299 = vpow2.f32 %v2546_v12  ;;  %v2955_v40 = vsub.f32 %v2945_v27, %v2953_v18  ;;  %v2954_v26 = vsub.f32 %v2940_v28, %v2950_v56 }
0x1bce   :  { %8301 = vpow2.f32 %v2661_v8 }
0x1bcf   :  { %8303 = vpow2.f32 %v2544_v57  ;;  %v2958_v59 = vmul.f32 1.442695, %v2955_v40  ;;  %v2956_v27 = vmul.f32 1.442695, %v2954_v26 }
0x1bd0   :  { %v2677_v58 = vpop.permute.xlu0 %2676  ;;  %v2560_v34 = vpop.permute.xlu1 %2559 }
0x1bd1   :  { %v2679_v15 = vmul.f32 %v2677_v58, %v8882_v25  ;;  %v2680_v19 = vmul.f32 %v2677_v58, %v8879_v23  ;;  %8305 = vpow2.f32 %v2958_v59  ;;  %v2562_v29 = vmul.f32 %v2560_v34, %v8882_v25 }
0x1bd2   :  { %8307 = vpow2.f32 %v2663_v24  ;;  %v2563_v30 = vmul.f32 %v2560_v34, %v8879_v23 }
0x1bd3   :  { %v8175_v62 = vpack.i.bf16 %v2680_v19, %v2679_v15  ;;  %8309 = vpow2.f32 %v2956_v27 }
0x1bd4   :  { %v8180_v50 = vpack.i.bf16 %v2563_v30, %v2562_v29  ;;  %v2972_v28 = vpop.permute.xlu1 %2971 }
0x1bd5   :  { %8176 = vrot.lane.b32.xlu1 %v8175_v62, %s8482_s0  ;;  %v2974_v45 = vmul.f32 %v2972_v28, %v8882_v25  ;;  %v2975_v53 = vmul.f32 %v2972_v28, %v8879_v23 }
0x1bd7   :  { %v9020_v44 = vpop.eup %8299  ;;  %v8185_v8 = vpack.i.bf16 %v2975_v53, %v2974_v45 }
0x1bd8   :  { %v2551_v9 = vsel %vm92_vm1, %v9020_v44, 0.0  ;;  %v8302_v10 = vpop.eup %8301 }
0x1bd9   :  { %2552 = vadd.xlane.f32.xlu0 %v2551_v9  ;;  %v2665_v11 = vsel %vm92_vm1, %v8302_v10, 0.0  ;;  %v8304_v13 = vpop.eup %8303 }
0x1bda   :  { %v2548_v14 = vsel %vm92_vm1, %v8304_v13, 0.0 }
0x1bdb   :  { %v9026_v32 = vpop.eup %8305 }
0x1bdc   :  { %v2963_v22 = vsel %vm92_vm1, %v9026_v32, 0.0  ;;  %v8308_v47 = vpop.eup %8307 }
0x1bdd   :  { %2666 = vadd.xlane.f32.xlu0 %v2665_v11  ;;  %v2668_v48 = vsel %vm92_vm1, %v8308_v47, 0.0  ;;  %v8310_v52 = vpop.eup %8309 }
0x1bde   :  { %v2960_v3 = vsel %vm92_vm1, %v8310_v52, 0.0 }
0x1be1   :  { %2549 = vadd.xlane.f32.xlu0 %v2548_v14 }
0x1be5   :  { %2964 = vadd.xlane.f32.xlu0 %v2963_v22 }
0x1bf9   :  { %2669 = vadd.xlane.f32.xlu1 %v2668_v48 }
0x1bfb   :  { %8181 = vrot.lane.b32.xlu0 %v8180_v50, %s8482_s0 }
0x1bfd   :  { %2961 = vadd.xlane.f32.xlu1 %v2960_v3 }
0x1c0e   :  { %8186 = vrot.lane.b32.xlu1 %v8185_v8, %s8482_s0 }
0x1c47   :  { %v8177_v55 = vpop.permute.xlu1 %8176 }
0x1c48   :  { %v8179_v12 = vunpack.i.h.bf16 %v8177_v55  ;;  %v8178_v18 = vunpack.i.l.bf16 %v8177_v55 }
0x1c4a   :  { %v7861_v56 = vpack.c.bf16 %v8179_v12, %v8178_v18 }
0x1c4c   :  { %7862 = vmatprep.subr.bf16.mxu0 %v7861_v56 }
0x1c4d   :  { %7864 = vmatpush3.bf16.msra.mxu0 %v7861_v56  ;;  %v3356_v56 = vadd.f32 %v9001_v36, %v8982_v61 }
0x1c66   :  { %v2553_v57 = vpop.xlane.xlu0 %2552 }
0x1c6a   :  { %v2667_v40 = vpop.xlane.xlu0 %2666 }
0x1c6b   :  { %8311 = vrcp.f32 %v2667_v40  ;;  %v3361_v40 = vadd.f32 %v8999_v35, %v8980_v60 }
0x1c6d   :  { %v3367_v36 = vsel %vm92_vm1, %v3361_v40, -inf }
0x1c6e   :  { %v2550_v58 = vpop.xlane.xlu0 %2549 }
0x1c6f   :  { %8313 = vrcp.f32 %v2550_v58 }
0x1c72   :  { %v2965_v15 = vpop.xlane.xlu0 %2964 }
0x1c75   :  { %v8312_v19 = vpop.eup %8311 }
0x1c76   :  { %v8182_v59 = vpop.permute.xlu0 %8181  ;;  %v2673_v62 = vmul.f32 %v8312_v19, %v8302_v10  ;;  %v3364_v19 = vsel %vm92_vm1, %v3356_v56, -inf }
0x1c77   :  { %v8184_v9 = vunpack.i.h.bf16 %v8182_v59  ;;  %v8183_v11 = vunpack.i.l.bf16 %v8182_v59  ;;  %v3569_v59 = vadd.f32 %v9003_v37, %v8980_v60 }
0x1c78   :  { %7302 = vmatprep.mubr.msk.f32.mxu0 %vm92_vm1, %v2673_v62  ;;  %v3772_v62 = vadd.f32 %v9011_v43, %v8982_v61 }
0x1c79   :  { %v7865_v14 = vpack.c.bf16 %v8184_v9, %v8183_v11  ;;  %v8314_v26 = vpop.eup %8313  ;;  %v3777_v9 = vadd.f32 %v9009_v42, %v8980_v60 }
0x1c7a   :  { %v2556_v48 = vmul.f32 %v8314_v26, %v8304_v13  ;;  %v6602_v13 = vsel %vm3069_vm14, 1.0, %v8481_v1  ;;  %v3780_v11 = vsel %vm92_vm1, %v3772_v62, -inf }
0x1c7b   :  { %7866 = vmatprep.subr.bf16.mxu0 %v7865_v14  ;;  %v3072_v53 = vmul.f32 0.5, %v6602_v13  ;;  %v3783_v37 = vsel %vm92_vm1, %v3777_v9, -inf  ;;  %v8190_v43 = vpack.i.bf16 %v8927_v39, %v6602_v13 }
0x1c7d   :  { %v3073_v55 = vmul.f32 %v3072_v53, %v8882_v25 }
0x1c86   :  { %v2670_v21 = vpop.xlane.xlu1 %2669 }
0x1c87   :  { %8315 = vrcp.f32 %v2670_v21 }
0x1c88   :  { %8317 = vrcp.f32 %v2553_v57 }
0x1c8a   :  { %v2962_v22 = vpop.xlane.xlu1 %2961 }
0x1c8b   :  { %8319 = vrcp.f32 %v2962_v22 }
0x1c8c   :  { %8321 = vrcp.f32 %v2965_v15  ;;  %v3564_v15 = vadd.f32 %v9005_v38, %v8982_v61  ;;  %v3575_v38 = vsel %vm92_vm1, %v3569_v59, -inf }
0x1c8e   :  { %v8187_v24 = vpop.permute.xlu1 %8186  ;;  %v3572_v35 = vsel %vm92_vm1, %v3564_v15, -inf }
0x1c8f   :  { %v8189_v27 = vunpack.i.h.bf16 %v8187_v24  ;;  %v8188_v34 = vunpack.i.l.bf16 %v8187_v24 }
0x1c91   :  { %v8316_v29 = vpop.eup %8315  ;;  %v7875_v10 = vpack.c.bf16 %v8189_v27, %v8188_v34 }
0x1c92   :  { %v2674_v30 = vmul.f32 %v8316_v29, %v8308_v47  ;;  %v8318_v50 = vpop.eup %8317 }
0x1c93   :  { %v2557_v28 = vmul.f32 %v8318_v50, %v9020_v44  ;;  %v3074_v44 = vmul.f32 %v3072_v53, %v8879_v23 }
0x1c94   :  { %7303 = vmatmul.mubr.msk.f32.vlgmr.msra.gmra.mrb[20].mxu0 %vm92_vm1, %v2674_v30 }
0x1c95   :  { %7868 = vmatpush3.bf16.msra.mxu0 %v7865_v14  ;;  %7309 = vmatprep.mubr.msk.f32.mxu0 %vm92_vm1, %v2556_v48  ;;  %v8320_v3 = vpop.eup %8319  ;;  %v8195_v14 = vpack.i.bf16 %v8959_v51, %v8943_v46 }
0x1c96   :  { %7876 = vmatprep.subr.bf16.mxu0 %v7875_v10  ;;  %v2968_v45 = vmul.f32 %v8320_v3, %v8310_v52  ;;  %v8322_v47 = vpop.eup %8321 }
0x1c97   :  { %v2969_v8 = vmul.f32 %v8322_v47, %v9026_v32 }
0x1c9c   :  { %7310 = vmatmul.mubr.msk.f32.vlgmr.msra.gmra.mrb[20].mxu0 %vm92_vm1, %v2557_v28 }
0x1c9d   :  { %7878 = vmatpush3.bf16.msra.mxu0 %v7875_v10  ;;  %7323 = vmatprep.mubr.msk.f32.mxu0 %vm92_vm1, %v2968_v45 }
0x1c9e   :  { %7881 = vmatprep.subr.msk.bf16.mxu0 %vm8894_vm11, %v8898_v33 }
0x1ca4   :  { %7324 = vmatmul.mubr.msk.f32.vlgmr.msra.gmra.mrb[20].mxu0 %vm92_vm1, %v2969_v8 }
0x1ca5   :  { %7330 = vmatprep.mubr.msk.f32.mxu0 %vm174_vm2, %v3073_v55 }
0x1ca6   :  { %7884 = vmatpush3.bf16.xpose.msk.msra.mxu0 %vm8894_vm11, %v8898_v33 }
0x1cad   :  { %7331 = vmatmul.mubr.msk.f32.vlgmr.msra.gmra.mrb[22].mxu0 %vm174_vm2, %v3074_v44 }
0x1d80   :  { %v7332_v52 = vpop.f32.mrb[22].mxu0 }
0x1d81   :  { %v3153_v12 = vadd.f32 %v7332_v52, %v8980_v60  ;;  %v3147_v18 = vpop.f32.mrb[23].mxu0 }
0x1d82   :  { %v3148_v32 = vadd.f32 %v3147_v18, %v8982_v61 }
0x1d83   :  { %v3159_v57 = vsel %vm92_vm1, %v3153_v12, -inf }
0x1d84   :  { %3160 = vmax.xlane.f32.xlu0 %v3159_v57  ;;  %v3156_v58 = vsel %vm92_vm1, %v3148_v32, -inf }
0x1d85   :  { %3157 = vmax.xlane.f32.xlu1 %v3156_v58 }
0x1d88   :  { %3365 = vmax.xlane.f32.xlu0 %v3364_v19 }
0x1d89   :  { %3368 = vmax.xlane.f32.xlu1 %v3367_v36 }
0x1d8c   :  { %3573 = vmax.xlane.f32.xlu0 %v3572_v35 }
0x1d8d   :  { %3576 = vmax.xlane.f32.xlu1 %v3575_v38 }
0x1d90   :  { %3781 = vmax.xlane.f32.xlu0 %v3780_v11 }
0x1d91   :  { %3784 = vmax.xlane.f32.xlu1 %v3783_v37 }
0x1da2   :  { %8196 = vrot.lane.b32.xlu1 %v8195_v14, %s8482_s0 }
0x1da6   :  { %8191 = vrot.lane.b32.xlu0 %v8190_v43, %s8482_s0 }
0x1e11   :  { %v3161_v42 = vpop.xlane.xlu0 %3160 }
0x1e12   :  { %v3158_v21 = vpop.xlane.xlu1 %3157  ;;  %v3163_v29 = vsub.f32 %v3153_v12, %v3161_v42 }
0x1e13   :  { %v3162_v8 = vsub.f32 %v3148_v32, %v3158_v21 }
0x1e14   :  { %v3166_v51 = vmul.f32 1.442695, %v3163_v29 }
0x1e15   :  { %v3366_v22 = vpop.xlane.xlu0 %3365  ;;  %v3164_v12 = vmul.f32 1.442695, %v3162_v8 }
0x1e16   :  { %v3370_v24 = vsub.f32 %v3356_v56, %v3366_v22  ;;  %v3369_v26 = vpop.xlane.xlu1 %3368 }
0x1e17   :  { %v3371_v27 = vsub.f32 %v3361_v40, %v3369_v26 }
0x1e18   :  { %v3372_v34 = vmul.f32 1.442695, %v3370_v24 }
0x1e19   :  { %v3374_v30 = vmul.f32 1.442695, %v3371_v27  ;;  %v3574_v48 = vpop.xlane.xlu0 %3573 }
0x1e1a   :  { %8323 = vpow2.f32 %v3372_v34  ;;  %v3578_v10 = vsub.f32 %v3564_v15, %v3574_v48  ;;  %v3577_v50 = vpop.xlane.xlu1 %3576 }
0x1e1b   :  { %8325 = vpow2.f32 %v3374_v30  ;;  %v3579_v46 = vsub.f32 %v3569_v59, %v3577_v50 }
0x1e1c   :  { %v3580_v39 = vmul.f32 1.442695, %v3578_v10 }
0x1e1d   :  { %v3582_v3 = vmul.f32 1.442695, %v3579_v46  ;;  %v3782_v28 = vpop.xlane.xlu0 %3781 }
0x1e1e   :  { %8327 = vpow2.f32 %v3580_v39  ;;  %v3786_v45 = vsub.f32 %v3772_v62, %v3782_v28  ;;  %v3785_v13 = vpop.xlane.xlu1 %3784 }
0x1e1f   :  { %8329 = vpow2.f32 %v3582_v3  ;;  %v3787_v47 = vsub.f32 %v3777_v9, %v3785_v13 }
0x1e20   :  { %v3788_v53 = vmul.f32 1.442695, %v3786_v45  ;;  %8331 = vpow2.f32 %v3166_v51 }
0x1e21   :  { %v3790_v55 = vmul.f32 1.442695, %v3787_v47  ;;  %v8192_v11 = vpop.permute.xlu0 %8191 }
0x1e22   :  { %8333 = vpow2.f32 %v3788_v53  ;;  %v8193_v37 = vunpack.i.l.bf16 %v8192_v11  ;;  %v8197_v14 = vpop.permute.xlu1 %8196  ;;  %v8194_v43 = vunpack.i.h.bf16 %v8192_v11 }
0x1e23   :  { %8335 = vpow2.f32 %v3790_v55  ;;  %v8198_v22 = vunpack.i.l.bf16 %v8197_v14  ;;  %v8199_v34 = vunpack.i.h.bf16 %v8197_v14 }
0x1e24   :  { %v9087_v44 = vpop.eup %8323  ;;  %8337 = vpow2.f32 %v3164_v12  ;;  %v3182_v42 = vmul.f32 %v8193_v37, %v8882_v25  ;;  %v3183_v21 = vmul.f32 %v8193_v37, %v8879_v23  ;;  %v3390_v24 = vmul.f32 %v8194_v43, %v8882_v25 }
0x1e25   :  { %v9089_v52 = vpop.eup %8325  ;;  %v3376_v18 = vsel %vm92_vm1, %v9087_v44, 0.0  ;;  %v3391_v26 = vmul.f32 %v8194_v43, %v8879_v23  ;;  %v3598_v29 = vmul.f32 %v8198_v22, %v8882_v25  ;;  %v3599_v30 = vmul.f32 %v8198_v22, %v8879_v23 }
0x1e26   :  { %v3379_v56 = vsel %vm92_vm1, %v9089_v52, 0.0  ;;  %3377 = vadd.xlane.f32.xlu0 %v3376_v18  ;;  %v8200_v27 = vpack.i.bf16 %v3183_v21, %v3182_v42  ;;  %v3806_v10 = vmul.f32 %v8199_v34, %v8882_v25  ;;  %v3807_v50 = vmul.f32 %v8199_v34, %v8879_v23 }
0x1e27   :  { %3380 = vadd.xlane.f32.xlu1 %v3379_v56  ;;  %v8205_v48 = vpack.i.bf16 %v3391_v26, %v3390_v24  ;;  %v8210_v46 = vpack.i.bf16 %v3599_v30, %v3598_v29 }
0x1e28   :  { %v9095_v57 = vpop.eup %8327  ;;  %v8215_v39 = vpack.i.bf16 %v3807_v50, %v3806_v10 }
0x1e29   :  { %v9097_v40 = vpop.eup %8329  ;;  %v3584_v32 = vsel %vm92_vm1, %v9095_v57, 0.0 }
0x1e2a   :  { %v3587_v58 = vsel %vm92_vm1, %v9097_v40, 0.0  ;;  %v9103_v15 = vpop.eup %8331  ;;  %3585 = vadd.xlane.f32.xlu0 %v3584_v32 }
0x1e2b   :  { %3588 = vadd.xlane.f32.xlu1 %v3587_v58  ;;  %v3171_v36 = vsel %vm92_vm1, %v9103_v15, 0.0 }
0x1e2c   :  { %v9105_v19 = vpop.eup %8333 }
0x1e2d   :  { %v3792_v59 = vsel %vm92_vm1, %v9105_v19, 0.0  ;;  %v9111_v62 = vpop.eup %8335 }
0x1e2e   :  { %3172 = vadd.xlane.f32.xlu0 %v3171_v36  ;;  %v3795_v35 = vsel %vm92_vm1, %v9111_v62, 0.0  ;;  %v8338_v9 = vpop.eup %8337 }
0x1e2f   :  { %3793 = vadd.xlane.f32.xlu1 %v3792_v59  ;;  %v3168_v38 = vsel %vm92_vm1, %v8338_v9, 0.0 }
0x1e33   :  { %3796 = vadd.xlane.f32.xlu1 %v3795_v35 }
0x1e37   :  { %3169 = vadd.xlane.f32.xlu1 %v3168_v38 }
0x1e44   :  { %8201 = vrot.lane.b32.xlu0 %v8200_v27, %s8482_s0 }
0x1e48   :  { %8206 = vrot.lane.b32.xlu1 %v8205_v48, %s8482_s0  ;;  %8211 = vrot.lane.b32.xlu0 %v8210_v46, %s8482_s0 }
0x1e4c   :  { %8216 = vrot.lane.b32.xlu0 %v8215_v39, %s8482_s0 }
0x1eb3   :  { %v3378_v51 = vpop.xlane.xlu0 %3377 }
0x1eb4   :  { %v3381_v3 = vpop.xlane.xlu1 %3380  ;;  %8339 = vrcp.f32 %v3378_v51 }
0x1eb7   :  { %v3586_v28 = vpop.xlane.xlu0 %3585 }
0x1eb8   :  { %v3589_v45 = vpop.xlane.xlu1 %3588 }
0x1ebb   :  { %v3173_v13 = vpop.xlane.xlu0 %3172 }
0x1ebc   :  { %v3794_v47 = vpop.xlane.xlu1 %3793  ;;  %8341 = vrcp.f32 %v3173_v13 }
0x1ebe   :  { %v8340_v38 = vpop.eup %8339 }
0x1ebf   :  { %v8202_v53 = vpop.permute.xlu0 %8201  ;;  %v3384_v22 = vmul.f32 %v8340_v38, %v9087_v44 }
0x1ec0   :  { %v3797_v8 = vpop.xlane.xlu1 %3796  ;;  %v8204_v55 = vunpack.i.h.bf16 %v8202_v53  ;;  %v8203_v12 = vunpack.i.l.bf16 %v8202_v53 }
0x1ec2   :  { %v7885_v18 = vpack.c.bf16 %v8204_v55, %v8203_v12 }
0x1ec3   :  { %v8212_v35 = vpop.permute.xlu0 %8211 }
0x1ec4   :  { %v3170_v56 = vpop.xlane.xlu1 %3169  ;;  %7886 = vmatprep.subr.bf16.mxu0 %v7885_v18  ;;  %v8214_v14 = vunpack.i.h.bf16 %v8212_v35  ;;  %v8213_v43 = vunpack.i.l.bf16 %v8212_v35 }
0x1ec5   :  { %8343 = vrcp.f32 %v3170_v56  ;;  %7888 = vmatpush3.bf16.msra.mxu0 %v7885_v18 }
0x1ec6   :  { %8345 = vrcp.f32 %v3381_v3  ;;  %v8342_v11 = vpop.eup %8341  ;;  %v7905_v24 = vpack.c.bf16 %v8214_v14, %v8213_v43  ;;  %v62_v14 = vld [vmem:[#allocation3 + $0xa0] sm:$0xff]  ;;  %v63_v43 = vld [vmem:[#allocation3 + $0xa8] sm:$0xff] }
0x1ec7   :  { %8347 = vrcp.f32 %v3586_v28  ;;  %v3177_v21 = vmul.f32 %v8342_v11, %v9103_v15  ;;  %v8217_v26 = vpop.permute.xlu0 %8216 }
0x1ec8   :  { %v8207_v32 = vpop.permute.xlu1 %8206  ;;  %8349 = vrcp.f32 %v3589_v45  ;;  %v8219_v29 = vunpack.i.h.bf16 %v8217_v26 }
0x1ec9   :  { %v8209_v58 = vunpack.i.h.bf16 %v8207_v32  ;;  %v8208_v59 = vunpack.i.l.bf16 %v8207_v32  ;;  %8351 = vrcp.f32 %v3794_v47 }
0x1eca   :  { %8353 = vrcp.f32 %v3797_v8 }
0x1ecb   :  { %v7895_v36 = vpack.c.bf16 %v8209_v58, %v8208_v59 }
0x1ecd   :  { %7896 = vmatprep.subr.bf16.mxu0 %v7895_v36 }
0x1ecf   :  { %v8344_v37 = vpop.eup %8343 }
0x1ed0   :  { %v3176_v42 = vmul.f32 %v8344_v37, %v8338_v9  ;;  %v8346_v27 = vpop.eup %8345  ;;  %v8218_v9 = vunpack.i.l.bf16 %v8217_v26 }
0x1ed1   :  { %v8348_v34 = vpop.eup %8347  ;;  %v3385_v15 = vmul.f32 %v8346_v27, %v9089_v52  ;;  %v64_v27 = vld [vmem:[#allocation3 + $0xb0] sm:$0xff] }
0x1ed2   :  { %7337 = vmatprep.mubr.msk.f32.mxu0 %vm92_vm1, %v3176_v42  ;;  %v3592_v30 = vmul.f32 %v8348_v34, %v9095_v57  ;;  %v7915_v48 = vpack.c.bf16 %v8219_v29, %v8218_v9  ;;  %v8350_v44 = vpop.eup %8349  ;;  %v6630_v57 = vsel %vm3901_vm5, 1.0, %v8481_v1  ;;  %v65_v34 = vld [vmem:[#allocation3 + $0xb8] sm:$0xff]  ;;  %v58_v9 = vld [vmem:[#allocation3 + $0x80] sm:$0xff] }
0x1ed3   :  { %7338 = vmatmul.mubr.msk.f32.vlgmr.msra.gmra.mrb[20].mxu0 %vm92_vm1, %v3177_v21  ;;  %v8352_v10 = vpop.eup %8351  ;;  %v3593_v50 = vmul.f32 %v8350_v44, %v9097_v40  ;;  %v3904_v16 = vmul.f32 0.5, %v6630_v57  ;;  %v9182_v29 = vpack.c.bf16 %v65_v34, %v64_v27 }
0x1ed4   :  { %7898 = vmatpush3.bf16.msra.mxu0 %v7895_v36  ;;  %7351 = vmatprep.mubr.msk.f32.mxu0 %vm92_vm1, %v3384_v22  ;;  %v3800_v52 = vmul.f32 %v8352_v10, %v9105_v19  ;;  %v8354_v46 = vpop.eup %8353 }
0x1ed5   :  { %7906 = vmatprep.subr.bf16.mxu0 %v7905_v24  ;;  %v3801_v39 = vmul.f32 %v8354_v46, %v9111_v62  ;;  %v3905_v51 = vmul.f32 %v3904_v16, %v8882_v25  ;;  %v3906_v40 = vmul.f32 %v3904_v16, %v8879_v23 }
0x1edb   :  { %7352 = vmatmul.mubr.msk.f32.vlgmr.msra.gmra.mrb[20].mxu0 %vm92_vm1, %v3385_v15  ;;  %v59_v15 = vld [vmem:[#allocation3 + $0x88] sm:$0xff] }
0x1edc   :  { %7908 = vmatpush3.bf16.msra.mxu0 %v7905_v24  ;;  %7365 = vmatprep.mubr.msk.f32.mxu0 %vm92_vm1, %v3592_v30  ;;  %v9177_v24 = vpack.c.bf16 %v63_v43, %v62_v14  ;;  %v7937_v30 = vpack.c.bf16 %v59_v15, %v58_v9  ;;  %v9252_v14 = vld [vmem:[#allocation3 + $0x108] ss:$0 sm:$0xff] }
0x1edd   :  { %7916 = vmatprep.subr.bf16.mxu0 %v7915_v48 }
0x1ee3   :  { %7366 = vmatmul.mubr.msk.f32.vlgmr.msra.gmra.mrb[20].mxu0 %vm92_vm1, %v3593_v50  ;;  %v60_v50 = vld [vmem:[#allocation3 + $0x90] sm:$0xff] }
0x1ee4   :  { %7918 = vmatpush3.bf16.msra.mxu0 %v7915_v48  ;;  %7379 = vmatprep.mubr.msk.f32.mxu0 %vm92_vm1, %v3800_v52  ;;  %v61_v52 = vld [vmem:[#allocation3 + $0x98] sm:$0xff] }
0x1ee5   :  { %7921 = vmatprep.subr.msk.bf16.mxu0 %vm8894_vm11, %v8898_v33 }
0x1eeb   :  { %7380 = vmatmul.mubr.msk.f32.vlgmr.msra.gmra.mrb[20].mxu0 %vm92_vm1, %v3801_v39 }
0x1eec   :  { %7386 = vmatprep.mubr.msk.f32.mxu0 %vm174_vm2, %v3905_v51 }
0x1eed   :  { %7924 = vmatpush3.bf16.xpose.msk.msra.mxu0 %vm8894_vm11, %v8898_v33 }
0x1ef4   :  { %7387 = vmatmul.mubr.msk.f32.vlgmr.msra.gmra.mrb[24].mxu0 %vm174_vm2, %v3906_v40 }
0x1fc7   :  { %v7388_v19 = vpop.f32.mrb[24].mxu0 }
0x1fc8   :  { %v3985_v3 = vadd.f32 %v7388_v19, %v8980_v60  ;;  %v3979_v28 = vpop.f32.mrb[25].mxu0  ;;  %v6639_v19 = vld [vmem:[#allocation3 + $0xc0] ss:$0 sm:$0xff] }
0x1fc9   :  { %v3980_v62 = vadd.f32 %v3979_v28, %v8982_v61 }
0x1fca   :  { %v3991_v45 = vsel %vm92_vm1, %v3985_v3, -inf }
0x1fcb   :  { %3992 = vmax.xlane.f32.xlu0 %v3991_v45  ;;  %v3988_v13 = vsel %vm92_vm1, %v3980_v62, -inf }
0x1fcc   :  { %3989 = vmax.xlane.f32.xlu1 %v3988_v13 }
0x1fe1   :  { %4011 = vrot.lane.b32.xlu0 %v6630_v57, %s8482_s0  ;;  %v7941_v57 = vpack.c.bf16 %v61_v52, %v60_v50 }
0x1fe5   :  { %8226 = vrot.lane.b32.xlu0 %v8225_v4, %s8483_s13 }
0x1fe9   :  { %8231 = vrot.lane.b32.xlu0 %v8230_v7, %s8483_s13 }
0x2058   :  { %v3993_v31 = vpop.xlane.xlu0 %3992 }
0x2059   :  { %v3995_v33 = vsub.f32 %v3985_v3, %v3993_v31  ;;  %v3990_v60 = vpop.xlane.xlu1 %3989 }
0x205a   :  { %v3994_v61 = vsub.f32 %v3980_v62, %v3990_v60 }
0x205b   :  { %v3998_v47 = vmul.f32 1.442695, %v3995_v33 }
0x205c   :  { %v3996_v53 = vmul.f32 1.442695, %v3994_v61  ;;  %v4012_v2 = vpop.permute.xlu0 %4011 }
0x205d   :  { %8355 = vpow2.f32 %v3998_v47  ;;  %v4014_v4 = vmul.f32 %v4012_v2, %v8882_v25  ;;  %v4015_v5 = vmul.f32 %v4012_v2, %v8879_v23  ;;  %v68_v2 = vld [vmem:[#allocation3 + $0xd0] sm:$0xff] }
0x205e   :  { %8357 = vpow2.f32 %v3996_v53  ;;  %v4368_v53 = vrot.slane %v8815_v41, 6 }
0x205f   :  { %v8220_v6 = vpack.i.bf16 %v4015_v5, %v4014_v4  ;;  %v69_v4 = vld [vmem:[#allocation3 + $0xd8] sm:$0xff] }
0x2060   :  { %v8227_v7 = vpop.permute.xlu0 %8226 }
0x2061   :  { %v8229_v18 = vunpack.i.h.bf16 %v8227_v7  ;;  %v8228_v56 = vunpack.i.l.bf16 %v8227_v7 }
0x2063   :  { %v7929_v32 = vpack.c.bf16 %v8229_v18, %v8228_v56 }
0x2064   :  { %v8232_v58 = vpop.permute.xlu0 %8231 }
0x2065   :  { %v8234_v59 = vunpack.i.h.bf16 %v8232_v58  ;;  %v8233_v36 = vunpack.i.l.bf16 %v8232_v58  ;;  %7930 = vmatprep.subr.bf16.mxu1 %v7929_v32  ;;  %v72_v58 = vld [vmem:[#allocation3 + $0xf0] sm:$0xff] }
0x2066   :  { %7932 = vmatpush3.bf16.msra.mxu1 %v7929_v32  ;;  %v71_v32 = vld [vmem:[#allocation3 + $0xe8] sm:$0xff] }
0x2067   :  { %v8356_v8 = vpop.eup %8355  ;;  %v7933_v35 = vpack.c.bf16 %v8234_v59, %v8233_v36  ;;  %v9225_v59 = vpack.c.bf16 %v72_v58, %v71_v32  ;;  %v73_v36 = vld [vmem:[#allocation3 + $0xf8] sm:$0xff] }
0x2068   :  { %v4003_v55 = vsel %vm92_vm1, %v8356_v8, 0.0  ;;  %v8358_v12 = vpop.eup %8357 }
0x2069   :  { %4004 = vadd.xlane.f32.xlu1 %v4003_v55  ;;  %v4000_v49 = vsel %vm92_vm1, %v8358_v12, 0.0  ;;  %7934 = vmatprep.subr.bf16.mxu1 %v7933_v35 }
0x206a   :  { %7936 = vmatpush3.bf16.msra.mxu1 %v7933_v35  ;;  %v74_v35 = vld [vmem:[#allocation3 + $0x100] sm:$0xff] }
0x206b   :  { %7938 = vmatprep.subr.bf16.mxu1 %v7937_v30 }
0x206d   :  { %4001 = vadd.xlane.f32.xlu1 %v4000_v49  ;;  %v67_v49 = vld [vmem:[#allocation3 + $0xc8] sm:$0xff] }
0x206e   :  { %v9215_v5 = vpack.c.bf16 %v68_v2, %v67_v49 }
0x207e   :  { %8221 = vrot.lane.b32.xlu1 %v8220_v6, %s8482_s0  ;;  %v70_v6 = vld [vmem:[#allocation3 + $0xe0] sm:$0xff] }
0x207f   :  { %v9218_v7 = vpack.c.bf16 %v70_v6, %v69_v4 }
0x2082   :  { %4124 = vrot.lane.b32.xlu1 %v8874_v20, %s8483_s13 }
0x20f6   :  { %v4005_v25 = vpop.xlane.xlu1 %4004 }
0x20f7   :  { %8359 = vrcp.f32 %v4005_v25 }
0x20fa   :  { %v4002_v23 = vpop.xlane.xlu1 %4001 }
0x20fb   :  { %8361 = vrcp.f32 %v4002_v23  ;;  %v9230_v23 = vpack.c.bf16 %v74_v35, %v73_v36 }
0x20fe   :  { %v8222_v38 = vpop.permute.xlu1 %8221 }
0x20ff   :  { %v8224_v11 = vunpack.i.h.bf16 %v8222_v38  ;;  %v8223_v37 = vunpack.i.l.bf16 %v8222_v38 }
0x2101   :  { %v7925_v20 = vpack.c.bf16 %v8224_v11, %v8223_v37  ;;  %v8360_v42 = vpop.eup %8359 }
0x2102   :  { %v4009_v26 = vmul.f32 %v8360_v42, %v8356_v8  ;;  %v4125_v46 = vpop.permute.xlu1 %4124 }
0x2103   :  { %7926 = vmatprep.subr.bf16.mxu0 %v7925_v20 }
0x2104   :  { %7928 = vmatpush3.bf16.msra.mxu0 %v7925_v20 }
0x2105   :  { %v8362_v21 = vpop.eup %8361  ;;  %7945 = vmatprep.subr.bf16.mxu0 %v8479_v0 }
0x2106   :  { %v4008_v22 = vmul.f32 %v8362_v21, %v8358_v12 }
0x2108   :  { %7393 = vmatprep.mubr.msk.f32.mxu0 %vm92_vm1, %v4008_v22 }
0x2109   :  { %7394 = vmatmul.mubr.msk.f32.vlgmr.msra.gmra.mrb[20].mxu0 %vm92_vm1, %v4009_v26 }
0x210a   :  { %7947 = vmatpush3.bf16.msra.mxu0 %v9177_v24  ;;  %7426 = vmatprep.mubr.msk.f32.mxu0 %vm8480_vm0, %v8481_v1 }
0x210b   :  { %7948 = vmatprep.subr.bf16.mxu0 %v8479_v0 }
0x210e   :  { %7950 = vmatpush3.bf16.msra.mxu0 %v9182_v29 }
0x210f   :  { %7963 = vmatprep.subr.bf16.mxu0 %v8479_v0 }
0x2111   :  { %7427 = vmatmul.mubr.msk.f32.vlgmr.msra.gmra.mrb[26].mxu0 %vm174_vm2, %v8822_v54 }
0x2112   :  { %7965 = vmatpush3.bf16.msra.mxu0 %v9177_v24  ;;  %7459 = vmatprep.mubr.msk.f32.mxu0 %vm8480_vm0, %v8481_v1 }
0x2113   :  { %7966 = vmatprep.subr.bf16.mxu0 %v8479_v0 }
0x2116   :  { %7968 = vmatpush3.bf16.msra.mxu0 %v9182_v29 }
0x2117   :  { %7969 = vmatprep.subr.bf16.mxu0 %v8479_v0 }
0x21dc   :  { %v7395_v48 = vpop.f32.mrb[20].mxu0 }
0x21dd   :  { %v4096_v44 = vpop.f32.mrb[21].mxu0 }
0x21de   :  { %7404 = vmatprep.mubr.msk.f32.mxu1 %vm174_vm2, %v4096_v44 }
0x21df   :  { %7405 = vmatmul.mubr.msk.f32.vlgmr.msra.gmra.mrb[28].mxu1 %vm174_vm2, %v7395_v48 }
0x21e0   :  { %7940 = vmatpush3.bf16.msra.mxu1 %v7937_v30 }
0x21e1   :  { %7942 = vmatprep.subr.bf16.mxu1 %v7941_v57 }
0x21e4   :  { %v4359_v54 = vpop.f32.mrb[26].mxu0  ;;  %7944 = vmatpush3.bf16.msra.mxu1 %v7941_v57 }
0x21e5   :  { %v7428_v10 = vpop.f32.mrb[27].mxu0  ;;  %7951 = vmatprep.subr.bf16.mxu1 %v8479_v0 }
0x22b2   :  { %v7406_v16 = vpop.f32.mrb[28].mxu1 }
0x22b3   :  { %v4199_v39 = vpop.f32.mrb[29].mxu1  ;;  %v4205_v40 = vadd.f32 %v7406_v16, %v4125_v46 }
0x22b4   :  { %v4200_v51 = vadd.f32 %v4199_v39, %v4125_v46 }
0x22b6   :  { %7415 = vmatprep.mubr.msk.f32.mxu1 %vm174_vm2, %v4200_v51 }
0x22b7   :  { %7416 = vmatmul.mubr.msk.f32.vlgmr.msra.gmra.mrb[30].mxu1 %vm174_vm2, %v4205_v40 }
0x22b8   :  { %7437 = vmatprep.mubr.msk.f32.mxu1 %vm8480_vm0, %v8481_v1  ;;  %7953 = vmatpush3.bf16.msra.mxu1 %v9215_v5 }
0x22b9   :  { %7954 = vmatprep.subr.bf16.mxu1 %v8479_v0 }
0x22bc   :  { %7956 = vmatpush3.bf16.msra.mxu1 %v9218_v7 }
0x22bd   :  { %7957 = vmatprep.subr.bf16.mxu1 %v8479_v0 }
0x238a   :  { %v7417_v3 = vpop.f32.mrb[30].mxu1 }
0x238b   :  { %v9204_v28 = vadd.f32 %v7417_v3, %v6639_v19  ;;  %v4284_v62 = vpop.f32.mrb[31].mxu1 }
0x238c   :  { %v9206_v45 = vadd.f32 %v6639_v19, %v4284_v62 }
0x238e   :  { %v4363_v13 = vadd.f32 %v4359_v54, %v9206_v45 }
0x2390   :  { %8363 = vtanh.f32 %v4363_v13 }
0x239a   :  { %v8364_v31 = vpop.eup %8363 }
0x239b   :  { %4372 = vrot.lane.b32.xlu0 %v8364_v31, %s8482_s0  ;;  %v4365_v33 = vmul.f32 0.5, %v8364_v31 }
0x239d   :  { %v4366_v60 = vadd.f32 0.5, %v4365_v33 }
0x239f   :  { %v4370_v8 = vmul.f32 %v4368_v53, %v4366_v60 }
0x240d   :  { %v4373_v61 = vpop.permute.xlu0 %4372 }
0x240e   :  { %v4375_v47 = vmul.f32 %v4373_v61, %v4366_v60 }
0x2410   :  { %4377 = vrot.lane.b32.xlu1 %v4375_v47, %s8483_s13 }
0x2482   :  { %v4378_v55 = vpop.permute.xlu1 %4377 }
0x2483   :  { %v9212_v12 = vadd.f32 %v4378_v55, %v4370_v8 }
0x2485   :  { %8365 = vtanh.f32 %v9212_v12  ;;  %v4642_v54 = vrot.slane %v9212_v12, 6 }
0x248f   :  { %v8366_v41 = vpop.eup %8365 }
0x2490   :  { %4383 = vrot.lane.b32.xlu0 %v8366_v41, %s8482_s0 }
0x2502   :  { %v4384_v18 = vpop.permute.xlu0 %4383 }
0x2503   :  { %v4386_v56 = vmul.f32 %v4384_v18, %v4366_v60 }
0x2505   :  { %4392 = vrot.lane.b32.xlu1 %v4386_v56, %s8483_s13 }
0x2577   :  { %v4393_v25 = vpop.permute.xlu1 %4392 }
0x2578   :  { %7438 = vmatmul.mubr.msk.f32.vlgmr.msra.gmra.mrb[32].mxu1 %vm174_vm2, %v4393_v25  ;;  %7460 = vmatmul.mubr.msk.f32.vlgmr.msra.gmra.mrb[28].mxu0 %vm174_vm2, %v4393_v25 }
0x2579   :  { %7959 = vmatpush3.bf16.msra.mxu1 %v9225_v59  ;;  %7448 = vmatprep.mubr.msk.f32.mxu1 %vm8480_vm0, %v8481_v1 }
0x257a   :  { %7960 = vmatprep.subr.bf16.mxu1 %v8479_v0  ;;  %7971 = vmatpush3.bf16.msra.mxu0 %v9215_v5 }
0x257b   :  { %7972 = vmatprep.subr.bf16.mxu0 %v8479_v0  ;;  %7470 = vmatprep.mubr.msk.f32.mxu0 %vm8480_vm0, %v8481_v1 }
0x257d   :  { %7962 = vmatpush3.bf16.msra.mxu1 %v9230_v23 }
0x257e   :  { %7981 = vmatprep.subr.bf16.mxu1 %v8479_v0  ;;  %7974 = vmatpush3.bf16.msra.mxu0 %v9218_v7 }
0x257f   :  { %7975 = vmatprep.subr.bf16.mxu0 %v8479_v0 }
0x2580   :  { %7449 = vmatmul.mubr.msk.f32.vlgmr.msra.gmra.mrb[32].mxu1 %vm174_vm2, %v8857_v17 }
0x2581   :  { %7983 = vmatpush3.bf16.msra.mxu1 %v9177_v24  ;;  %7492 = vmatprep.mubr.msk.f32.mxu1 %vm8480_vm0, %v8481_v1 }
0x2582   :  { %7984 = vmatprep.subr.bf16.mxu1 %v8479_v0 }
0x2585   :  { %7986 = vmatpush3.bf16.msra.mxu1 %v9182_v29 }
0x2586   :  { %7987 = vmatprep.subr.bf16.mxu1 %v8479_v0 }
0x264b   :  { %v4630_v38 = vpop.f32.mrb[28].mxu0 }
0x264c   :  { %v4635_v11 = vrot.slane %v4630_v38, 6  ;;  %v7461_v37 = vpop.f32.mrb[29].mxu0 }
0x264e   :  { %v4637_v20 = vadd.f32 %v4635_v11, %v9206_v45 }
0x2650   :  { %8367 = vtanh.f32 %v4637_v20 }
0x2653   :  { %v4534_v17 = vpop.f32.mrb[32].mxu1 }
0x2654   :  { %v8105_v43 = vadd.f32 %v9252_v14, %v4534_v17  ;;  %v7450_v42 = vpop.f32.mrb[33].mxu1 }
0x2656   :  { %8369 = vtanh.f32 %v8105_v43 }
0x265a   :  { %v8368_v21 = vpop.eup %8367 }
0x265b   :  { %4646 = vrot.lane.b32.xlu0 %v8368_v21, %s8482_s0  ;;  %v4639_v26 = vmul.f32 0.5, %v8368_v21 }
0x265d   :  { %v4640_v27 = vadd.f32 0.5, %v4639_v26 }
0x265f   :  { %v4644_v10 = vmul.f32 %v4642_v54, %v4640_v27 }
0x2660   :  { %v8370_v22 = vpop.eup %8369 }
0x2661   :  { %4544 = vrot.lane.b32.xlu1 %v8370_v22, %s8482_s0  ;;  %v4540_v15 = vmul.f32 0.5, %v8370_v22 }
0x2663   :  { %v4541_v30 = vadd.f32 0.5, %v4540_v15 }
0x2665   :  { %v4542_v57 = vmul.f32 %v4541_v30, %v8836_v63 }
0x26cd   :  { %v4647_v34 = vpop.permute.xlu0 %4646 }
0x26ce   :  { %v4649_v9 = vmul.f32 %v4647_v34, %v4640_v27 }
0x26d0   :  { %4651 = vrot.lane.b32.xlu0 %v4649_v9, %s8483_s13 }
0x26d3   :  { %v4545_v48 = vpop.permute.xlu1 %4544 }
0x26d4   :  { %v4547_v44 = vmul.f32 %v4545_v48, %v4541_v30 }
0x26d6   :  { %4549 = vrot.lane.b32.xlu1 %v4547_v44, %s8483_s13 }
0x2742   :  { %v4652_v50 = vpop.permute.xlu0 %4651 }
0x2743   :  { %v9260_v52 = vadd.f32 %v4652_v50, %v4644_v10 }
0x2745   :  { %8371 = vtanh.f32 %v9260_v52  ;;  %v4913_v36 = vrot.slane %v9260_v52, 6 }
0x2748   :  { %v4550_v46 = vpop.permute.xlu1 %4549 }
0x2749   :  { %v4552_v16 = vadd.f32 %v4550_v46, %v4542_v57 }
0x274b   :  { %8373 = vtanh.f32 %v4552_v16 }
0x274f   :  { %v8372_v39 = vpop.eup %8371 }
0x2750   :  { %4657 = vrot.lane.b32.xlu0 %v8372_v39, %s8482_s0 }
0x2755   :  { %v8374_v51 = vpop.eup %8373 }
0x2756   :  { %4555 = vrot.lane.b32.xlu1 %v8374_v51, %s8482_s0 }
0x27c2   :  { %v4658_v40 = vpop.permute.xlu0 %4657 }
0x27c3   :  { %v4660_v19 = vmul.f32 %v4658_v40, %v4640_v27 }
0x27c5   :  { %v4662_v3 = vrot.slane %v4660_v19, 2 }
0x27c7   :  { %4663 = vrot.lane.b32.xlu0 %v4662_v3, %s8483_s13 }
0x27c8   :  { %v4556_v62 = vpop.permute.xlu1 %4555 }
0x27c9   :  { %v4558_v13 = vmul.f32 %v4556_v62, %v4541_v30 }
0x27cb   :  { %4560 = vrot.lane.b32.xlu1 %v4558_v13, %s8483_s13 }
0x2839   :  { %v4664_v31 = vpop.permute.xlu0 %4663 }
0x283a   :  { %7471 = vmatmul.mubr.msk.f32.vlgmr.msra.gmra.mrb[30].mxu0 %vm174_vm2, %v4664_v31  ;;  %7493 = vmatmul.mubr.msk.f32.vlgmr.msra.gmra.mrb[34].mxu1 %vm174_vm2, %v4664_v31 }
0x283b   :  { %7977 = vmatpush3.bf16.msra.mxu0 %v9225_v59  ;;  %7481 = vmatprep.mubr.msk.f32.mxu0 %vm8480_vm0, %v8481_v1 }
0x283c   :  { %7978 = vmatprep.subr.bf16.mxu0 %v8479_v0  ;;  %7989 = vmatpush3.bf16.msra.mxu1 %v9215_v5 }
0x283d   :  { %v4561_v63 = vpop.permute.xlu1 %4560  ;;  %7990 = vmatprep.subr.bf16.mxu1 %v8479_v0  ;;  %7503 = vmatprep.mubr.msk.f32.mxu1 %vm8480_vm0, %v8481_v1 }
0x283e   :  { %4563 = vst.msk [vmem:[#allocation2] sm:$0x3] %vm443_vm3, %v4561_v63 }
0x283f   :  { %7980 = vmatpush3.bf16.msra.mxu0 %v9230_v23 }
0x2840   :  { %7999 = vmatprep.subr.bf16.mxu0 %v8479_v0  ;;  %7992 = vmatpush3.bf16.msra.mxu1 %v9218_v7 }
0x2841   :  { %7993 = vmatprep.subr.bf16.mxu1 %v8479_v0 }
0x2842   :  { %7482 = vmatmul.mubr.msk.f32.vlgmr.msra.gmra.mrb[30].mxu0 %vm174_vm2, %v4561_v63 }
0x2843   :  { %8001 = vmatpush3.bf16.msra.mxu0 %v9177_v24  ;;  %7525 = vmatprep.mubr.msk.f32.mxu0 %vm8480_vm0, %v8481_v1 }
0x2844   :  { %8002 = vmatprep.subr.bf16.mxu0 %v8479_v0 }
0x2847   :  { %8004 = vmatpush3.bf16.msra.mxu0 %v9182_v29 }
0x2848   :  { %8005 = vmatprep.subr.bf16.mxu0 %v8479_v0 }
0x290d   :  { %v4901_v33 = vpop.f32.mrb[34].mxu1 }
0x290e   :  { %v4906_v60 = vrot.slane %v4901_v33, 4  ;;  %v7494_v61 = vpop.f32.mrb[35].mxu1 }
0x2910   :  { %v4908_v47 = vadd.f32 %v4906_v60, %v9206_v45 }
0x2912   :  { %8375 = vtanh.f32 %v4908_v47 }
0x2915   :  { %v4805_v53 = vpop.f32.mrb[30].mxu0 }
0x2916   :  { %v8106_v8 = vadd.f32 %v9252_v14, %v4805_v53  ;;  %v7483_v55 = vpop.f32.mrb[31].mxu0 }
0x2918   :  { %8377 = vtanh.f32 %v8106_v8 }
0x291c   :  { %v8376_v12 = vpop.eup %8375 }
0x291d   :  { %4917 = vrot.lane.b32.xlu0 %v8376_v12, %s8482_s0  ;;  %v4910_v2 = vmul.f32 0.5, %v8376_v12 }
0x291f   :  { %v4911_v4 = vadd.f32 0.5, %v4910_v2 }
0x2921   :  { %v4915_v35 = vmul.f32 %v4913_v36, %v4911_v4 }
0x2922   :  { %v8378_v49 = vpop.eup %8377 }
0x2923   :  { %4815 = vrot.lane.b32.xlu1 %v8378_v49, %s8482_s0  ;;  %v4811_v18 = vmul.f32 0.5, %v8378_v49 }
0x2925   :  { %v4812_v56 = vadd.f32 0.5, %v4811_v18 }
0x2927   :  { %v4813_v11 = vmul.f32 %v4812_v56, %v4552_v16 }
0x298f   :  { %v4918_v6 = vpop.permute.xlu0 %4917 }
0x2990   :  { %v4920_v41 = vmul.f32 %v4918_v6, %v4911_v4 }
0x2992   :  { %4922 = vrot.lane.b32.xlu0 %v4920_v41, %s8483_s13 }
0x2995   :  { %v4816_v32 = vpop.permute.xlu1 %4815 }
0x2996   :  { %v4818_v58 = vmul.f32 %v4816_v32, %v4812_v56 }
0x2998   :  { %4820 = vrot.lane.b32.xlu1 %v4818_v58, %s8483_s13 }
0x2a04   :  { %v4923_v25 = vpop.permute.xlu0 %4922 }
0x2a05   :  { %v9297_v38 = vadd.f32 %v4923_v25, %v4915_v35 }
0x2a07   :  { %8379 = vtanh.f32 %v9297_v38  ;;  %v5184_v62 = vrot.slane %v9297_v38, 6 }
0x2a0a   :  { %v4821_v37 = vpop.permute.xlu1 %4820 }
0x2a0b   :  { %v4823_v20 = vadd.f32 %v4821_v37, %v4813_v11 }
0x2a0d   :  { %8381 = vtanh.f32 %v4823_v20 }
0x2a11   :  { %v8380_v17 = vpop.eup %8379 }
0x2a12   :  { %4928 = vrot.lane.b32.xlu0 %v8380_v17, %s8482_s0 }
0x2a17   :  { %v8382_v43 = vpop.eup %8381 }
0x2a18   :  { %4826 = vrot.lane.b32.xlu1 %v8382_v43, %s8482_s0 }
0x2a84   :  { %v4929_v42 = vpop.permute.xlu0 %4928 }
0x2a85   :  { %v4931_v21 = vmul.f32 %v4929_v42, %v4911_v4 }
0x2a87   :  { %v4933_v22 = vrot.slane %v4931_v21, 4 }
0x2a89   :  { %4934 = vrot.lane.b32.xlu0 %v4933_v22, %s8483_s13 }
0x2a8a   :  { %v4827_v26 = vpop.permute.xlu1 %4826 }
0x2a8b   :  { %v4829_v27 = vmul.f32 %v4827_v26, %v4812_v56 }
0x2a8d   :  { %4831 = vrot.lane.b32.xlu1 %v4829_v27, %s8483_s13 }
0x2afb   :  { %v4935_v34 = vpop.permute.xlu0 %4934 }
0x2afc   :  { %7504 = vmatmul.mubr.msk.f32.vlgmr.msra.gmra.mrb[36].mxu1 %vm174_vm2, %v4935_v34  ;;  %7526 = vmatmul.mubr.msk.f32.vlgmr.msra.gmra.mrb[32].mxu0 %vm174_vm2, %v4935_v34 }
0x2afd   :  { %7995 = vmatpush3.bf16.msra.mxu1 %v9225_v59  ;;  %7514 = vmatprep.mubr.msk.f32.mxu1 %vm8480_vm0, %v8481_v1 }
0x2afe   :  { %7996 = vmatprep.subr.bf16.mxu1 %v8479_v0  ;;  %8007 = vmatpush3.bf16.msra.mxu0 %v9215_v5 }
0x2aff   :  { %v4832_v9 = vpop.permute.xlu1 %4831  ;;  %8008 = vmatprep.subr.bf16.mxu0 %v8479_v0  ;;  %7536 = vmatprep.mubr.msk.f32.mxu0 %vm8480_vm0, %v8481_v1 }
0x2b00   :  { %4834 = vst.msk [vmem:[#allocation2 + $0x2] sm:$0x3] %vm443_vm3, %v4832_v9 }
0x2b01   :  { %7998 = vmatpush3.bf16.msra.mxu1 %v9230_v23 }
0x2b02   :  { %8017 = vmatprep.subr.bf16.mxu1 %v8479_v0  ;;  %8010 = vmatpush3.bf16.msra.mxu0 %v9218_v7 }
0x2b03   :  { %8011 = vmatprep.subr.bf16.mxu0 %v8479_v0 }
0x2b04   :  { %7515 = vmatmul.mubr.msk.f32.vlgmr.msra.gmra.mrb[36].mxu1 %vm174_vm2, %v4832_v9 }
0x2b05   :  { %8019 = vmatpush3.bf16.msra.mxu1 %v9177_v24  ;;  %7558 = vmatprep.mubr.msk.f32.mxu1 %vm8480_vm0, %v8481_v1 }
0x2b06   :  { %8020 = vmatprep.subr.bf16.mxu1 %v8479_v0 }
0x2b09   :  { %8022 = vmatpush3.bf16.msra.mxu1 %v9182_v29 }
0x2b0a   :  { %8023 = vmatprep.subr.bf16.mxu1 %v8479_v0 }
0x2bcf   :  { %v5172_v15 = vpop.f32.mrb[32].mxu0 }
0x2bd0   :  { %v5177_v30 = vrot.slane %v5172_v15, 2  ;;  %v7527_v48 = vpop.f32.mrb[33].mxu0 }
0x2bd2   :  { %v5179_v44 = vadd.f32 %v5177_v30, %v9206_v45 }
0x2bd4   :  { %8383 = vtanh.f32 %v5179_v44 }
0x2bd7   :  { %v5076_v54 = vpop.f32.mrb[36].mxu1 }
0x2bd8   :  { %v8107_v10 = vadd.f32 %v9252_v14, %v5076_v54  ;;  %v7516_v50 = vpop.f32.mrb[37].mxu1 }
0x2bda   :  { %8385 = vtanh.f32 %v8107_v10 }
0x2bde   :  { %v8384_v52 = vpop.eup %8383 }
0x2bdf   :  { %5188 = vrot.lane.b32.xlu0 %v8384_v52, %s8482_s0  ;;  %v5181_v46 = vmul.f32 0.5, %v8384_v52 }
0x2be1   :  { %v5182_v16 = vadd.f32 0.5, %v5181_v46 }
0x2be3   :  { %v5186_v13 = vmul.f32 %v5184_v62, %v5182_v16 }
0x2be4   :  { %v8386_v57 = vpop.eup %8385 }
0x2be5   :  { %5086 = vrot.lane.b32.xlu1 %v8386_v57, %s8482_s0  ;;  %v5082_v40 = vmul.f32 0.5, %v8386_v57 }
0x2be7   :  { %v5083_v45 = vadd.f32 0.5, %v5082_v40 }
0x2be9   :  { %v5084_v33 = vmul.f32 %v5083_v45, %v4823_v20 }
0x2c51   :  { %v5189_v39 = vpop.permute.xlu0 %5188 }
0x2c52   :  { %v5191_v51 = vmul.f32 %v5189_v39, %v5182_v16 }
0x2c54   :  { %5193 = vrot.lane.b32.xlu0 %v5191_v51, %s8483_s13 }
0x2c57   :  { %v5087_v19 = vpop.permute.xlu1 %5086 }
0x2c58   :  { %v5089_v3 = vmul.f32 %v5087_v19, %v5083_v45 }
0x2c5a   :  { %5091 = vrot.lane.b32.xlu1 %v5089_v3, %s8483_s13 }
0x2cc6   :  { %v5194_v31 = vpop.permute.xlu0 %5193 }
0x2cc7   :  { %v5196_v63 = vadd.f32 %v5194_v31, %v5186_v13 }
0x2cc9   :  { %8387 = vtanh.f32 %v5196_v63  ;;  %v5452_v22 = vrot.slane %v5196_v63, 6 }
0x2ccc   :  { %v5092_v60 = vpop.permute.xlu1 %5091 }
0x2ccd   :  { %v5094_v61 = vadd.f32 %v5092_v60, %v5084_v33 }
0x2ccf   :  { %8389 = vtanh.f32 %v5094_v61 }
0x2cd3   :  { %v8388_v47 = vpop.eup %8387 }
0x2cd4   :  { %5199 = vrot.lane.b32.xlu0 %v8388_v47, %s8482_s0 }
0x2cd9   :  { %v8390_v53 = vpop.eup %8389 }
0x2cda   :  { %5097 = vrot.lane.b32.xlu1 %v8390_v53, %s8482_s0 }
0x2d46   :  { %v5200_v8 = vpop.permute.xlu0 %5199 }
0x2d47   :  { %v5202_v55 = vmul.f32 %v5200_v8, %v5182_v16 }
0x2d49   :  { %v5204_v12 = vrot.slane %v5202_v55, 6 }
0x2d4b   :  { %5205 = vrot.lane.b32.xlu0 %v5204_v12, %s8483_s13 }
0x2d4c   :  { %v5098_v49 = vpop.permute.xlu1 %5097 }
0x2d4d   :  { %v5100_v2 = vmul.f32 %v5098_v49, %v5083_v45 }
0x2d4f   :  { %5102 = vrot.lane.b32.xlu1 %v5100_v2, %s8483_s13 }
0x2dbd   :  { %v5206_v4 = vpop.permute.xlu0 %5205 }
0x2dbe   :  { %7537 = vmatmul.mubr.msk.f32.vlgmr.msra.gmra.mrb[34].mxu0 %vm174_vm2, %v5206_v4  ;;  %7559 = vmatmul.mubr.msk.f32.vlgmr.msra.gmra.mrb[38].mxu1 %vm174_vm2, %v5206_v4 }
0x2dbf   :  { %8013 = vmatpush3.bf16.msra.mxu0 %v9225_v59  ;;  %7547 = vmatprep.mubr.msk.f32.mxu0 %vm8480_vm0, %v8481_v1 }
0x2dc0   :  { %8014 = vmatprep.subr.bf16.mxu0 %v8479_v0  ;;  %8025 = vmatpush3.bf16.msra.mxu1 %v9215_v5 }
0x2dc1   :  { %v5103_v6 = vpop.permute.xlu1 %5102  ;;  %8026 = vmatprep.subr.bf16.mxu1 %v8479_v0  ;;  %7569 = vmatprep.mubr.msk.f32.mxu1 %vm8480_vm0, %v8481_v1 }
0x2dc2   :  { %5105 = vst.msk [vmem:[#allocation2 + $0x4] sm:$0x3] %vm443_vm3, %v5103_v6 }
0x2dc3   :  { %8016 = vmatpush3.bf16.msra.mxu0 %v9230_v23 }
0x2dc4   :  { %8035 = vmatprep.subr.bf16.mxu0 %v8479_v0  ;;  %8028 = vmatpush3.bf16.msra.mxu1 %v9218_v7 }
0x2dc5   :  { %8029 = vmatprep.subr.bf16.mxu1 %v8479_v0 }
0x2dc6   :  { %7548 = vmatmul.mubr.msk.f32.vlgmr.msra.gmra.mrb[34].mxu0 %vm174_vm2, %v5103_v6 }
0x2dc7   :  { %8037 = vmatpush3.bf16.msra.mxu0 %v9177_v24  ;;  %7591 = vmatprep.mubr.msk.f32.mxu0 %vm8480_vm0, %v8481_v1 }
0x2dc8   :  { %8038 = vmatprep.subr.bf16.mxu0 %v8479_v0 }
0x2dcb   :  { %8040 = vmatpush3.bf16.msra.mxu0 %v9182_v29 }
0x2dcc   :  { %8041 = vmatprep.subr.bf16.mxu0 %v8479_v0 }
0x2e91   :  { %v5443_v41 = vpop.f32.mrb[38].mxu1 }
0x2e92   :  { %v5447_v18 = vadd.f32 %v5443_v41, %v9204_v28  ;;  %v7560_v56 = vpop.f32.mrb[39].mxu1 }
0x2e94   :  { %8391 = vtanh.f32 %v5447_v18 }
0x2e99   :  { %v5347_v32 = vpop.f32.mrb[34].mxu0 }
0x2e9a   :  { %v8108_v58 = vadd.f32 %v9252_v14, %v5347_v32  ;;  %v7549_v36 = vpop.f32.mrb[35].mxu0 }
0x2e9c   :  { %8393 = vtanh.f32 %v8108_v58 }
0x2e9e   :  { %v8392_v35 = vpop.eup %8391 }
0x2e9f   :  { %5456 = vrot.lane.b32.xlu0 %v8392_v35, %s8482_s0  ;;  %v5449_v38 = vmul.f32 0.5, %v8392_v35 }
0x2ea1   :  { %v5450_v11 = vadd.f32 0.5, %v5449_v38 }
0x2ea3   :  { %v5454_v26 = vmul.f32 %v5452_v22, %v5450_v11 }
0x2ea6   :  { %v8394_v25 = vpop.eup %8393 }
0x2ea7   :  { %5357 = vrot.lane.b32.xlu1 %v8394_v25, %s8482_s0  ;;  %v5353_v17 = vmul.f32 0.5, %v8394_v25 }
0x2ea9   :  { %v5354_v43 = vadd.f32 0.5, %v5353_v17 }
0x2eab   :  { %v5355_v9 = vmul.f32 %v5354_v43, %v5094_v61 }
0x2f11   :  { %v5457_v37 = vpop.permute.xlu0 %5456 }
0x2f12   :  { %v5459_v20 = vmul.f32 %v5457_v37, %v5450_v11 }
0x2f14   :  { %5461 = vrot.lane.b32.xlu0 %v5459_v20, %s8483_s13 }
0x2f19   :  { %v5358_v42 = vpop.permute.xlu1 %5357 }
0x2f1a   :  { %v5360_v21 = vmul.f32 %v5358_v42, %v5354_v43 }
0x2f1c   :  { %5362 = vrot.lane.b32.xlu1 %v5360_v21, %s8483_s13 }
0x2f86   :  { %v5462_v27 = vpop.permute.xlu0 %5461 }
0x2f87   :  { %v5464_v34 = vadd.f32 %v5462_v27, %v5454_v26 }
0x2f89   :  { %8395 = vtanh.f32 %v5464_v34  ;;  %v5722_v55 = vrot.slane %v5464_v34, 6 }
0x2f8e   :  { %v5363_v15 = vpop.permute.xlu1 %5362 }
0x2f8f   :  { %v5365_v30 = vadd.f32 %v5363_v15, %v5355_v9 }
0x2f91   :  { %8397 = vtanh.f32 %v5365_v30 }
0x2f93   :  { %v8396_v48 = vpop.eup %8395 }
0x2f94   :  { %5467 = vrot.lane.b32.xlu0 %v8396_v48, %s8482_s0 }
0x2f9b   :  { %v8398_v44 = vpop.eup %8397 }
0x2f9c   :  { %5368 = vrot.lane.b32.xlu1 %v8398_v44, %s8482_s0 }
0x3006   :  { %v5468_v54 = vpop.permute.xlu0 %5467 }
0x3007   :  { %v5470_v10 = vmul.f32 %v5468_v54, %v5450_v11 }
0x3009   :  { %5472 = vrot.lane.b32.xlu0 %v5470_v10, %s8483_s13 }
0x300e   :  { %v5369_v50 = vpop.permute.xlu1 %5368 }
0x300f   :  { %v5371_v52 = vmul.f32 %v5369_v50, %v5354_v43 }
0x3011   :  { %5373 = vrot.lane.b32.xlu1 %v5371_v52, %s8483_s13 }
0x307b   :  { %v5473_v57 = vpop.permute.xlu0 %5472 }
0x307c   :  { %7570 = vmatmul.mubr.msk.f32.vlgmr.msra.gmra.mrb[40].mxu1 %vm174_vm2, %v5473_v57  ;;  %7592 = vmatmul.mubr.msk.f32.vlgmr.msra.gmra.mrb[36].mxu0 %vm174_vm2, %v5473_v57 }
0x307d   :  { %8031 = vmatpush3.bf16.msra.mxu1 %v9225_v59  ;;  %7580 = vmatprep.mubr.msk.f32.mxu1 %vm8480_vm0, %v8481_v1 }
0x307e   :  { %8032 = vmatprep.subr.bf16.mxu1 %v8479_v0  ;;  %8043 = vmatpush3.bf16.msra.mxu0 %v9215_v5 }
0x307f   :  { %8044 = vmatprep.subr.bf16.mxu0 %v8479_v0  ;;  %7602 = vmatprep.mubr.msk.f32.mxu0 %vm8480_vm0, %v8481_v1 }
0x3081   :  { %8034 = vmatpush3.bf16.msra.mxu1 %v9230_v23 }
0x3082   :  { %8053 = vmatprep.subr.bf16.mxu1 %v8479_v0  ;;  %8046 = vmatpush3.bf16.msra.mxu0 %v9218_v7 }
0x3083   :  { %v5374_v46 = vpop.permute.xlu1 %5373  ;;  %8047 = vmatprep.subr.bf16.mxu0 %v8479_v0 }
0x3084   :  { %5376 = vst.msk [vmem:[#allocation2 + $0x6] sm:$0x3] %vm443_vm3, %v5374_v46  ;;  %7581 = vmatmul.mubr.msk.f32.vlgmr.msra.gmra.mrb[40].mxu1 %vm174_vm2, %v5374_v46 }
0x3085   :  { %8055 = vmatpush3.bf16.msra.mxu1 %v9177_v24  ;;  %7624 = vmatprep.mubr.msk.f32.mxu1 %vm8480_vm0, %v8481_v1 }
0x3086   :  { %8056 = vmatprep.subr.bf16.mxu1 %v8479_v0 }
0x3089   :  { %8058 = vmatpush3.bf16.msra.mxu1 %v9182_v29 }
0x308a   :  { %8059 = vmatprep.subr.bf16.mxu1 %v8479_v0 }
0x314f   :  { %v5710_v16 = vpop.f32.mrb[36].mxu0 }
0x3150   :  { %v5715_v39 = vrot.slane %v5710_v16, 6  ;;  %v7593_v51 = vpop.f32.mrb[37].mxu0 }
0x3152   :  { %v5717_v40 = vadd.f32 %v5715_v39, %v9204_v28 }
0x3154   :  { %8399 = vtanh.f32 %v5717_v40 }
0x3157   :  { %v5614_v45 = vpop.f32.mrb[40].mxu1 }
0x3158   :  { %v8109_v19 = vadd.f32 %v9252_v14, %v5614_v45  ;;  %v7582_v3 = vpop.f32.mrb[41].mxu1 }
0x315a   :  { %8401 = vtanh.f32 %v8109_v19 }
0x315e   :  { %v8400_v62 = vpop.eup %8399 }
0x315f   :  { %5726 = vrot.lane.b32.xlu0 %v8400_v62, %s8482_s0  ;;  %v5719_v31 = vmul.f32 0.5, %v8400_v62 }
0x3161   :  { %v5720_v63 = vadd.f32 0.5, %v5719_v31 }
0x3163   :  { %v5724_v12 = vmul.f32 %v5722_v55, %v5720_v63 }
0x3164   :  { %v8402_v13 = vpop.eup %8401 }
0x3165   :  { %5624 = vrot.lane.b32.xlu1 %v8402_v13, %s8482_s0  ;;  %v5620_v61 = vmul.f32 0.5, %v8402_v13 }
0x3167   :  { %v5621_v47 = vadd.f32 0.5, %v5620_v61 }
0x3169   :  { %v5622_v4 = vmul.f32 %v5621_v47, %v5365_v30 }
0x31d1   :  { %v5727_v33 = vpop.permute.xlu0 %5726 }
0x31d2   :  { %v5729_v60 = vmul.f32 %v5727_v33, %v5720_v63 }
0x31d4   :  { %5731 = vrot.lane.b32.xlu0 %v5729_v60, %s8483_s13 }
0x31d7   :  { %v5625_v53 = vpop.permute.xlu1 %5624 }
0x31d8   :  { %v5627_v8 = vmul.f32 %v5625_v53, %v5621_v47 }
0x31da   :  { %5629 = vrot.lane.b32.xlu1 %v5627_v8, %s8483_s13 }
0x3246   :  { %v5732_v49 = vpop.permute.xlu0 %5731 }
0x3247   :  { %v9397_v2 = vadd.f32 %v5732_v49, %v5724_v12 }
0x3249   :  { %8403 = vtanh.f32 %v9397_v2  ;;  %v5993_v54 = vrot.slane %v9397_v2, 6 }
0x324c   :  { %v5630_v6 = vpop.permute.xlu1 %5629 }
0x324d   :  { %v5632_v41 = vadd.f32 %v5630_v6, %v5622_v4 }
0x324f   :  { %8405 = vtanh.f32 %v5632_v41 }
0x3253   :  { %v8404_v18 = vpop.eup %8403 }
0x3254   :  { %5737 = vrot.lane.b32.xlu0 %v8404_v18, %s8482_s0 }
0x3259   :  { %v8406_v56 = vpop.eup %8405 }
0x325a   :  { %5635 = vrot.lane.b32.xlu1 %v8406_v56, %s8482_s0 }
0x32c6   :  { %v5738_v32 = vpop.permute.xlu0 %5737 }
0x32c7   :  { %v5740_v58 = vmul.f32 %v5738_v32, %v5720_v63  ;;  %v6457_v63 = vld [vmem:[#allocation2] sm:$0xff] }
0x32c9   :  { %v5742_v36 = vrot.slane %v5740_v58, 2 }
0x32cb   :  { %5743 = vrot.lane.b32.xlu0 %v5742_v36, %s8483_s13 }
0x32cc   :  { %v5636_v35 = vpop.permute.xlu1 %5635 }
0x32cd   :  { %v5638_v25 = vmul.f32 %v5636_v35, %v5621_v47 }
0x32cf   :  { %5640 = vrot.lane.b32.xlu1 %v5638_v25, %s8483_s13 }
0x333d   :  { %v5744_v38 = vpop.permute.xlu0 %5743 }
0x333e   :  { %7603 = vmatmul.mubr.msk.f32.vlgmr.msra.gmra.mrb[38].mxu0 %vm174_vm2, %v5744_v38  ;;  %7625 = vmatmul.mubr.msk.f32.vlgmr.msra.gmra.mrb[42].mxu1 %vm174_vm2, %v5744_v38 }
0x333f   :  { %8049 = vmatpush3.bf16.msra.mxu0 %v9225_v59  ;;  %7613 = vmatprep.mubr.msk.f32.mxu0 %vm8480_vm0, %v8481_v1 }
0x3340   :  { %8050 = vmatprep.subr.bf16.mxu0 %v8479_v0  ;;  %8061 = vmatpush3.bf16.msra.mxu1 %v9215_v5 }
0x3341   :  { %v5641_v11 = vpop.permute.xlu1 %5640  ;;  %8062 = vmatprep.subr.bf16.mxu1 %v8479_v0  ;;  %7635 = vmatprep.mubr.msk.f32.mxu1 %vm8480_vm0, %v8481_v1 }
0x3342   :  { %5643 = vst.msk [vmem:[#allocation2 + $0x8] sm:$0x3] %vm443_vm3, %v5641_v11 }
0x3343   :  { %8052 = vmatpush3.bf16.msra.mxu0 %v9230_v23 }
0x3344   :  { %8071 = vmatprep.subr.bf16.mxu0 %v8479_v0  ;;  %8064 = vmatpush3.bf16.msra.mxu1 %v9218_v7 }
0x3345   :  { %8065 = vmatprep.subr.bf16.mxu1 %v8479_v0 }
0x3346   :  { %7614 = vmatmul.mubr.msk.f32.vlgmr.msra.gmra.mrb[38].mxu0 %vm174_vm2, %v5641_v11 }
0x3347   :  { %8073 = vmatpush3.bf16.msra.mxu0 %v9177_v24  ;;  %7657 = vmatprep.mubr.msk.f32.mxu0 %vm8480_vm0, %v8481_v1 }
0x3348   :  { %8074 = vmatprep.subr.bf16.mxu0 %v8479_v0 }
0x334b   :  { %8076 = vmatpush3.bf16.msra.mxu0 %v9182_v29 }
0x334c   :  { %8077 = vmatprep.subr.bf16.mxu0 %v8479_v0 }
0x3411   :  { %v5981_v37 = vpop.f32.mrb[42].mxu1 }
0x3412   :  { %v5986_v20 = vrot.slane %v5981_v37, 4  ;;  %v7626_v17 = vpop.f32.mrb[43].mxu1 }
0x3414   :  { %v5988_v43 = vadd.f32 %v5986_v20, %v9204_v28 }
0x3416   :  { %8407 = vtanh.f32 %v5988_v43 }
0x3419   :  { %v5885_v42 = vpop.f32.mrb[38].mxu0 }
0x341a   :  { %v8110_v21 = vadd.f32 %v9252_v14, %v5885_v42  ;;  %v7615_v22 = vpop.f32.mrb[39].mxu0 }
0x341c   :  { %8409 = vtanh.f32 %v8110_v21 }
0x3420   :  { %v8408_v24 = vpop.eup %8407 }
0x3421   :  { %5997 = vrot.lane.b32.xlu0 %v8408_v24, %s8482_s0  ;;  %v5990_v29 = vmul.f32 0.5, %v8408_v24 }
0x3423   :  { %v5991_v27 = vadd.f32 0.5, %v5990_v29 }
0x3425   :  { %v5995_v10 = vmul.f32 %v5993_v54, %v5991_v27 }
0x3426   :  { %v8410_v26 = vpop.eup %8409 }
0x3427   :  { %5895 = vrot.lane.b32.xlu1 %v8410_v26, %s8482_s0  ;;  %v5891_v15 = vmul.f32 0.5, %v8410_v26 }
0x3429   :  { %v5892_v30 = vadd.f32 0.5, %v5891_v15 }
0x342b   :  { %v5893_v57 = vmul.f32 %v5892_v30, %v5632_v41 }
0x3493   :  { %v5998_v34 = vpop.permute.xlu0 %5997 }
0x3494   :  { %v6000_v9 = vmul.f32 %v5998_v34, %v5991_v27 }
0x3496   :  { %6002 = vrot.lane.b32.xlu0 %v6000_v9, %s8483_s13 }
0x3499   :  { %v5896_v48 = vpop.permute.xlu1 %5895 }
0x349a   :  { %v5898_v44 = vmul.f32 %v5896_v48, %v5892_v30 }
0x349c   :  { %5900 = vrot.lane.b32.xlu1 %v5898_v44, %s8483_s13  ;;  %v81_v44 = vld [vmem:[#allocation5 + $0x28] sm:$0xff] }
0x3508   :  { %v6003_v50 = vpop.permute.xlu0 %6002 }
0x3509   :  { %v6005_v52 = vadd.f32 %v6003_v50, %v5995_v10  ;;  %v83_v10 = vld [vmem:[#allocation5 + $0x38] sm:$0xff]  ;;  %v84_v50 = vld [vmem:[#allocation5 + $0x40] sm:$0xff] }
0x350b   :  { %8411 = vtanh.f32 %v6005_v52  ;;  %v6264_v56 = vrot.slane %v6005_v52, 6  ;;  %v8093_v52 = vpack.c.bf16 %v84_v50, %v83_v10 }
0x350e   :  { %v5901_v46 = vpop.permute.xlu1 %5900 }
0x350f   :  { %v5903_v16 = vadd.f32 %v5901_v46, %v5893_v57 }
0x3511   :  { %8413 = vtanh.f32 %v5903_v16 }
0x3515   :  { %v8412_v39 = vpop.eup %8411 }
0x3516   :  { %6008 = vrot.lane.b32.xlu0 %v8412_v39, %s8482_s0 }
0x351b   :  { %v8414_v51 = vpop.eup %8413 }
0x351c   :  { %5906 = vrot.lane.b32.xlu1 %v8414_v51, %s8482_s0  ;;  %v6667_v51 = vld [vmem:[#allocation5 + $0x48] ss:$0 sm:$0xff] }
0x3588   :  { %v6009_v40 = vpop.permute.xlu0 %6008 }
0x3589   :  { %v6011_v45 = vmul.f32 %v6009_v40, %v5991_v27 }
0x358b   :  { %v6013_v19 = vrot.slane %v6011_v45, 4 }
0x358d   :  { %6014 = vrot.lane.b32.xlu0 %v6013_v19, %s8483_s13 }
0x358e   :  { %v5907_v3 = vpop.permute.xlu1 %5906 }
0x358f   :  { %v5909_v62 = vmul.f32 %v5907_v3, %v5892_v30 }
0x3591   :  { %5911 = vrot.lane.b32.xlu1 %v5909_v62, %s8483_s13 }
0x35ff   :  { %v6015_v13 = vpop.permute.xlu0 %6014 }
0x3600   :  { %7636 = vmatmul.mubr.msk.f32.vlgmr.msra.gmra.mrb[44].mxu1 %vm174_vm2, %v6015_v13  ;;  %7658 = vmatmul.mubr.msk.f32.vlgmr.msra.gmra.mrb[40].mxu0 %vm174_vm2, %v6015_v13 }
0x3601   :  { %8067 = vmatpush3.bf16.msra.mxu1 %v9225_v59  ;;  %7646 = vmatprep.mubr.msk.f32.mxu1 %vm8480_vm0, %v8481_v1 }
0x3602   :  { %8068 = vmatprep.subr.bf16.mxu1 %v8479_v0  ;;  %8079 = vmatpush3.bf16.msra.mxu0 %v9215_v5 }
0x3603   :  { %v5912_v31 = vpop.permute.xlu1 %5911  ;;  %8080 = vmatprep.subr.bf16.mxu0 %v8479_v0  ;;  %7668 = vmatprep.mubr.msk.f32.mxu0 %vm8480_vm0, %v8481_v1 }
0x3604   :  { %5914 = vst.msk [vmem:[#allocation2 + $0xa] sm:$0x3] %vm443_vm3, %v5912_v31 }
0x3605   :  { %8070 = vmatpush3.bf16.msra.mxu1 %v9230_v23 }
0x3606   :  { %8082 = vmatpush3.bf16.msra.mxu0 %v9218_v7 }
0x3607   :  { %8083 = vmatprep.subr.bf16.mxu0 %v8479_v0 }
0x3608   :  { %7647 = vmatmul.mubr.msk.f32.vlgmr.msra.gmra.mrb[44].mxu1 %vm174_vm2, %v5912_v31 }
0x3609   :  { %7690 = vmatprep.mubr.msk.f32.mxu1 %vm174_vm2, %v6457_v63 }
0x36d3   :  { %v6252_v5 = vpop.f32.mrb[40].mxu0 }
0x36d4   :  { %v6257_v33 = vrot.slane %v6252_v5, 2  ;;  %v7659_v60 = vpop.f32.mrb[41].mxu0 }
0x36d6   :  { %v6259_v61 = vadd.f32 %v6257_v33, %v9204_v28 }
0x36d8   :  { %8415 = vtanh.f32 %v6259_v61 }
0x36db   :  { %v6156_v47 = vpop.f32.mrb[44].mxu1 }
0x36dc   :  { %v8111_v53 = vadd.f32 %v9252_v14, %v6156_v47  ;;  %v7648_v8 = vpop.f32.mrb[45].mxu1 }
0x36de   :  { %8417 = vtanh.f32 %v8111_v53 }
0x36e2   :  { %v8416_v55 = vpop.eup %8415 }
0x36e3   :  { %6268 = vrot.lane.b32.xlu0 %v8416_v55, %s8482_s0  ;;  %v6261_v12 = vmul.f32 0.5, %v8416_v55 }
0x36e5   :  { %v6262_v49 = vadd.f32 0.5, %v6261_v12 }
0x36e7   :  { %v6266_v32 = vmul.f32 %v6264_v56, %v6262_v49 }
0x36e8   :  { %v8418_v7 = vpop.eup %8417 }
0x36e9   :  { %6166 = vrot.lane.b32.xlu1 %v8418_v7, %s8482_s0  ;;  %v6162_v6 = vmul.f32 0.5, %v8418_v7 }
0x36eb   :  { %v6163_v28 = vadd.f32 0.5, %v6162_v6 }
0x36ed   :  { %v6164_v35 = vmul.f32 %v6163_v28, %v5903_v16 }
0x3755   :  { %v6269_v2 = vpop.permute.xlu0 %6268 }
0x3756   :  { %v6271_v4 = vmul.f32 %v6269_v2, %v6262_v49 }
0x3758   :  { %6273 = vrot.lane.b32.xlu0 %v6271_v4, %s8483_s13 }
0x375b   :  { %v6167_v41 = vpop.permute.xlu1 %6166 }
0x375c   :  { %v6169_v18 = vmul.f32 %v6167_v41, %v6163_v28 }
0x375e   :  { %6171 = vrot.lane.b32.xlu1 %v6169_v18, %s8483_s13 }
0x37ca   :  { %v6274_v58 = vpop.permute.xlu0 %6273 }
0x37cb   :  { %v6276_v36 = vadd.f32 %v6274_v58, %v6266_v32 }
0x37cd   :  { %8419 = vtanh.f32 %v6276_v36 }
0x37d0   :  { %v6172_v25 = vpop.permute.xlu1 %6171 }
0x37d1   :  { %v6174_v38 = vadd.f32 %v6172_v25, %v6164_v35 }
0x37d3   :  { %8421 = vtanh.f32 %v6174_v38 }
0x37d7   :  { %v8420_v11 = vpop.eup %8419 }
0x37d8   :  { %6279 = vrot.lane.b32.xlu0 %v8420_v11, %s8482_s0 }
0x37dd   :  { %v8422_v37 = vpop.eup %8421 }
0x37de   :  { %6177 = vrot.lane.b32.xlu1 %v8422_v37, %s8482_s0 }
0x384a   :  { %v6280_v20 = vpop.permute.xlu0 %6279 }
0x384b   :  { %v6282_v17 = vmul.f32 %v6280_v20, %v6262_v49 }
0x384d   :  { %v6284_v43 = vrot.slane %v6282_v17, 6 }
0x384f   :  { %6285 = vrot.lane.b32.xlu0 %v6284_v43, %s8483_s13 }
0x3850   :  { %v6178_v42 = vpop.permute.xlu1 %6177 }
0x3851   :  { %v6180_v21 = vmul.f32 %v6178_v42, %v6163_v28 }
0x3853   :  { %6182 = vrot.lane.b32.xlu1 %v6180_v21, %s8483_s13 }
0x38c1   :  { %v6286_v22 = vpop.permute.xlu0 %6285 }
0x38c2   :  { %7669 = vmatmul.mubr.msk.f32.vlgmr.msra.gmra.mrb[42].mxu0 %vm174_vm2, %v6286_v22 }
0x38c3   :  { %8085 = vmatpush3.bf16.msra.mxu0 %v9225_v59  ;;  %7679 = vmatprep.mubr.msk.f32.mxu0 %vm8480_vm0, %v8481_v1 }
0x38c4   :  { %8086 = vmatprep.subr.bf16.mxu0 %v8479_v0 }
0x38c5   :  { %v6183_v24 = vpop.permute.xlu1 %6182 }
0x38c6   :  { %6185 = vst.msk [vmem:[#allocation2 + $0xc] sm:$0x3] %vm443_vm3, %v6183_v24 }
0x38c7   :  { %8088 = vmatpush3.bf16.msra.mxu0 %v9230_v23 }
0x38ca   :  { %7680 = vmatmul.mubr.msk.f32.vlgmr.msra.gmra.mrb[42].mxu0 %vm174_vm2, %v6183_v24 }
0x399d   :  { %v6427_v26 = vpop.f32.mrb[42].mxu0 }
0x399e   :  { %v8112_v29 = vadd.f32 %v9252_v14, %v6427_v26  ;;  %v7681_v27 = vpop.f32.mrb[43].mxu0  ;;  %v82_v14 = vld [vmem:[#allocation5 + $0x30] sm:$0xff] }
0x399f   :  { %v8089_v54 = vpack.c.bf16 %v82_v14, %v81_v44 }
0x39a0   :  { %8423 = vtanh.f32 %v8112_v29 }
0x39a1   :  { %8090 = vmatprep.subr.bf16.mxu1 %v8089_v54 }
0x39a2   :  { %8092 = vmatpush3.bf16.msra.mxu1 %v8089_v54 }
0x39a3   :  { %8094 = vmatprep.subr.bf16.mxu1 %v8093_v52 }
0x39a6   :  { %8096 = vmatpush3.bf16.msra.mxu1 %v8093_v52 }
0x39aa   :  { %v8424_v34 = vpop.eup %8423 }
0x39ab   :  { %6437 = vrot.lane.b32.xlu0 %v8424_v34, %s8482_s0  ;;  %v6433_v59 = vmul.f32 0.5, %v8424_v34 }
0x39ad   :  { %v6434_v9 = vadd.f32 0.5, %v6433_v59 }
0x39af   :  { %v6435_v0 = vmul.f32 %v6434_v9, %v6174_v38 }
0x3a1d   :  { %v6438_v1 = vpop.permute.xlu0 %6437 }
0x3a1e   :  { %v6440_v15 = vmul.f32 %v6438_v1, %v6434_v9 }
0x3a20   :  { %6442 = vrot.lane.b32.xlu1 %v6440_v15, %s8483_s13 }
0x3a92   :  { %v6443_v30 = vpop.permute.xlu1 %6442 }
0x3a93   :  { %v6445_v48 = vadd.f32 %v6443_v30, %v6435_v0 }
0x3a95   :  { %8425 = vtanh.f32 %v6445_v48 }
0x3a9f   :  { %v8426_v23 = vpop.eup %8425 }
0x3aa0   :  { %6448 = vrot.lane.b32.xlu0 %v8426_v23, %s8482_s0 }
0x3b12   :  { %v6449_v57 = vpop.permute.xlu0 %6448 }
0x3b13   :  { %v6451_v46 = vmul.f32 %v6449_v57, %v6434_v9 }
0x3b15   :  { %6453 = vrot.lane.b32.xlu1 %v6451_v46, %s8483_s13 }
0x3b87   :  { %v6454_v16 = vpop.permute.xlu1 %6453 }
0x3b88   :  { %6456 = vst.msk [vmem:[#allocation2 + $0xe] sm:$0x3] %vm443_vm3, %v6454_v16 }
0x3b8f   :  { %v6458_v39 = vld [vmem:[#allocation2 + $0x8] sm:$0xff] }
0x3b90   :  { %7691 = vmatmul.mubr.msk.f32.vlgmr.msra.gmra.mrb[46].mxu1 %vm174_vm2, %v6458_v39 }
0x3c63   :  { %v7692_v40 = vpop.f32.mrb[46].mxu1 }
0x3c64   :  { %v6541_v45 = vadd.f32 %v7692_v40, %v6667_v51  ;;  %v6535_v19 = vpop.f32.mrb[47].mxu1 }
0x3c65   :  { %v6536_v3 = vadd.f32 %v6667_v51, %v6535_v19 }
0x3c66   :  { %6545 = vst.msk [vmem:[%s9489_s3 + $0x8] sm:$0xff] %vm92_vm1, %v6541_v45 }
0x3c67   :  { %6544 = vst.msk [vmem:[%s9489_s3] sm:$0xff] %vm92_vm1, %v6536_v3 }
0x3c68   :  { %6550 = vsyncpa [#allocation4], 1 }
0x3c69   :  { %6551 = vsyncpa [#allocation6], 1 }

</bundles_post_ra>
